<compile_context>
chip_gen: v7x
topology: tpu7x:2x2x1
jax: 0.10.0
libtpu: 0.0.40
codegen_flags: <defaults>
</compile_context>

<pallas_src>
import math
import functools

import jax
import jax.numpy as jnp
from jax.experimental import pallas as pl
from jax.experimental.pallas import tpu as pltpu

# ---------------- model hyper-params (match the PyTorch module) -------------
BATCH = 2
SEQ = 8
D_MODEL = 512
N_HEAD = 8
D_HEAD = D_MODEL // N_HEAD


def _mha_kernel(q_ref, k_ref, v_ref,
                wqkv_ref, bqkv_ref, wc_ref, bc_ref,
                o_ref, *, batch, seq, n_head, d_head):
    """Fused MHA, batch folded into the matmul M dimension.

    q_ref/k_ref/v_ref : (B*L, D) f32 VMEM tiles
    wqkv_ref          : (D, 3D)  bf16, pre-transposed [in,out]  Wq|Wk|Wv
    bqkv_ref          : (1, 3D)  f32 packed biases              bq|bk|bv
    wc_ref            : (D, D)   bf16, pre-transposed [in,out]  W_concat
    bc_ref            : (1, D)   f32
    o_ref             : (B*L, D) f32
    """
    D = n_head * d_head
    M = batch * seq

    # MXU operands in bf16 (weights already bf16); accumulate in f32.
    q = q_ref[...].astype(jnp.bfloat16)      # (M, D)
    k = k_ref[...].astype(jnp.bfloat16)
    v = v_ref[...].astype(jnp.bfloat16)

    # Linear projections: y = x @ W_T + b.  Weight refs are sliced directly
    # (tile-aligned column windows at multiples of D=512) so the MXU streams
    # straight from VMEM with no intermediate slab copy.
    qp = jnp.dot(q, wqkv_ref[:, 0 * D:1 * D],
                 preferred_element_type=jnp.float32) + bqkv_ref[:, 0 * D:1 * D]
    kp = jnp.dot(k, wqkv_ref[:, 1 * D:2 * D],
                 preferred_element_type=jnp.float32) + bqkv_ref[:, 1 * D:2 * D]
    vp = jnp.dot(v, wqkv_ref[:, 2 * D:3 * D],
                 preferred_element_type=jnp.float32) + bqkv_ref[:, 2 * D:3 * D]

    scale = 1.0 / math.sqrt(d_head)

    # Per-head scaled dot-product attention with the concat() folded into the
    # output projection:  out = sum_h softmax(q_h k_h^T * scale) v_h @ WcT_h
    acc = jnp.zeros((M, D), jnp.float32)
    for h in range(n_head):
        c0 = h * d_head
        oh_rows = []
        for b in range(batch):
            r0 = b * seq
            qh = qp[r0:r0 + seq, c0:c0 + d_head]          # (L, dt) f32
            kh = kp[r0:r0 + seq, c0:c0 + d_head]
            vh = vp[r0:r0 + seq, c0:c0 + d_head]

            # q_h @ k_h^T without materialising a transpose: contract dim 1 of
            # both operands directly on the MXU.
            s = jax.lax.dot_general(
                qh, kh, (((1,), (1,)), ((), ())),
                preferred_element_type=jnp.float32) * scale   # (L, L)

            s = s - jnp.max(s, axis=-1, keepdims=True)
            p = jnp.exp(s)
            p = p / jnp.sum(p, axis=-1, keepdims=True)        # exact softmax

            oh_rows.append(jnp.dot(p, vh,
                                   preferred_element_type=jnp.float32))

        # Stack both batches (sublane concat) so the wc row-slab is pushed
        # through the MXU once per head at M = B*L.
        oh_all = jnp.concatenate(oh_rows, axis=0)             # (M, dt) f32
        acc = acc + jnp.dot(oh_all.astype(jnp.bfloat16),
                            wc_ref[c0:c0 + d_head, :],
                            preferred_element_type=jnp.float32)   # (M, D)

    o_ref[...] = (acc + bc_ref[...]).astype(o_ref.dtype)


def multi_head_attention(q, k, v, params, *, n_head=N_HEAD):
    """q, k, v: (B, L, D) float32.  params: dict of nn.Linear weights/biases."""
    B, L, D = q.shape
    d_head = D // n_head
    M = B * L

    # One-time (trace-level) packing: pre-transpose to [in, out] layout, pack
    # the three QKV projections into one lane-dense slab, stream weights bf16.
    wqkv_t = jnp.concatenate(
        [params["wq"].T, params["wk"].T, params["wv"].T],
        axis=1).astype(jnp.bfloat16)                                # (D, 3D)
    bqkv = jnp.concatenate(
        [params["bq"], params["bk"], params["bv"]]
    ).reshape(1, 3 * D).astype(jnp.float32)
    wc_t = params["wc"].T.astype(jnp.bfloat16)                      # (D, D)
    bc = params["bc"].reshape(1, D).astype(jnp.float32)

    # Fold batch into the matmul M dimension.
    q2 = q.reshape(M, D)
    k2 = k.reshape(M, D)
    v2 = v.reshape(M, D)

    kernel = functools.partial(_mha_kernel, batch=B, seq=L,
                               n_head=n_head, d_head=d_head)

    def full(shape):
        return pl.BlockSpec(shape, lambda i: (0, 0))

    out2 = pl.pallas_call(
        kernel,
        out_shape=jax.ShapeDtypeStruct((M, D), q.dtype),
        grid_spec=pltpu.PrefetchScalarGridSpec(
            num_scalar_prefetch=0,
            grid=(1,),                      # single step: weights DMA'd once
            in_specs=[full((M, D)), full((M, D)), full((M, D)),
                      full((D, 3 * D)), full((1, 3 * D)),
                      full((D, D)), full((1, D))],
            out_specs=full((M, D)),
        ),
        compiler_params=pltpu.CompilerParams(
            dimension_semantics=("arbitrary",),
            # Whole working set (bf16 weights + activations) is ~3 MiB; keep an
            # explicit generous cap so it is safe on all generations.
            vmem_limit_bytes=32 * 1024 * 1024),
    )(q2, k2, v2, wqkv_t, bqkv, wc_t, bc)

    return out2.reshape(B, L, D)


# ---------------- pure-JAX reference (mirrors the PyTorch forward) ----------
def mha_reference(q, k, v, params, *, n_head=N_HEAD):
    B, L, D = q.shape
    dt = D // n_head

    def lin(x, w, b):
        return x @ w.T + b

    qp = lin(q, params["wq"], params["bq"])
    kp = lin(k, params["wk"], params["bk"])
    vp = lin(v, params["wv"], params["bv"])

    def split(t):  # (B, L, D) -> (B, H, L, dt)
        return t.reshape(B, L, n_head, dt).transpose(0, 2, 1, 3)

    qh, kh, vh = split(qp), split(kp), split(vp)
    score = jnp.einsum("bhld,bhmd->bhlm", qh, kh) / math.sqrt(dt)
    score = jax.nn.softmax(score, axis=-1)
    out = jnp.einsum("bhlm,bhmd->bhld", score, vh)
    out = out.transpose(0, 2, 1, 3).reshape(B, L, D)  # concat
    return lin(out, params["wc"], params["bc"])


def init_params(key, d_model):
    """Deterministic nn.Linear-style init: U(-1/sqrt(in), 1/sqrt(in))."""
    bound = 1.0 / math.sqrt(d_model)
    names = ["wq", "bq", "wk", "bk", "wv", "bv", "wc", "bc"]
    keys = jax.random.split(key, len(names))
    params = {}
    for name, kk in zip(names, keys):
        shape = (d_model, d_model) if name.startswith("w") else (d_model,)
        params[name] = jax.random.uniform(
            kk, shape, jnp.float32, minval=-bound, maxval=bound)
    return params


if __name__ == "__main__":
    root = jax.random.PRNGKey(0)
    kq, kk, kv, kp = jax.random.split(root, 4)

    q = jax.random.normal(kq, (BATCH, SEQ, D_MODEL), jnp.float32)
    k = jax.random.normal(kk, (BATCH, SEQ, D_MODEL), jnp.float32)
    v = jax.random.normal(kv, (BATCH, SEQ, D_MODEL), jnp.float32)
    params = init_params(kp, D_MODEL)

    out = multi_head_attention(q, k, v, params)
    out = jax.block_until_ready(out)

    ref = mha_reference(q, k, v, params)
    assert out.shape == (BATCH, SEQ, D_MODEL)
    # bf16 weight/activation streaming on the MXU (f32 accumulation) is a
    # deliberate bandwidth/accuracy tradeoff -> tolerance 2e-2 vs f32 reference.
    assert jnp.allclose(out, ref, atol=2e-2, rtol=2e-2), "mismatch vs reference"

    print("KERNEL_OK")
</pallas_src>

<mosaic_0001>
module attributes {stable_mosaic.version = 11 : i64} {
  func.func @_mha_kernel(%arg0: i32, %arg1: memref<16x512xf32, #tpu.memory_space<vmem>>, %arg2: memref<16x512xf32, #tpu.memory_space<vmem>>, %arg3: memref<16x512xf32, #tpu.memory_space<vmem>>, %arg4: memref<512x1536xbf16, #tpu.memory_space<vmem>>, %arg5: memref<1x1536xf32, #tpu.memory_space<vmem>>, %arg6: memref<512x512xbf16, #tpu.memory_space<vmem>>, %arg7: memref<1x512xf32, #tpu.memory_space<vmem>>, %arg8: memref<16x512xf32, #tpu.memory_space<vmem>>) attributes {dimension_semantics = [#tpu.dimension_semantics<arbitrary>], iteration_bounds = array<i64: 1>, scalar_prefetch = 0 : i64, scratch_operands = 0 : i64, tpu.core_type = #tpu.core_type<tc>, window_params = [{pipeline_mode = #tpu.pipeline_mode<synchronous>, transform_indices = @transform_0, window_bounds = array<i64: 16, 512>}, {pipeline_mode = #tpu.pipeline_mode<synchronous>, transform_indices = @transform_1, window_bounds = array<i64: 16, 512>}, {pipeline_mode = #tpu.pipeline_mode<synchronous>, transform_indices = @transform_2, window_bounds = array<i64: 16, 512>}, {pipeline_mode = #tpu.pipeline_mode<synchronous>, transform_indices = @transform_3, window_bounds = array<i64: 512, 1536>}, {pipeline_mode = #tpu.pipeline_mode<synchronous>, transform_indices = @transform_4, window_bounds = array<i64: 1, 1536>}, {pipeline_mode = #tpu.pipeline_mode<synchronous>, transform_indices = @transform_5, window_bounds = array<i64: 512, 512>}, {pipeline_mode = #tpu.pipeline_mode<synchronous>, transform_indices = @transform_6, window_bounds = array<i64: 1, 512>}, {pipeline_mode = #tpu.pipeline_mode<synchronous>, transform_indices = @transform_7, window_bounds = array<i64: 16, 512>}]} {
    %c0 = arith.constant 0 : index
    %c0_0 = arith.constant 0 : index
    %0 = vector.load %arg1[%c0, %c0_0] : memref<16x512xf32, #tpu.memory_space<vmem>>, vector<16x512xf32>
    %1 = arith.truncf %0 : vector<16x512xf32> to vector<16x512xbf16>
    %c0_1 = arith.constant 0 : index
    %c0_2 = arith.constant 0 : index
    %2 = vector.load %arg2[%c0_1, %c0_2] : memref<16x512xf32, #tpu.memory_space<vmem>>, vector<16x512xf32>
    %3 = arith.truncf %2 : vector<16x512xf32> to vector<16x512xbf16>
    %c0_3 = arith.constant 0 : index
    %c0_4 = arith.constant 0 : index
    %4 = vector.load %arg3[%c0_3, %c0_4] : memref<16x512xf32, #tpu.memory_space<vmem>>, vector<16x512xf32>
    %5 = arith.truncf %4 : vector<16x512xf32> to vector<16x512xbf16>
    %c0_5 = arith.constant 0 : index
    %c0_6 = arith.constant 0 : index
    %6 = vector.load %arg4[%c0_5, %c0_6] : memref<512x1536xbf16, #tpu.memory_space<vmem>>, vector<512x512xbf16>
    %cst = arith.constant dense<0.000000e+00> : vector<16x512xf32>
    %7 = tpu.matmul %1, %6, %cst {dimension_numbers = #tpu.dot_dimension_numbers<[1], [0], [0], [1], [0, 0, 1, 1], [], []>} : vector<16x512xbf16>, vector<512x512xbf16>, vector<16x512xf32> -> vector<16x512xf32>
    %c0_7 = arith.constant 0 : index
    %c0_8 = arith.constant 0 : index
    %8 = vector.load %arg5[%c0_7, %c0_8] : memref<1x1536xf32, #tpu.memory_space<vmem>>, vector<1x512xf32>
    %9 = vector.broadcast %8 : vector<1x512xf32> to vector<16x512xf32>
    %10 = arith.addf %7, %9 : vector<16x512xf32>
    %c0_9 = arith.constant 0 : index
    %c512 = arith.constant 512 : index
    %11 = vector.load %arg4[%c0_9, %c512] : memref<512x1536xbf16, #tpu.memory_space<vmem>>, vector<512x512xbf16>
    %cst_10 = arith.constant dense<0.000000e+00> : vector<16x512xf32>
    %12 = tpu.matmul %3, %11, %cst_10 {dimension_numbers = #tpu.dot_dimension_numbers<[1], [0], [0], [1], [0, 0, 1, 1], [], []>} : vector<16x512xbf16>, vector<512x512xbf16>, vector<16x512xf32> -> vector<16x512xf32>
    %c0_11 = arith.constant 0 : index
    %c512_12 = arith.constant 512 : index
    %13 = vector.load %arg5[%c0_11, %c512_12] : memref<1x1536xf32, #tpu.memory_space<vmem>>, vector<1x512xf32>
    %14 = vector.broadcast %13 : vector<1x512xf32> to vector<16x512xf32>
    %15 = arith.addf %12, %14 : vector<16x512xf32>
    %c0_13 = arith.constant 0 : index
    %c1024 = arith.constant 1024 : index
    %16 = vector.load %arg4[%c0_13, %c1024] : memref<512x1536xbf16, #tpu.memory_space<vmem>>, vector<512x512xbf16>
    %cst_14 = arith.constant dense<0.000000e+00> : vector<16x512xf32>
    %17 = tpu.matmul %5, %16, %cst_14 {dimension_numbers = #tpu.dot_dimension_numbers<[1], [0], [0], [1], [0, 0, 1, 1], [], []>} : vector<16x512xbf16>, vector<512x512xbf16>, vector<16x512xf32> -> vector<16x512xf32>
    %c0_15 = arith.constant 0 : index
    %c1024_16 = arith.constant 1024 : index
    %18 = vector.load %arg5[%c0_15, %c1024_16] : memref<1x1536xf32, #tpu.memory_space<vmem>>, vector<1x512xf32>
    %19 = vector.broadcast %18 : vector<1x512xf32> to vector<16x512xf32>
    %20 = arith.addf %17, %19 : vector<16x512xf32>
    %cst_17 = arith.constant 0.000000e+00 : f32
    %21 = vector.broadcast %cst_17 : f32 to vector<16x512xf32>
    %22 = vector.extract_strided_slice %10 {offsets = [0, 0], sizes = [8, 64], strides = [1, 1]} : vector<16x512xf32> to vector<8x64xf32>
    %23 = vector.extract_strided_slice %15 {offsets = [0, 0], sizes = [8, 64], strides = [1, 1]} : vector<16x512xf32> to vector<8x64xf32>
    %24 = vector.extract_strided_slice %20 {offsets = [0, 0], sizes = [8, 64], strides = [1, 1]} : vector<16x512xf32> to vector<8x64xf32>
    %cst_18 = arith.constant dense<0.000000e+00> : vector<8x8xf32>
    %25 = tpu.matmul %22, %23, %cst_18 {dimension_numbers = #tpu.dot_dimension_numbers<[1], [1], [0], [0], [0, 0, 1, 0], [], []>} : vector<8x64xf32>, vector<8x64xf32>, vector<8x8xf32> -> vector<8x8xf32>
    %cst_19 = arith.constant 1.250000e-01 : f32
    %26 = vector.broadcast %cst_19 : f32 to vector<8x8xf32>
    %27 = arith.mulf %25, %26 : vector<8x8xf32>
    %cst_20 = arith.constant dense<0xFF800000> : vector<8xf32>
    %28 = vector.multi_reduction <maximumf>, %27, %cst_20 [1] : vector<8x8xf32> to vector<8xf32>
    %29 = vector.shape_cast %28 : vector<8xf32> to vector<8x1xf32>
    %30 = vector.broadcast %29 : vector<8x1xf32> to vector<8x8xf32>
    %31 = arith.subf %27, %30 : vector<8x8xf32>
    %32 = math.exp %31 : vector<8x8xf32>
    %cst_21 = arith.constant dense<0.000000e+00> : vector<8xf32>
    %33 = vector.multi_reduction <add>, %32, %cst_21 [1] : vector<8x8xf32> to vector<8xf32>
    %34 = vector.shape_cast %33 : vector<8xf32> to vector<8x1xf32>
    %35 = vector.broadcast %34 : vector<8x1xf32> to vector<8x8xf32>
    %36 = arith.divf %32, %35 : vector<8x8xf32>
    %cst_22 = arith.constant dense<0.000000e+00> : vector<8x64xf32>
    %37 = tpu.matmul %36, %24, %cst_22 {dimension_numbers = #tpu.dot_dimension_numbers<[1], [0], [0], [1], [0, 0, 1, 1], [], []>} : vector<8x8xf32>, vector<8x64xf32>, vector<8x64xf32> -> vector<8x64xf32>
    %38 = vector.extract_strided_slice %10 {offsets = [8, 0], sizes = [8, 64], strides = [1, 1]} : vector<16x512xf32> to vector<8x64xf32>
    %39 = vector.extract_strided_slice %15 {offsets = [8, 0], sizes = [8, 64], strides = [1, 1]} : vector<16x512xf32> to vector<8x64xf32>
    %40 = vector.extract_strided_slice %20 {offsets = [8, 0], sizes = [8, 64], strides = [1, 1]} : vector<16x512xf32> to vector<8x64xf32>
    %cst_23 = arith.constant dense<0.000000e+00> : vector<8x8xf32>
    %41 = tpu.matmul %38, %39, %cst_23 {dimension_numbers = #tpu.dot_dimension_numbers<[1], [1], [0], [0], [0, 0, 1, 0], [], []>} : vector<8x64xf32>, vector<8x64xf32>, vector<8x8xf32> -> vector<8x8xf32>
    %cst_24 = arith.constant 1.250000e-01 : f32
    %42 = vector.broadcast %cst_24 : f32 to vector<8x8xf32>
    %43 = arith.mulf %41, %42 : vector<8x8xf32>
    %cst_25 = arith.constant dense<0xFF800000> : vector<8xf32>
    %44 = vector.multi_reduction <maximumf>, %43, %cst_25 [1] : vector<8x8xf32> to vector<8xf32>
    %45 = vector.shape_cast %44 : vector<8xf32> to vector<8x1xf32>
    %46 = vector.broadcast %45 : vector<8x1xf32> to vector<8x8xf32>
    %47 = arith.subf %43, %46 : vector<8x8xf32>
    %48 = math.exp %47 : vector<8x8xf32>
    %cst_26 = arith.constant dense<0.000000e+00> : vector<8xf32>
    %49 = vector.multi_reduction <add>, %48, %cst_26 [1] : vector<8x8xf32> to vector<8xf32>
    %50 = vector.shape_cast %49 : vector<8xf32> to vector<8x1xf32>
    %51 = vector.broadcast %50 : vector<8x1xf32> to vector<8x8xf32>
    %52 = arith.divf %48, %51 : vector<8x8xf32>
    %cst_27 = arith.constant dense<0.000000e+00> : vector<8x64xf32>
    %53 = tpu.matmul %52, %40, %cst_27 {dimension_numbers = #tpu.dot_dimension_numbers<[1], [0], [0], [1], [0, 0, 1, 1], [], []>} : vector<8x8xf32>, vector<8x64xf32>, vector<8x64xf32> -> vector<8x64xf32>
    %54 = tpu.concatenate %37, %53 in 0 : vector<8x64xf32>, vector<8x64xf32> -> vector<16x64xf32>
    %55 = arith.truncf %54 : vector<16x64xf32> to vector<16x64xbf16>
    %c0_28 = arith.constant 0 : index
    %c0_29 = arith.constant 0 : index
    %56 = vector.load %arg6[%c0_28, %c0_29] : memref<512x512xbf16, #tpu.memory_space<vmem>>, vector<64x512xbf16>
    %cst_30 = arith.constant dense<0.000000e+00> : vector<16x512xf32>
    %57 = tpu.matmul %55, %56, %cst_30 {dimension_numbers = #tpu.dot_dimension_numbers<[1], [0], [0], [1], [0, 0, 1, 1], [], []>} : vector<16x64xbf16>, vector<64x512xbf16>, vector<16x512xf32> -> vector<16x512xf32>
    %58 = arith.addf %21, %57 : vector<16x512xf32>
    %59 = vector.extract_strided_slice %10 {offsets = [0, 64], sizes = [8, 64], strides = [1, 1]} : vector<16x512xf32> to vector<8x64xf32>
    %60 = vector.extract_strided_slice %15 {offsets = [0, 64], sizes = [8, 64], strides = [1, 1]} : vector<16x512xf32> to vector<8x64xf32>
    %61 = vector.extract_strided_slice %20 {offsets = [0, 64], sizes = [8, 64], strides = [1, 1]} : vector<16x512xf32> to vector<8x64xf32>
    %cst_31 = arith.constant dense<0.000000e+00> : vector<8x8xf32>
    %62 = tpu.matmul %59, %60, %cst_31 {dimension_numbers = #tpu.dot_dimension_numbers<[1], [1], [0], [0], [0, 0, 1, 0], [], []>} : vector<8x64xf32>, vector<8x64xf32>, vector<8x8xf32> -> vector<8x8xf32>
    %cst_32 = arith.constant 1.250000e-01 : f32
    %63 = vector.broadcast %cst_32 : f32 to vector<8x8xf32>
    %64 = arith.mulf %62, %63 : vector<8x8xf32>
    %cst_33 = arith.constant dense<0xFF800000> : vector<8xf32>
    %65 = vector.multi_reduction <maximumf>, %64, %cst_33 [1] : vector<8x8xf32> to vector<8xf32>
    %66 = vector.shape_cast %65 : vector<8xf32> to vector<8x1xf32>
    %67 = vector.broadcast %66 : vector<8x1xf32> to vector<8x8xf32>
    %68 = arith.subf %64, %67 : vector<8x8xf32>
    %69 = math.exp %68 : vector<8x8xf32>
    %cst_34 = arith.constant dense<0.000000e+00> : vector<8xf32>
    %70 = vector.multi_reduction <add>, %69, %cst_34 [1] : vector<8x8xf32> to vector<8xf32>
    %71 = vector.shape_cast %70 : vector<8xf32> to vector<8x1xf32>
    %72 = vector.broadcast %71 : vector<8x1xf32> to vector<8x8xf32>
    %73 = arith.divf %69, %72 : vector<8x8xf32>
    %cst_35 = arith.constant dense<0.000000e+00> : vector<8x64xf32>
    %74 = tpu.matmul %73, %61, %cst_35 {dimension_numbers = #tpu.dot_dimension_numbers<[1], [0], [0], [1], [0, 0, 1, 1], [], []>} : vector<8x8xf32>, vector<8x64xf32>, vector<8x64xf32> -> vector<8x64xf32>
    %75 = vector.extract_strided_slice %10 {offsets = [8, 64], sizes = [8, 64], strides = [1, 1]} : vector<16x512xf32> to vector<8x64xf32>
    %76 = vector.extract_strided_slice %15 {offsets = [8, 64], sizes = [8, 64], strides = [1, 1]} : vector<16x512xf32> to vector<8x64xf32>
    %77 = vector.extract_strided_slice %20 {offsets = [8, 64], sizes = [8, 64], strides = [1, 1]} : vector<16x512xf32> to vector<8x64xf32>
    %cst_36 = arith.constant dense<0.000000e+00> : vector<8x8xf32>
    %78 = tpu.matmul %75, %76, %cst_36 {dimension_numbers = #tpu.dot_dimension_numbers<[1], [1], [0], [0], [0, 0, 1, 0], [], []>} : vector<8x64xf32>, vector<8x64xf32>, vector<8x8xf32> -> vector<8x8xf32>
    %cst_37 = arith.constant 1.250000e-01 : f32
    %79 = vector.broadcast %cst_37 : f32 to vector<8x8xf32>
    %80 = arith.mulf %78, %79 : vector<8x8xf32>
    %cst_38 = arith.constant dense<0xFF800000> : vector<8xf32>
    %81 = vector.multi_reduction <maximumf>, %80, %cst_38 [1] : vector<8x8xf32> to vector<8xf32>
    %82 = vector.shape_cast %81 : vector<8xf32> to vector<8x1xf32>
    %83 = vector.broadcast %82 : vector<8x1xf32> to vector<8x8xf32>
    %84 = arith.subf %80, %83 : vector<8x8xf32>
    %85 = math.exp %84 : vector<8x8xf32>
    %cst_39 = arith.constant dense<0.000000e+00> : vector<8xf32>
    %86 = vector.multi_reduction <add>, %85, %cst_39 [1] : vector<8x8xf32> to vector<8xf32>
    %87 = vector.shape_cast %86 : vector<8xf32> to vector<8x1xf32>
    %88 = vector.broadcast %87 : vector<8x1xf32> to vector<8x8xf32>
    %89 = arith.divf %85, %88 : vector<8x8xf32>
    %cst_40 = arith.constant dense<0.000000e+00> : vector<8x64xf32>
    %90 = tpu.matmul %89, %77, %cst_40 {dimension_numbers = #tpu.dot_dimension_numbers<[1], [0], [0], [1], [0, 0, 1, 1], [], []>} : vector<8x8xf32>, vector<8x64xf32>, vector<8x64xf32> -> vector<8x64xf32>
    %91 = tpu.concatenate %74, %90 in 0 : vector<8x64xf32>, vector<8x64xf32> -> vector<16x64xf32>
    %92 = arith.truncf %91 : vector<16x64xf32> to vector<16x64xbf16>
    %c64 = arith.constant 64 : index
    %c0_41 = arith.constant 0 : index
    %93 = vector.load %arg6[%c64, %c0_41] : memref<512x512xbf16, #tpu.memory_space<vmem>>, vector<64x512xbf16>
    %cst_42 = arith.constant dense<0.000000e+00> : vector<16x512xf32>
    %94 = tpu.matmul %92, %93, %cst_42 {dimension_numbers = #tpu.dot_dimension_numbers<[1], [0], [0], [1], [0, 0, 1, 1], [], []>} : vector<16x64xbf16>, vector<64x512xbf16>, vector<16x512xf32> -> vector<16x512xf32>
    %95 = arith.addf %58, %94 : vector<16x512xf32>
    %96 = vector.extract_strided_slice %10 {offsets = [0, 128], sizes = [8, 64], strides = [1, 1]} : vector<16x512xf32> to vector<8x64xf32>
    %97 = vector.extract_strided_slice %15 {offsets = [0, 128], sizes = [8, 64], strides = [1, 1]} : vector<16x512xf32> to vector<8x64xf32>
    %98 = vector.extract_strided_slice %20 {offsets = [0, 128], sizes = [8, 64], strides = [1, 1]} : vector<16x512xf32> to vector<8x64xf32>
    %cst_43 = arith.constant dense<0.000000e+00> : vector<8x8xf32>
    %99 = tpu.matmul %96, %97, %cst_43 {dimension_numbers = #tpu.dot_dimension_numbers<[1], [1], [0], [0], [0, 0, 1, 0], [], []>} : vector<8x64xf32>, vector<8x64xf32>, vector<8x8xf32> -> vector<8x8xf32>
    %cst_44 = arith.constant 1.250000e-01 : f32
    %100 = vector.broadcast %cst_44 : f32 to vector<8x8xf32>
    %101 = arith.mulf %99, %100 : vector<8x8xf32>
    %cst_45 = arith.constant dense<0xFF800000> : vector<8xf32>
    %102 = vector.multi_reduction <maximumf>, %101, %cst_45 [1] : vector<8x8xf32> to vector<8xf32>
    %103 = vector.shape_cast %102 : vector<8xf32> to vector<8x1xf32>
    %104 = vector.broadcast %103 : vector<8x1xf32> to vector<8x8xf32>
    %105 = arith.subf %101, %104 : vector<8x8xf32>
    %106 = math.exp %105 : vector<8x8xf32>
    %cst_46 = arith.constant dense<0.000000e+00> : vector<8xf32>
    %107 = vector.multi_reduction <add>, %106, %cst_46 [1] : vector<8x8xf32> to vector<8xf32>
    %108 = vector.shape_cast %107 : vector<8xf32> to vector<8x1xf32>
    %109 = vector.broadcast %108 : vector<8x1xf32> to vector<8x8xf32>
    %110 = arith.divf %106, %109 : vector<8x8xf32>
    %cst_47 = arith.constant dense<0.000000e+00> : vector<8x64xf32>
    %111 = tpu.matmul %110, %98, %cst_47 {dimension_numbers = #tpu.dot_dimension_numbers<[1], [0], [0], [1], [0, 0, 1, 1], [], []>} : vector<8x8xf32>, vector<8x64xf32>, vector<8x64xf32> -> vector<8x64xf32>
    %112 = vector.extract_strided_slice %10 {offsets = [8, 128], sizes = [8, 64], strides = [1, 1]} : vector<16x512xf32> to vector<8x64xf32>
    %113 = vector.extract_strided_slice %15 {offsets = [8, 128], sizes = [8, 64], strides = [1, 1]} : vector<16x512xf32> to vector<8x64xf32>
    %114 = vector.extract_strided_slice %20 {offsets = [8, 128], sizes = [8, 64], strides = [1, 1]} : vector<16x512xf32> to vector<8x64xf32>
    %cst_48 = arith.constant dense<0.000000e+00> : vector<8x8xf32>
    %115 = tpu.matmul %112, %113, %cst_48 {dimension_numbers = #tpu.dot_dimension_numbers<[1], [1], [0], [0], [0, 0, 1, 0], [], []>} : vector<8x64xf32>, vector<8x64xf32>, vector<8x8xf32> -> vector<8x8xf32>
    %cst_49 = arith.constant 1.250000e-01 : f32
    %116 = vector.broadcast %cst_49 : f32 to vector<8x8xf32>
    %117 = arith.mulf %115, %116 : vector<8x8xf32>
    %cst_50 = arith.constant dense<0xFF800000> : vector<8xf32>
    %118 = vector.multi_reduction <maximumf>, %117, %cst_50 [1] : vector<8x8xf32> to vector<8xf32>
    %119 = vector.shape_cast %118 : vector<8xf32> to vector<8x1xf32>
    %120 = vector.broadcast %119 : vector<8x1xf32> to vector<8x8xf32>
    %121 = arith.subf %117, %120 : vector<8x8xf32>
    %122 = math.exp %121 : vector<8x8xf32>
    %cst_51 = arith.constant dense<0.000000e+00> : vector<8xf32>
    %123 = vector.multi_reduction <add>, %122, %cst_51 [1] : vector<8x8xf32> to vector<8xf32>
    %124 = vector.shape_cast %123 : vector<8xf32> to vector<8x1xf32>
    %125 = vector.broadcast %124 : vector<8x1xf32> to vector<8x8xf32>
    %126 = arith.divf %122, %125 : vector<8x8xf32>
    %cst_52 = arith.constant dense<0.000000e+00> : vector<8x64xf32>
    %127 = tpu.matmul %126, %114, %cst_52 {dimension_numbers = #tpu.dot_dimension_numbers<[1], [0], [0], [1], [0, 0, 1, 1], [], []>} : vector<8x8xf32>, vector<8x64xf32>, vector<8x64xf32> -> vector<8x64xf32>
    %128 = tpu.concatenate %111, %127 in 0 : vector<8x64xf32>, vector<8x64xf32> -> vector<16x64xf32>
    %129 = arith.truncf %128 : vector<16x64xf32> to vector<16x64xbf16>
    %c128 = arith.constant 128 : index
    %c0_53 = arith.constant 0 : index
    %130 = vector.load %arg6[%c128, %c0_53] : memref<512x512xbf16, #tpu.memory_space<vmem>>, vector<64x512xbf16>
    %cst_54 = arith.constant dense<0.000000e+00> : vector<16x512xf32>
    %131 = tpu.matmul %129, %130, %cst_54 {dimension_numbers = #tpu.dot_dimension_numbers<[1], [0], [0], [1], [0, 0, 1, 1], [], []>} : vector<16x64xbf16>, vector<64x512xbf16>, vector<16x512xf32> -> vector<16x512xf32>
    %132 = arith.addf %95, %131 : vector<16x512xf32>
    %133 = vector.extract_strided_slice %10 {offsets = [0, 192], sizes = [8, 64], strides = [1, 1]} : vector<16x512xf32> to vector<8x64xf32>
    %134 = vector.extract_strided_slice %15 {offsets = [0, 192], sizes = [8, 64], strides = [1, 1]} : vector<16x512xf32> to vector<8x64xf32>
    %135 = vector.extract_strided_slice %20 {offsets = [0, 192], sizes = [8, 64], strides = [1, 1]} : vector<16x512xf32> to vector<8x64xf32>
    %cst_55 = arith.constant dense<0.000000e+00> : vector<8x8xf32>
    %136 = tpu.matmul %133, %134, %cst_55 {dimension_numbers = #tpu.dot_dimension_numbers<[1], [1], [0], [0], [0, 0, 1, 0], [], []>} : vector<8x64xf32>, vector<8x64xf32>, vector<8x8xf32> -> vector<8x8xf32>
    %cst_56 = arith.constant 1.250000e-01 : f32
    %137 = vector.broadcast %cst_56 : f32 to vector<8x8xf32>
    %138 = arith.mulf %136, %137 : vector<8x8xf32>
    %cst_57 = arith.constant dense<0xFF800000> : vector<8xf32>
    %139 = vector.multi_reduction <maximumf>, %138, %cst_57 [1] : vector<8x8xf32> to vector<8xf32>
    %140 = vector.shape_cast %139 : vector<8xf32> to vector<8x1xf32>
    %141 = vector.broadcast %140 : vector<8x1xf32> to vector<8x8xf32>
    %142 = arith.subf %138, %141 : vector<8x8xf32>
    %143 = math.exp %142 : vector<8x8xf32>
    %cst_58 = arith.constant dense<0.000000e+00> : vector<8xf32>
    %144 = vector.multi_reduction <add>, %143, %cst_58 [1] : vector<8x8xf32> to vector<8xf32>
    %145 = vector.shape_cast %144 : vector<8xf32> to vector<8x1xf32>
    %146 = vector.broadcast %145 : vector<8x1xf32> to vector<8x8xf32>
    %147 = arith.divf %143, %146 : vector<8x8xf32>
    %cst_59 = arith.constant dense<0.000000e+00> : vector<8x64xf32>
    %148 = tpu.matmul %147, %135, %cst_59 {dimension_numbers = #tpu.dot_dimension_numbers<[1], [0], [0], [1], [0, 0, 1, 1], [], []>} : vector<8x8xf32>, vector<8x64xf32>, vector<8x64xf32> -> vector<8x64xf32>
    %149 = vector.extract_strided_slice %10 {offsets = [8, 192], sizes = [8, 64], strides = [1, 1]} : vector<16x512xf32> to vector<8x64xf32>
    %150 = vector.extract_strided_slice %15 {offsets = [8, 192], sizes = [8, 64], strides = [1, 1]} : vector<16x512xf32> to vector<8x64xf32>
    %151 = vector.extract_strided_slice %20 {offsets = [8, 192], sizes = [8, 64], strides = [1, 1]} : vector<16x512xf32> to vector<8x64xf32>
    %cst_60 = arith.constant dense<0.000000e+00> : vector<8x8xf32>
    %152 = tpu.matmul %149, %150, %cst_60 {dimension_numbers = #tpu.dot_dimension_numbers<[1], [1], [0], [0], [0, 0, 1, 0], [], []>} : vector<8x64xf32>, vector<8x64xf32>, vector<8x8xf32> -> vector<8x8xf32>
    %cst_61 = arith.constant 1.250000e-01 : f32
    %153 = vector.broadcast %cst_61 : f32 to vector<8x8xf32>
    %154 = arith.mulf %152, %153 : vector<8x8xf32>
    %cst_62 = arith.constant dense<0xFF800000> : vector<8xf32>
    %155 = vector.multi_reduction <maximumf>, %154, %cst_62 [1] : vector<8x8xf32> to vector<8xf32>
    %156 = vector.shape_cast %155 : vector<8xf32> to vector<8x1xf32>
    %157 = vector.broadcast %156 : vector<8x1xf32> to vector<8x8xf32>
    %158 = arith.subf %154, %157 : vector<8x8xf32>
    %159 = math.exp %158 : vector<8x8xf32>
    %cst_63 = arith.constant dense<0.000000e+00> : vector<8xf32>
    %160 = vector.multi_reduction <add>, %159, %cst_63 [1] : vector<8x8xf32> to vector<8xf32>
    %161 = vector.shape_cast %160 : vector<8xf32> to vector<8x1xf32>
    %162 = vector.broadcast %161 : vector<8x1xf32> to vector<8x8xf32>
    %163 = arith.divf %159, %162 : vector<8x8xf32>
    %cst_64 = arith.constant dense<0.000000e+00> : vector<8x64xf32>
    %164 = tpu.matmul %163, %151, %cst_64 {dimension_numbers = #tpu.dot_dimension_numbers<[1], [0], [0], [1], [0, 0, 1, 1], [], []>} : vector<8x8xf32>, vector<8x64xf32>, vector<8x64xf32> -> vector<8x64xf32>
    %165 = tpu.concatenate %148, %164 in 0 : vector<8x64xf32>, vector<8x64xf32> -> vector<16x64xf32>
    %166 = arith.truncf %165 : vector<16x64xf32> to vector<16x64xbf16>
    %c192 = arith.constant 192 : index
    %c0_65 = arith.constant 0 : index
    %167 = vector.load %arg6[%c192, %c0_65] : memref<512x512xbf16, #tpu.memory_space<vmem>>, vector<64x512xbf16>
    %cst_66 = arith.constant dense<0.000000e+00> : vector<16x512xf32>
    %168 = tpu.matmul %166, %167, %cst_66 {dimension_numbers = #tpu.dot_dimension_numbers<[1], [0], [0], [1], [0, 0, 1, 1], [], []>} : vector<16x64xbf16>, vector<64x512xbf16>, vector<16x512xf32> -> vector<16x512xf32>
    %169 = arith.addf %132, %168 : vector<16x512xf32>
    %170 = vector.extract_strided_slice %10 {offsets = [0, 256], sizes = [8, 64], strides = [1, 1]} : vector<16x512xf32> to vector<8x64xf32>
    %171 = vector.extract_strided_slice %15 {offsets = [0, 256], sizes = [8, 64], strides = [1, 1]} : vector<16x512xf32> to vector<8x64xf32>
    %172 = vector.extract_strided_slice %20 {offsets = [0, 256], sizes = [8, 64], strides = [1, 1]} : vector<16x512xf32> to vector<8x64xf32>
    %cst_67 = arith.constant dense<0.000000e+00> : vector<8x8xf32>
    %173 = tpu.matmul %170, %171, %cst_67 {dimension_numbers = #tpu.dot_dimension_numbers<[1], [1], [0], [0], [0, 0, 1, 0], [], []>} : vector<8x64xf32>, vector<8x64xf32>, vector<8x8xf32> -> vector<8x8xf32>
    %cst_68 = arith.constant 1.250000e-01 : f32
    %174 = vector.broadcast %cst_68 : f32 to vector<8x8xf32>
    %175 = arith.mulf %173, %174 : vector<8x8xf32>
    %cst_69 = arith.constant dense<0xFF800000> : vector<8xf32>
    %176 = vector.multi_reduction <maximumf>, %175, %cst_69 [1] : vector<8x8xf32> to vector<8xf32>
    %177 = vector.shape_cast %176 : vector<8xf32> to vector<8x1xf32>
    %178 = vector.broadcast %177 : vector<8x1xf32> to vector<8x8xf32>
    %179 = arith.subf %175, %178 : vector<8x8xf32>
    %180 = math.exp %179 : vector<8x8xf32>
    %cst_70 = arith.constant dense<0.000000e+00> : vector<8xf32>
    %181 = vector.multi_reduction <add>, %180, %cst_70 [1] : vector<8x8xf32> to vector<8xf32>
    %182 = vector.shape_cast %181 : vector<8xf32> to vector<8x1xf32>
    %183 = vector.broadcast %182 : vector<8x1xf32> to vector<8x8xf32>
    %184 = arith.divf %180, %183 : vector<8x8xf32>
    %cst_71 = arith.constant dense<0.000000e+00> : vector<8x64xf32>
    %185 = tpu.matmul %184, %172, %cst_71 {dimension_numbers = #tpu.dot_dimension_numbers<[1], [0], [0], [1], [0, 0, 1, 1], [], []>} : vector<8x8xf32>, vector<8x64xf32>, vector<8x64xf32> -> vector<8x64xf32>
    %186 = vector.extract_strided_slice %10 {offsets = [8, 256], sizes = [8, 64], strides = [1, 1]} : vector<16x512xf32> to vector<8x64xf32>
    %187 = vector.extract_strided_slice %15 {offsets = [8, 256], sizes = [8, 64], strides = [1, 1]} : vector<16x512xf32> to vector<8x64xf32>
    %188 = vector.extract_strided_slice %20 {offsets = [8, 256], sizes = [8, 64], strides = [1, 1]} : vector<16x512xf32> to vector<8x64xf32>
    %cst_72 = arith.constant dense<0.000000e+00> : vector<8x8xf32>
    %189 = tpu.matmul %186, %187, %cst_72 {dimension_numbers = #tpu.dot_dimension_numbers<[1], [1], [0], [0], [0, 0, 1, 0], [], []>} : vector<8x64xf32>, vector<8x64xf32>, vector<8x8xf32> -> vector<8x8xf32>
    %cst_73 = arith.constant 1.250000e-01 : f32
    %190 = vector.broadcast %cst_73 : f32 to vector<8x8xf32>
    %191 = arith.mulf %189, %190 : vector<8x8xf32>
    %cst_74 = arith.constant dense<0xFF800000> : vector<8xf32>
    %192 = vector.multi_reduction <maximumf>, %191, %cst_74 [1] : vector<8x8xf32> to vector<8xf32>
    %193 = vector.shape_cast %192 : vector<8xf32> to vector<8x1xf32>
    %194 = vector.broadcast %193 : vector<8x1xf32> to vector<8x8xf32>
    %195 = arith.subf %191, %194 : vector<8x8xf32>
    %196 = math.exp %195 : vector<8x8xf32>
    %cst_75 = arith.constant dense<0.000000e+00> : vector<8xf32>
    %197 = vector.multi_reduction <add>, %196, %cst_75 [1] : vector<8x8xf32> to vector<8xf32>
    %198 = vector.shape_cast %197 : vector<8xf32> to vector<8x1xf32>
    %199 = vector.broadcast %198 : vector<8x1xf32> to vector<8x8xf32>
    %200 = arith.divf %196, %199 : vector<8x8xf32>
    %cst_76 = arith.constant dense<0.000000e+00> : vector<8x64xf32>
    %201 = tpu.matmul %200, %188, %cst_76 {dimension_numbers = #tpu.dot_dimension_numbers<[1], [0], [0], [1], [0, 0, 1, 1], [], []>} : vector<8x8xf32>, vector<8x64xf32>, vector<8x64xf32> -> vector<8x64xf32>
    %202 = tpu.concatenate %185, %201 in 0 : vector<8x64xf32>, vector<8x64xf32> -> vector<16x64xf32>
    %203 = arith.truncf %202 : vector<16x64xf32> to vector<16x64xbf16>
    %c256 = arith.constant 256 : index
    %c0_77 = arith.constant 0 : index
    %204 = vector.load %arg6[%c256, %c0_77] : memref<512x512xbf16, #tpu.memory_space<vmem>>, vector<64x512xbf16>
    %cst_78 = arith.constant dense<0.000000e+00> : vector<16x512xf32>
    %205 = tpu.matmul %203, %204, %cst_78 {dimension_numbers = #tpu.dot_dimension_numbers<[1], [0], [0], [1], [0, 0, 1, 1], [], []>} : vector<16x64xbf16>, vector<64x512xbf16>, vector<16x512xf32> -> vector<16x512xf32>
    %206 = arith.addf %169, %205 : vector<16x512xf32>
    %207 = vector.extract_strided_slice %10 {offsets = [0, 320], sizes = [8, 64], strides = [1, 1]} : vector<16x512xf32> to vector<8x64xf32>
    %208 = vector.extract_strided_slice %15 {offsets = [0, 320], sizes = [8, 64], strides = [1, 1]} : vector<16x512xf32> to vector<8x64xf32>
    %209 = vector.extract_strided_slice %20 {offsets = [0, 320], sizes = [8, 64], strides = [1, 1]} : vector<16x512xf32> to vector<8x64xf32>
    %cst_79 = arith.constant dense<0.000000e+00> : vector<8x8xf32>
    %210 = tpu.matmul %207, %208, %cst_79 {dimension_numbers = #tpu.dot_dimension_numbers<[1], [1], [0], [0], [0, 0, 1, 0], [], []>} : vector<8x64xf32>, vector<8x64xf32>, vector<8x8xf32> -> vector<8x8xf32>
    %cst_80 = arith.constant 1.250000e-01 : f32
    %211 = vector.broadcast %cst_80 : f32 to vector<8x8xf32>
    %212 = arith.mulf %210, %211 : vector<8x8xf32>
    %cst_81 = arith.constant dense<0xFF800000> : vector<8xf32>
    %213 = vector.multi_reduction <maximumf>, %212, %cst_81 [1] : vector<8x8xf32> to vector<8xf32>
    %214 = vector.shape_cast %213 : vector<8xf32> to vector<8x1xf32>
    %215 = vector.broadcast %214 : vector<8x1xf32> to vector<8x8xf32>
    %216 = arith.subf %212, %215 : vector<8x8xf32>
    %217 = math.exp %216 : vector<8x8xf32>
    %cst_82 = arith.constant dense<0.000000e+00> : vector<8xf32>
    %218 = vector.multi_reduction <add>, %217, %cst_82 [1] : vector<8x8xf32> to vector<8xf32>
    %219 = vector.shape_cast %218 : vector<8xf32> to vector<8x1xf32>
    %220 = vector.broadcast %219 : vector<8x1xf32> to vector<8x8xf32>
    %221 = arith.divf %217, %220 : vector<8x8xf32>
    %cst_83 = arith.constant dense<0.000000e+00> : vector<8x64xf32>
    %222 = tpu.matmul %221, %209, %cst_83 {dimension_numbers = #tpu.dot_dimension_numbers<[1], [0], [0], [1], [0, 0, 1, 1], [], []>} : vector<8x8xf32>, vector<8x64xf32>, vector<8x64xf32> -> vector<8x64xf32>
    %223 = vector.extract_strided_slice %10 {offsets = [8, 320], sizes = [8, 64], strides = [1, 1]} : vector<16x512xf32> to vector<8x64xf32>
    %224 = vector.extract_strided_slice %15 {offsets = [8, 320], sizes = [8, 64], strides = [1, 1]} : vector<16x512xf32> to vector<8x64xf32>
    %225 = vector.extract_strided_slice %20 {offsets = [8, 320], sizes = [8, 64], strides = [1, 1]} : vector<16x512xf32> to vector<8x64xf32>
    %cst_84 = arith.constant dense<0.000000e+00> : vector<8x8xf32>
    %226 = tpu.matmul %223, %224, %cst_84 {dimension_numbers = #tpu.dot_dimension_numbers<[1], [1], [0], [0], [0, 0, 1, 0], [], []>} : vector<8x64xf32>, vector<8x64xf32>, vector<8x8xf32> -> vector<8x8xf32>
    %cst_85 = arith.constant 1.250000e-01 : f32
    %227 = vector.broadcast %cst_85 : f32 to vector<8x8xf32>
    %228 = arith.mulf %226, %227 : vector<8x8xf32>
    %cst_86 = arith.constant dense<0xFF800000> : vector<8xf32>
    %229 = vector.multi_reduction <maximumf>, %228, %cst_86 [1] : vector<8x8xf32> to vector<8xf32>
    %230 = vector.shape_cast %229 : vector<8xf32> to vector<8x1xf32>
    %231 = vector.broadcast %230 : vector<8x1xf32> to vector<8x8xf32>
    %232 = arith.subf %228, %231 : vector<8x8xf32>
    %233 = math.exp %232 : vector<8x8xf32>
    %cst_87 = arith.constant dense<0.000000e+00> : vector<8xf32>
    %234 = vector.multi_reduction <add>, %233, %cst_87 [1] : vector<8x8xf32> to vector<8xf32>
    %235 = vector.shape_cast %234 : vector<8xf32> to vector<8x1xf32>
    %236 = vector.broadcast %235 : vector<8x1xf32> to vector<8x8xf32>
    %237 = arith.divf %233, %236 : vector<8x8xf32>
    %cst_88 = arith.constant dense<0.000000e+00> : vector<8x64xf32>
    %238 = tpu.matmul %237, %225, %cst_88 {dimension_numbers = #tpu.dot_dimension_numbers<[1], [0], [0], [1], [0, 0, 1, 1], [], []>} : vector<8x8xf32>, vector<8x64xf32>, vector<8x64xf32> -> vector<8x64xf32>
    %239 = tpu.concatenate %222, %238 in 0 : vector<8x64xf32>, vector<8x64xf32> -> vector<16x64xf32>
    %240 = arith.truncf %239 : vector<16x64xf32> to vector<16x64xbf16>
    %c320 = arith.constant 320 : index
    %c0_89 = arith.constant 0 : index
    %241 = vector.load %arg6[%c320, %c0_89] : memref<512x512xbf16, #tpu.memory_space<vmem>>, vector<64x512xbf16>
    %cst_90 = arith.constant dense<0.000000e+00> : vector<16x512xf32>
    %242 = tpu.matmul %240, %241, %cst_90 {dimension_numbers = #tpu.dot_dimension_numbers<[1], [0], [0], [1], [0, 0, 1, 1], [], []>} : vector<16x64xbf16>, vector<64x512xbf16>, vector<16x512xf32> -> vector<16x512xf32>
    %243 = arith.addf %206, %242 : vector<16x512xf32>
    %244 = vector.extract_strided_slice %10 {offsets = [0, 384], sizes = [8, 64], strides = [1, 1]} : vector<16x512xf32> to vector<8x64xf32>
    %245 = vector.extract_strided_slice %15 {offsets = [0, 384], sizes = [8, 64], strides = [1, 1]} : vector<16x512xf32> to vector<8x64xf32>
    %246 = vector.extract_strided_slice %20 {offsets = [0, 384], sizes = [8, 64], strides = [1, 1]} : vector<16x512xf32> to vector<8x64xf32>
    %cst_91 = arith.constant dense<0.000000e+00> : vector<8x8xf32>
    %247 = tpu.matmul %244, %245, %cst_91 {dimension_numbers = #tpu.dot_dimension_numbers<[1], [1], [0], [0], [0, 0, 1, 0], [], []>} : vector<8x64xf32>, vector<8x64xf32>, vector<8x8xf32> -> vector<8x8xf32>
    %cst_92 = arith.constant 1.250000e-01 : f32
    %248 = vector.broadcast %cst_92 : f32 to vector<8x8xf32>
    %249 = arith.mulf %247, %248 : vector<8x8xf32>
    %cst_93 = arith.constant dense<0xFF800000> : vector<8xf32>
    %250 = vector.multi_reduction <maximumf>, %249, %cst_93 [1] : vector<8x8xf32> to vector<8xf32>
    %251 = vector.shape_cast %250 : vector<8xf32> to vector<8x1xf32>
    %252 = vector.broadcast %251 : vector<8x1xf32> to vector<8x8xf32>
    %253 = arith.subf %249, %252 : vector<8x8xf32>
    %254 = math.exp %253 : vector<8x8xf32>
    %cst_94 = arith.constant dense<0.000000e+00> : vector<8xf32>
    %255 = vector.multi_reduction <add>, %254, %cst_94 [1] : vector<8x8xf32> to vector<8xf32>
    %256 = vector.shape_cast %255 : vector<8xf32> to vector<8x1xf32>
    %257 = vector.broadcast %256 : vector<8x1xf32> to vector<8x8xf32>
    %258 = arith.divf %254, %257 : vector<8x8xf32>
    %cst_95 = arith.constant dense<0.000000e+00> : vector<8x64xf32>
    %259 = tpu.matmul %258, %246, %cst_95 {dimension_numbers = #tpu.dot_dimension_numbers<[1], [0], [0], [1], [0, 0, 1, 1], [], []>} : vector<8x8xf32>, vector<8x64xf32>, vector<8x64xf32> -> vector<8x64xf32>
    %260 = vector.extract_strided_slice %10 {offsets = [8, 384], sizes = [8, 64], strides = [1, 1]} : vector<16x512xf32> to vector<8x64xf32>
    %261 = vector.extract_strided_slice %15 {offsets = [8, 384], sizes = [8, 64], strides = [1, 1]} : vector<16x512xf32> to vector<8x64xf32>
    %262 = vector.extract_strided_slice %20 {offsets = [8, 384], sizes = [8, 64], strides = [1, 1]} : vector<16x512xf32> to vector<8x64xf32>
    %cst_96 = arith.constant dense<0.000000e+00> : vector<8x8xf32>
    %263 = tpu.matmul %260, %261, %cst_96 {dimension_numbers = #tpu.dot_dimension_numbers<[1], [1], [0], [0], [0, 0, 1, 0], [], []>} : vector<8x64xf32>, vector<8x64xf32>, vector<8x8xf32> -> vector<8x8xf32>
    %cst_97 = arith.constant 1.250000e-01 : f32
    %264 = vector.broadcast %cst_97 : f32 to vector<8x8xf32>
    %265 = arith.mulf %263, %264 : vector<8x8xf32>
    %cst_98 = arith.constant dense<0xFF800000> : vector<8xf32>
    %266 = vector.multi_reduction <maximumf>, %265, %cst_98 [1] : vector<8x8xf32> to vector<8xf32>
    %267 = vector.shape_cast %266 : vector<8xf32> to vector<8x1xf32>
    %268 = vector.broadcast %267 : vector<8x1xf32> to vector<8x8xf32>
    %269 = arith.subf %265, %268 : vector<8x8xf32>
    %270 = math.exp %269 : vector<8x8xf32>
    %cst_99 = arith.constant dense<0.000000e+00> : vector<8xf32>
    %271 = vector.multi_reduction <add>, %270, %cst_99 [1] : vector<8x8xf32> to vector<8xf32>
    %272 = vector.shape_cast %271 : vector<8xf32> to vector<8x1xf32>
    %273 = vector.broadcast %272 : vector<8x1xf32> to vector<8x8xf32>
    %274 = arith.divf %270, %273 : vector<8x8xf32>
    %cst_100 = arith.constant dense<0.000000e+00> : vector<8x64xf32>
    %275 = tpu.matmul %274, %262, %cst_100 {dimension_numbers = #tpu.dot_dimension_numbers<[1], [0], [0], [1], [0, 0, 1, 1], [], []>} : vector<8x8xf32>, vector<8x64xf32>, vector<8x64xf32> -> vector<8x64xf32>
    %276 = tpu.concatenate %259, %275 in 0 : vector<8x64xf32>, vector<8x64xf32> -> vector<16x64xf32>
    %277 = arith.truncf %276 : vector<16x64xf32> to vector<16x64xbf16>
    %c384 = arith.constant 384 : index
    %c0_101 = arith.constant 0 : index
    %278 = vector.load %arg6[%c384, %c0_101] : memref<512x512xbf16, #tpu.memory_space<vmem>>, vector<64x512xbf16>
    %cst_102 = arith.constant dense<0.000000e+00> : vector<16x512xf32>
    %279 = tpu.matmul %277, %278, %cst_102 {dimension_numbers = #tpu.dot_dimension_numbers<[1], [0], [0], [1], [0, 0, 1, 1], [], []>} : vector<16x64xbf16>, vector<64x512xbf16>, vector<16x512xf32> -> vector<16x512xf32>
    %280 = arith.addf %243, %279 : vector<16x512xf32>
    %281 = vector.extract_strided_slice %10 {offsets = [0, 448], sizes = [8, 64], strides = [1, 1]} : vector<16x512xf32> to vector<8x64xf32>
    %282 = vector.extract_strided_slice %15 {offsets = [0, 448], sizes = [8, 64], strides = [1, 1]} : vector<16x512xf32> to vector<8x64xf32>
    %283 = vector.extract_strided_slice %20 {offsets = [0, 448], sizes = [8, 64], strides = [1, 1]} : vector<16x512xf32> to vector<8x64xf32>
    %cst_103 = arith.constant dense<0.000000e+00> : vector<8x8xf32>
    %284 = tpu.matmul %281, %282, %cst_103 {dimension_numbers = #tpu.dot_dimension_numbers<[1], [1], [0], [0], [0, 0, 1, 0], [], []>} : vector<8x64xf32>, vector<8x64xf32>, vector<8x8xf32> -> vector<8x8xf32>
    %cst_104 = arith.constant 1.250000e-01 : f32
    %285 = vector.broadcast %cst_104 : f32 to vector<8x8xf32>
    %286 = arith.mulf %284, %285 : vector<8x8xf32>
    %cst_105 = arith.constant dense<0xFF800000> : vector<8xf32>
    %287 = vector.multi_reduction <maximumf>, %286, %cst_105 [1] : vector<8x8xf32> to vector<8xf32>
    %288 = vector.shape_cast %287 : vector<8xf32> to vector<8x1xf32>
    %289 = vector.broadcast %288 : vector<8x1xf32> to vector<8x8xf32>
    %290 = arith.subf %286, %289 : vector<8x8xf32>
    %291 = math.exp %290 : vector<8x8xf32>
    %cst_106 = arith.constant dense<0.000000e+00> : vector<8xf32>
    %292 = vector.multi_reduction <add>, %291, %cst_106 [1] : vector<8x8xf32> to vector<8xf32>
    %293 = vector.shape_cast %292 : vector<8xf32> to vector<8x1xf32>
    %294 = vector.broadcast %293 : vector<8x1xf32> to vector<8x8xf32>
    %295 = arith.divf %291, %294 : vector<8x8xf32>
    %cst_107 = arith.constant dense<0.000000e+00> : vector<8x64xf32>
    %296 = tpu.matmul %295, %283, %cst_107 {dimension_numbers = #tpu.dot_dimension_numbers<[1], [0], [0], [1], [0, 0, 1, 1], [], []>} : vector<8x8xf32>, vector<8x64xf32>, vector<8x64xf32> -> vector<8x64xf32>
    %297 = vector.extract_strided_slice %10 {offsets = [8, 448], sizes = [8, 64], strides = [1, 1]} : vector<16x512xf32> to vector<8x64xf32>
    %298 = vector.extract_strided_slice %15 {offsets = [8, 448], sizes = [8, 64], strides = [1, 1]} : vector<16x512xf32> to vector<8x64xf32>
    %299 = vector.extract_strided_slice %20 {offsets = [8, 448], sizes = [8, 64], strides = [1, 1]} : vector<16x512xf32> to vector<8x64xf32>
    %cst_108 = arith.constant dense<0.000000e+00> : vector<8x8xf32>
    %300 = tpu.matmul %297, %298, %cst_108 {dimension_numbers = #tpu.dot_dimension_numbers<[1], [1], [0], [0], [0, 0, 1, 0], [], []>} : vector<8x64xf32>, vector<8x64xf32>, vector<8x8xf32> -> vector<8x8xf32>
    %cst_109 = arith.constant 1.250000e-01 : f32
    %301 = vector.broadcast %cst_109 : f32 to vector<8x8xf32>
    %302 = arith.mulf %300, %301 : vector<8x8xf32>
    %cst_110 = arith.constant dense<0xFF800000> : vector<8xf32>
    %303 = vector.multi_reduction <maximumf>, %302, %cst_110 [1] : vector<8x8xf32> to vector<8xf32>
    %304 = vector.shape_cast %303 : vector<8xf32> to vector<8x1xf32>
    %305 = vector.broadcast %304 : vector<8x1xf32> to vector<8x8xf32>
    %306 = arith.subf %302, %305 : vector<8x8xf32>
    %307 = math.exp %306 : vector<8x8xf32>
    %cst_111 = arith.constant dense<0.000000e+00> : vector<8xf32>
    %308 = vector.multi_reduction <add>, %307, %cst_111 [1] : vector<8x8xf32> to vector<8xf32>
    %309 = vector.shape_cast %308 : vector<8xf32> to vector<8x1xf32>
    %310 = vector.broadcast %309 : vector<8x1xf32> to vector<8x8xf32>
    %311 = arith.divf %307, %310 : vector<8x8xf32>
    %cst_112 = arith.constant dense<0.000000e+00> : vector<8x64xf32>
    %312 = tpu.matmul %311, %299, %cst_112 {dimension_numbers = #tpu.dot_dimension_numbers<[1], [0], [0], [1], [0, 0, 1, 1], [], []>} : vector<8x8xf32>, vector<8x64xf32>, vector<8x64xf32> -> vector<8x64xf32>
    %313 = tpu.concatenate %296, %312 in 0 : vector<8x64xf32>, vector<8x64xf32> -> vector<16x64xf32>
    %314 = arith.truncf %313 : vector<16x64xf32> to vector<16x64xbf16>
    %c448 = arith.constant 448 : index
    %c0_113 = arith.constant 0 : index
    %315 = vector.load %arg6[%c448, %c0_113] : memref<512x512xbf16, #tpu.memory_space<vmem>>, vector<64x512xbf16>
    %cst_114 = arith.constant dense<0.000000e+00> : vector<16x512xf32>
    %316 = tpu.matmul %314, %315, %cst_114 {dimension_numbers = #tpu.dot_dimension_numbers<[1], [0], [0], [1], [0, 0, 1, 1], [], []>} : vector<16x64xbf16>, vector<64x512xbf16>, vector<16x512xf32> -> vector<16x512xf32>
    %317 = arith.addf %280, %316 : vector<16x512xf32>
    %c0_115 = arith.constant 0 : index
    %c0_116 = arith.constant 0 : index
    %318 = vector.load %arg7[%c0_115, %c0_116] : memref<1x512xf32, #tpu.memory_space<vmem>>, vector<1x512xf32>
    %319 = vector.broadcast %318 : vector<1x512xf32> to vector<16x512xf32>
    %320 = arith.addf %317, %319 : vector<16x512xf32>
    %c0_117 = arith.constant 0 : index
    %c0_118 = arith.constant 0 : index
    %321 = vector.load %arg8[%c0_117, %c0_118] : memref<16x512xf32, #tpu.memory_space<vmem>>, vector<16x512xf32>
    tpu.vector_store %arg8[%c0_117, %c0_118], %320 {strides = array<i32>} : memref<16x512xf32, #tpu.memory_space<vmem>>, vector<16x512xf32>,
    return
  }
  func.func @transform_0(%arg0: i32) -> (i32, i32) {
    %c0_i32 = arith.constant 0 : i32
    %c0_i32_0 = arith.constant 0 : i32
    %c0_i32_1 = arith.constant 0 : i32
    return %c0_i32, %c0_i32_0 : i32, i32
  }
  func.func @transform_1(%arg0: i32) -> (i32, i32) {
    %c0_i32 = arith.constant 0 : i32
    %c0_i32_0 = arith.constant 0 : i32
    %c0_i32_1 = arith.constant 0 : i32
    return %c0_i32, %c0_i32_0 : i32, i32
  }
  func.func @transform_2(%arg0: i32) -> (i32, i32) {
    %c0_i32 = arith.constant 0 : i32
    %c0_i32_0 = arith.constant 0 : i32
    %c0_i32_1 = arith.constant 0 : i32
    return %c0_i32, %c0_i32_0 : i32, i32
  }
  func.func @transform_3(%arg0: i32) -> (i32, i32) {
    %c0_i32 = arith.constant 0 : i32
    %c0_i32_0 = arith.constant 0 : i32
    %c0_i32_1 = arith.constant 0 : i32
    return %c0_i32, %c0_i32_0 : i32, i32
  }
  func.func @transform_4(%arg0: i32) -> (i32, i32) {
    %c0_i32 = arith.constant 0 : i32
    %c0_i32_0 = arith.constant 0 : i32
    %c0_i32_1 = arith.constant 0 : i32
    return %c0_i32, %c0_i32_0 : i32, i32
  }
  func.func @transform_5(%arg0: i32) -> (i32, i32) {
    %c0_i32 = arith.constant 0 : i32
    %c0_i32_0 = arith.constant 0 : i32
    %c0_i32_1 = arith.constant 0 : i32
    return %c0_i32, %c0_i32_0 : i32, i32
  }
  func.func @transform_6(%arg0: i32) -> (i32, i32) {
    %c0_i32 = arith.constant 0 : i32
    %c0_i32_0 = arith.constant 0 : i32
    %c0_i32_1 = arith.constant 0 : i32
    return %c0_i32, %c0_i32_0 : i32, i32
  }
  func.func @transform_7(%arg0: i32) -> (i32, i32) {
    %c0_i32 = arith.constant 0 : i32
    %c0_i32_0 = arith.constant 0 : i32
    %c0_i32_1 = arith.constant 0 : i32
    return %c0_i32, %c0_i32_0 : i32, i32
  }
}

</mosaic_0001>

<bundles_post_ra>
// kernel: tpu_custom_call.1
= control target key start
LH: loop header
LB: loop body
LE: loop exit
PB: predicated region body
PF: predicated region fallthrough
CT: control target
= control target key end

     0   :  { %12 = vsyncpa [#allocation3], 0  ;;  %s9795_s0 = inlined_call_operand.hbm [shape: f32[16,512], index: 0, kind: input, shape index: {}]   ;;  %s9796_s1 = inlined_call_operand.hbm [shape: f32[16,512], index: 1, kind: input, shape index: {}]   ;;  %s9797_s2 = inlined_call_operand.hbm [shape: f32[16,512], index: 2, kind: input, shape index: {}]   ;;  %s9798_s3 = inlined_call_operand.hbm [shape: bf16[512,1536], index: 3, kind: input, shape index: {}]   ;;  %s9799_s4 = inlined_call_operand.hbm [shape: f32[1,1536], index: 4, kind: input, shape index: {}]   ;;  %s9800_s5 = inlined_call_operand.hbm [shape: bf16[512,512], index: 5, kind: input, shape index: {}]   ;;  %s9801_s6 = inlined_call_operand.hbm [shape: f32[1,512], index: 6, kind: input, shape index: {}]   ;;  %s9802_s7 = inlined_call_operand.hbm [shape: f32[16,512], index: 7, kind: output, shape index: {}]  }
   0x1   :  { %13 = vsyncpa [#allocation6], 0 }
   0x2   :  { %14 = vsyncpa [#allocation9], 0 }
   0x3   :  { %15 = vsyncpa [#allocation12], 0 }
   0x4   :  { %16 = vsyncpa [#allocation4], 0  ;;  %s9203_s24 = smov [#allocation5]   ;;  %s9204_s26 = smov [#allocation8]  }
   0x5   :  { %s34_s25 = sshll.u32 %s9203_s24, 4  ;;  %s58_s27 = sshll.u32 %s9204_s26, 4  ;;  %s35_s25 = int_to_ptr.vmem [resolvable:$true] %s34_s25  ;;  %s9261_s27 = int_to_ptr.vmem [resolvable:$true] %s58_s27 }
   0x6   :  { %s9017_s30 = scalar_lea.hbm %s9796_s1, 1024 }
   0x7   :  { %p9018_p0 = scmp.ne.s32.totalorder %s9796_s1, %s9017_s30  ;;  %p9021_p1 = scmp.lt.u32.totalorder %s9017_s30, %s9796_s1 }
   0x9   :  { %p9023_p2 = pnand %p9021_p1, %p9018_p0 }
   0xb   :  { %9026 = shalt.err (!%p9023_p2)
}
   0xc   :  { %s9027_s12 = scalar_lea.vmem %s35_s25, 1024  ;;  %p9032_p4 = scmp.lt.s32.totalorder %s35_s25, %s35_s25 }
   0xd   :  { %p9028_p3 = scmp.ne.s32.totalorder %s35_s25, %s9027_s12  ;;  %p9033_p5 = scmp.lt.s32.totalorder %s9027_s12, %s9027_s12 }
   0xf   :  { %p9034_p6 = por %p9033_p5, %p9032_p4 }
  0x11   :  { %p9035_p7 = pnand %p9034_p6, %p9028_p3 }
  0x13   :  { %9038 = shalt.err (!%p9035_p7)
}
  0x14   :  { %s9205_s13 = smov 512   ;;  %s9206_s14 = smov 32  }
  0x15   :  { %40 = dma.hbm_to_vmem [thread:$0]  %s9796_s1, 1024, %s35_s25, [#allocation6], %s9205_s13, %s9205_s13, %s9206_s14  }
  0x16   :  { %s9039_s19 = scalar_lea.hbm %s9798_s3, 49152 }
  0x17   :  { %p9040_p8 = scmp.ne.s32.totalorder %s9798_s3, %s9039_s19  ;;  %p9043_p9 = scmp.lt.u32.totalorder %s9039_s19, %s9798_s3 }
  0x19   :  { %p9045_p10 = pnand %p9043_p9, %p9040_p8 }
  0x1b   :  { %9048 = shalt.err (!%p9045_p10)
}
  0x1c   :  { %s9049_s24 = scalar_lea.vmem %s9261_s27, 49152  ;;  %p9054_p12 = scmp.lt.s32.totalorder %s9261_s27, %s9261_s27 }
  0x1d   :  { %p9050_p11 = scmp.ne.s32.totalorder %s9261_s27, %s9049_s24  ;;  %p9055_p13 = scmp.lt.s32.totalorder %s9049_s24, %s9049_s24 }
  0x1f   :  { %p9056_p0 = por %p9055_p13, %p9054_p12 }
  0x21   :  { %p9057_p1 = pnand %p9056_p0, %p9050_p11 }
  0x23   :  { %9060 = shalt.err (!%p9057_p1)
}
  0x24   :  { %s9207_s1 = smov 768   ;;  %s9208_s25 = smov 48  }
  0x25   :  { %64 = dma.hbm_to_vmem [thread:$0]  %s9798_s3, 49152, %s9261_s27, [#allocation9], %s9207_s1, %s9207_s1, %s9208_s25  }
  0x26   :  { %s9209_s29 = smov [#allocation11]   ;;  %s9061_s10 = scalar_lea.hbm %s9800_s5, 16384 }
  0x27   :  { %s80_s30 = sshll.u32 %s9209_s29, 4  ;;  %p9062_p2 = scmp.ne.s32.totalorder %s9800_s5, %s9061_s10  ;;  %s81_s30 = int_to_ptr.vmem [resolvable:$true] %s80_s30 }
  0x28   :  { %p9065_p3 = scmp.lt.u32.totalorder %s9061_s10, %s9800_s5 }
  0x2a   :  { %p9067_p4 = pnand %p9065_p3, %p9062_p2 }
  0x2c   :  { %9070 = shalt.err (!%p9067_p4)
}
  0x2d   :  { %s9071_s17 = scalar_lea.vmem %s81_s30, 16384  ;;  %p9076_p6 = scmp.lt.s32.totalorder %s81_s30, %s81_s30 }
  0x2e   :  { %p9072_p5 = scmp.ne.s32.totalorder %s81_s30, %s9071_s17  ;;  %p9077_p7 = scmp.lt.s32.totalorder %s9071_s17, %s9071_s17 }
  0x30   :  { %p9078_p8 = por %p9077_p7, %p9076_p6 }
  0x32   :  { %p9079_p9 = pnand %p9078_p8, %p9072_p5 }
  0x34   :  { %9082 = shalt.err (!%p9079_p9)
}
  0x35   :  { %s9210_s3 = smov 256   ;;  %s9211_s27 = smov 16  }
  0x36   :  { %86 = dma.hbm_to_vmem [thread:$0]  %s9800_s5, 16384, %s81_s30, [#allocation12], %s9210_s3, %s9210_s3, %s9211_s27  }
  0x37   :  { %s9212_s20 = smov [#allocation2]   ;;  %s9213_s22 = smov [#allocation7]  }
  0x38   :  { %s22_s21 = sshll.u32 %s9212_s20, 4  ;;  %s46_s23 = sshll.u32 %s9213_s22, 4  ;;  %s23_s21 = int_to_ptr.vmem [resolvable:$true] %s22_s21  ;;  %s47_s23 = int_to_ptr.vmem [resolvable:$true] %s46_s23 }
  0x39   :  { %s9083_s25 = scalar_lea.hbm %s9795_s0, 1024 }
  0x3a   :  { %p9084_p10 = scmp.ne.s32.totalorder %s9795_s0, %s9083_s25  ;;  %p9087_p11 = scmp.lt.u32.totalorder %s9083_s25, %s9795_s0 }
  0x3c   :  { %p9089_p12 = pnand %p9087_p11, %p9084_p10 }
  0x3e   :  { %9092 = shalt.err (!%p9089_p12)
}
  0x3f   :  { %s9093_s5 = scalar_lea.vmem %s23_s21, 1024  ;;  %p9098_p0 = scmp.lt.s32.totalorder %s23_s21, %s23_s21 }
  0x40   :  { %p9094_p13 = scmp.ne.s32.totalorder %s23_s21, %s9093_s5  ;;  %p9099_p1 = scmp.lt.s32.totalorder %s9093_s5, %s9093_s5 }
  0x42   :  { %p9100_p2 = por %p9099_p1, %p9098_p0 }
  0x44   :  { %p9101_p3 = pnand %p9100_p2, %p9094_p13 }
  0x46   :  { %9104 = shalt.err (!%p9101_p3)
}
  0x47   :  { %28 = dma.hbm_to_vmem [thread:$0]  %s9795_s0, 1024, %s23_s21, [#allocation3], %s9205_s13, %s9205_s13, %s9206_s14  }
  0x48   :  { %s9105_s12 = scalar_lea.hbm %s9797_s2, 1024 }
  0x49   :  { %p9106_p4 = scmp.ne.s32.totalorder %s9797_s2, %s9105_s12  ;;  %p9109_p5 = scmp.lt.u32.totalorder %s9105_s12, %s9797_s2 }
  0x4b   :  { %p9111_p6 = pnand %p9109_p5, %p9106_p4 }
  0x4d   :  { %9114 = shalt.err (!%p9111_p6)
}
  0x4e   :  { %s9115_s27 = scalar_lea.vmem %s47_s23, 1024  ;;  %p9120_p8 = scmp.lt.s32.totalorder %s47_s23, %s47_s23 }
  0x4f   :  { %p9116_p7 = scmp.ne.s32.totalorder %s47_s23, %s9115_s27  ;;  %p9121_p9 = scmp.lt.s32.totalorder %s9115_s27, %s9115_s27 }
  0x51   :  { %p9122_p10 = por %p9121_p9, %p9120_p8 }
  0x53   :  { %p9123_p11 = pnand %p9122_p10, %p9116_p7 }
  0x55   :  { %9126 = shalt.err (!%p9123_p11)
}
  0x56   :  { %52 = dma.hbm_to_vmem [thread:$0]  %s9797_s2, 1024, %s47_s23, [#allocation6], %s9205_s13, %s9205_s13, %s9206_s14  }
  0x57   :  { %s9214_s19 = smov [#allocation10]   ;;  %s9215_s21 = smov [#allocation13]  }
  0x58   :  { %s71_s20 = sshll.u32 %s9214_s19, 4  ;;  %s93_s22 = sshll.u32 %s9215_s21, 4  ;;  %s72_s20 = int_to_ptr.vmem [resolvable:$true] %s71_s20  ;;  %s94_s22 = int_to_ptr.vmem [resolvable:$true] %s93_s22 }
  0x59   :  { %s9127_s25 = scalar_lea.hbm %s9799_s4, 192 }
  0x5a   :  { %p9128_p12 = scmp.ne.s32.totalorder %s9799_s4, %s9127_s25  ;;  %p9131_p13 = scmp.lt.u32.totalorder %s9127_s25, %s9799_s4 }
  0x5c   :  { %p9133_p0 = pnand %p9131_p13, %p9128_p12 }
  0x5e   :  { %9136 = shalt.err (!%p9133_p0)
}
  0x5f   :  { %s9137_s2 = scalar_lea.vmem %s72_s20, 192  ;;  %p9142_p2 = scmp.lt.s32.totalorder %s72_s20, %s72_s20 }
  0x60   :  { %p9138_p1 = scmp.ne.s32.totalorder %s72_s20, %s9137_s2  ;;  %p9143_p3 = scmp.lt.s32.totalorder %s9137_s2, %s9137_s2 }
  0x62   :  { %p9144_p4 = por %p9143_p3, %p9142_p2 }
  0x64   :  { %p9145_p5 = pnand %p9144_p4, %p9138_p1 }
  0x66   :  { %9148 = shalt.err (!%p9145_p5)
}
  0x67   :  { %74 = dma.hbm_to_vmem [thread:$0]  %s9799_s4, 192, %s72_s20, [#allocation9]  }
  0x68   :  { %s9149_s10 = scalar_lea.hbm %s9801_s6, 64 }
  0x69   :  { %p9150_p6 = scmp.ne.s32.totalorder %s9801_s6, %s9149_s10  ;;  %p9153_p7 = scmp.lt.u32.totalorder %s9149_s10, %s9801_s6 }
  0x6b   :  { %p9155_p8 = pnand %p9153_p7, %p9150_p6 }
  0x6d   :  { %9158 = shalt.err (!%p9155_p8)
}
  0x6e   :  { %s9159_s17 = scalar_lea.vmem %s94_s22, 64  ;;  %p9164_p10 = scmp.lt.s32.totalorder %s94_s22, %s94_s22 }
  0x6f   :  { %p9160_p9 = scmp.ne.s32.totalorder %s94_s22, %s9159_s17  ;;  %p9165_p11 = scmp.lt.s32.totalorder %s9159_s17, %s9159_s17 }
  0x71   :  { %p9166_p12 = por %p9165_p11, %p9164_p10 }
  0x73   :  { %p9167_p13 = pnand %p9166_p12, %p9160_p9 }
  0x75   :  { %9170 = shalt.err (!%p9167_p13)
}
  0x76   :  { %96 = dma.hbm_to_vmem [thread:$0]  %s9801_s6, 64, %s94_s22, [#allocation12]  }
  0x77   :  { %9193 = dma.done.wait [#allocation3], 1024  }
  0x78   :  { %9194 = vsyncadd [#allocation3], 4294966272 }
  0x79   :  { %9195 = dma.done.wait [#allocation6], 2048  }
  0x7a   :  { %9196 = vsyncadd [#allocation6], 4294965248 }
  0x7b   :  { %9197 = dma.done.wait [#allocation9], 49344  }
  0x7c   :  { %9198 = vsyncadd [#allocation9], 4294917952 }
  0x7d   :  { %9199 = dma.done.wait [#allocation12], 16448  }
  0x7e   :  { %9200 = vsyncadd [#allocation12], 4294950848  ;;  %v8183_v0 = vld [vmem:[#allocation8 + $0x4] ss:$48 sps:$4 sm:$0xff]   ;;  %v8185_v1 = vld [vmem:[#allocation8] ss:$48 sps:$4 sm:$0xff]  }
  0x7f   :  { %945 = vmatprep.subr.bf16.mxu0 %v8183_v0  ;;  %v8186_v2 = vld [vmem:[#allocation8 + $0x64] ss:$48 sps:$4 sm:$0xff]   ;;  %v8188_v3 = vld [vmem:[#allocation8 + $0x60] ss:$48 sps:$4 sm:$0xff]   ;;  %v120_v13 = vld [vmem:[#allocation2 + $0x8] sm:$0xff]  ;;  %vm9217_vm0 = vmmov 0  }
  0x80   :  { %946 = vmatpush1.bf16.msra.mxu0 %v8185_v1  ;;  %v8189_v4 = vld [vmem:[#allocation8 + $0xc4] ss:$48 sps:$4 sm:$0xff]   ;;  %v8191_v5 = vld [vmem:[#allocation8 + $0xc0] ss:$48 sps:$4 sm:$0xff]   ;;  %v124_v14 = vld [vmem:[#allocation2 + $0x28] sm:$0xff]  ;;  %vm3041_vm1 = vcmask 523264  }
  0x81   :  { %947 = vmatprep.subr.bf16.mxu0 %v8186_v2  ;;  %v8192_v6 = vld [vmem:[#allocation8 + $0x124] ss:$48 sps:$4 sm:$0xff]   ;;  %v8194_v7 = vld [vmem:[#allocation8 + $0x120] ss:$48 sps:$4 sm:$0xff]   ;;  %v128_v15 = vpack.c.bf16 %v124_v14, %v120_v13  ;;  %v122_v38 = vld [vmem:[#allocation2 + $0x18] sm:$0xff]  ;;  %s9218_s6 = smov 64  }
  0x82   :  { %v8195_v8 = vld [vmem:[#allocation8 + $0x184] ss:$48 sps:$4 sm:$0xff]   ;;  %v8197_v9 = vld [vmem:[#allocation8 + $0x180] ss:$48 sps:$4 sm:$0xff]   ;;  %v126_v39 = vld [vmem:[#allocation2 + $0x38] sm:$0xff]  ;;  %vm3119_vm2 = vcmask 64512  }
  0x83   :  { %v8198_v10 = vld [vmem:[#allocation8 + $0x1e4] ss:$48 sps:$4 sm:$0xff]   ;;  %v8200_v11 = vld [vmem:[#allocation8 + $0x1e0] ss:$48 sps:$4 sm:$0xff]   ;;  %977 = vmatprep.mubr.bf16.mxu0 %v128_v15  ;;  %1063 = vmatprep.mubr.bf16.mxu1 %v128_v15  ;;  %v9363_v42 = vpack.c.bf16 %v126_v39, %v122_v38  ;;  %v136_v13 = vld [vmem:[#allocation5 + $0x28] sm:$0xff]  ;;  %s9220_s27 = smov [#allocation14]  }
  0x84   :  { %948 = vmatpush1.bf16.msra.mxu0 %v8188_v3  ;;  %v8201_v12 = vld [vmem:[#allocation8 + $0x244] ss:$48 sps:$4 sm:$0xff]   ;;  %v8203_v16 = vld [vmem:[#allocation8 + $0x240] ss:$48 sps:$4 sm:$0xff]   ;;  %s7246_s0 = sshll.u32 %s9220_s27, 4  ;;  %s7247_s0 = int_to_ptr.vmem [resolvable:$true] %s7246_s0 }
  0x85   :  { %949 = vmatprep.subr.bf16.mxu0 %v8189_v4  ;;  %v8204_v17 = vld [vmem:[#allocation8 + $0x2a4] ss:$48 sps:$4 sm:$0xff]   ;;  %v8206_v18 = vld [vmem:[#allocation8 + $0x2a0] ss:$48 sps:$4 sm:$0xff]   ;;  %s9171_s18 = scalar_lea.vmem %s7247_s0, 1024  ;;  %p9176_p1 = scmp.lt.s32.totalorder %s7247_s0, %s7247_s0 }
  0x86   :  { %v8207_v19 = vld [vmem:[#allocation8 + $0x304] ss:$48 sps:$4 sm:$0xff]   ;;  %v8209_v20 = vld [vmem:[#allocation8 + $0x300] ss:$48 sps:$4 sm:$0xff]   ;;  %p9172_p0 = scmp.ne.s32.totalorder %s7247_s0, %s9171_s18  ;;  %p9177_p2 = scmp.lt.s32.totalorder %s9171_s18, %s9171_s18 }
  0x87   :  { %v8210_v21 = vld [vmem:[#allocation8 + $0x364] ss:$48 sps:$4 sm:$0xff]   ;;  %v8212_v22 = vld [vmem:[#allocation8 + $0x360] ss:$48 sps:$4 sm:$0xff]  }
  0x88   :  { %950 = vmatpush1.bf16.msra.mxu0 %v8191_v5  ;;  %v8213_v23 = vld [vmem:[#allocation8 + $0x3c4] ss:$48 sps:$4 sm:$0xff]   ;;  %v8215_v24 = vld [vmem:[#allocation8 + $0x3c0] ss:$48 sps:$4 sm:$0xff]   ;;  %p9178_p3 = por %p9177_p2, %p9176_p1 }
  0x89   :  { %951 = vmatprep.subr.bf16.mxu0 %v8192_v6  ;;  %v8216_v25 = vld [vmem:[#allocation8 + $0x424] ss:$48 sps:$4 sm:$0xff]   ;;  %v8218_v26 = vld [vmem:[#allocation8 + $0x420] ss:$48 sps:$4 sm:$0xff]  }
  0x8a   :  { %v8219_v27 = vld [vmem:[#allocation8 + $0x484] ss:$48 sps:$4 sm:$0xff]   ;;  %v8221_v28 = vld [vmem:[#allocation8 + $0x480] ss:$48 sps:$4 sm:$0xff]   ;;  %p9179_p4 = pnand %p9178_p3, %p9172_p0 }
  0x8b   :  { %v8222_v29 = vld [vmem:[#allocation8 + $0x4e4] ss:$48 sps:$4 sm:$0xff]   ;;  %v8224_v30 = vld [vmem:[#allocation8 + $0x4e0] ss:$48 sps:$4 sm:$0xff]  }
  0x8c   :  { %952 = vmatpush1.bf16.msra.mxu0 %v8194_v7  ;;  %v8225_v31 = vld [vmem:[#allocation8 + $0x544] ss:$48 sps:$4 sm:$0xff]   ;;  %v8227_v32 = vld [vmem:[#allocation8 + $0x540] ss:$48 sps:$4 sm:$0xff]  }
  0x8d   :  { %953 = vmatprep.subr.bf16.mxu0 %v8195_v8  ;;  %v8228_v33 = vld [vmem:[#allocation8 + $0x5a4] ss:$48 sps:$4 sm:$0xff]   ;;  %v8230_v34 = vld [vmem:[#allocation8 + $0x5a0] ss:$48 sps:$4 sm:$0xff]  }
  0x8e   :  { %v8233_v35 = vld [vmem:[#allocation8 + $0x604] ss:$48 sps:$4 sm:$0xff]   ;;  %v8231_v41 = vld [vmem:[#allocation8 + $0x600] ss:$48 sps:$4 sm:$0xff]  }
  0x8f   :  { %v119_v36 = vld [vmem:[#allocation2] sm:$0xff] }
  0x90   :  { %954 = vmatpush1.bf16.msra.mxu0 %v8197_v9  ;;  %v123_v37 = vld [vmem:[#allocation2 + $0x20] sm:$0xff]  ;;  %v121_v9 = vld [vmem:[#allocation2 + $0x10] sm:$0xff] }
  0x91   :  { %955 = vmatprep.subr.bf16.mxu0 %v8198_v10  ;;  %v9361_v40 = vpack.c.bf16 %v123_v37, %v119_v36  ;;  %v8236_v43 = vld [vmem:[#allocation8 + $0x664] ss:$48 sps:$4 sm:$0xff]   ;;  %v8234_v44 = vld [vmem:[#allocation8 + $0x660] ss:$48 sps:$4 sm:$0xff]  }
  0x92   :  { %v8239_v45 = vld [vmem:[#allocation8 + $0x6c4] ss:$48 sps:$4 sm:$0xff]   ;;  %v8237_v46 = vld [vmem:[#allocation8 + $0x6c0] ss:$48 sps:$4 sm:$0xff]  }
  0x93   :  { %v8242_v47 = vld [vmem:[#allocation8 + $0x724] ss:$48 sps:$4 sm:$0xff]   ;;  %v8240_v48 = vld [vmem:[#allocation8 + $0x720] ss:$48 sps:$4 sm:$0xff]  }
  0x94   :  { %956 = vmatpush1.bf16.msra.mxu0 %v8200_v11  ;;  %v8245_v49 = vld [vmem:[#allocation8 + $0x784] ss:$48 sps:$4 sm:$0xff]   ;;  %v8243_v50 = vld [vmem:[#allocation8 + $0x780] ss:$48 sps:$4 sm:$0xff]  }
  0x95   :  { %957 = vmatprep.subr.bf16.mxu0 %v8201_v12  ;;  %v8248_v51 = vld [vmem:[#allocation8 + $0x7e4] ss:$48 sps:$4 sm:$0xff]   ;;  %v8246_v52 = vld [vmem:[#allocation8 + $0x7e0] ss:$48 sps:$4 sm:$0xff]   ;;  %v132_v12 = vld [vmem:[#allocation5 + $0x8] sm:$0xff] }
  0x96   :  { %v8251_v53 = vld [vmem:[#allocation8 + $0x844] ss:$48 sps:$4 sm:$0xff]   ;;  %v8249_v54 = vld [vmem:[#allocation8 + $0x840] ss:$48 sps:$4 sm:$0xff]  }
  0x97   :  { %v8254_v55 = vld [vmem:[#allocation8 + $0x8a4] ss:$48 sps:$4 sm:$0xff]   ;;  %v8252_v56 = vld [vmem:[#allocation8 + $0x8a0] ss:$48 sps:$4 sm:$0xff]  }
  0x98   :  { %958 = vmatpush1.bf16.msra.mxu0 %v8203_v16  ;;  %v8257_v57 = vld [vmem:[#allocation8 + $0x904] ss:$48 sps:$4 sm:$0xff]   ;;  %v8255_v58 = vld [vmem:[#allocation8 + $0x900] ss:$48 sps:$4 sm:$0xff]  }
  0x99   :  { %959 = vmatprep.subr.bf16.mxu0 %v8204_v17  ;;  %v8260_v59 = vld [vmem:[#allocation8 + $0x964] ss:$48 sps:$4 sm:$0xff]   ;;  %v8258_v60 = vld [vmem:[#allocation8 + $0x960] ss:$48 sps:$4 sm:$0xff]   ;;  %v9369_v17 = vpack.c.bf16 %v136_v13, %v132_v12  ;;  %v8396_v12 = vld [vmem:[#allocation8 + $0x12c] ss:$48 sps:$4 sm:$0xff]  }
  0x9a   :  { %v8263_v61 = vld [vmem:[#allocation8 + $0x9c4] ss:$48 sps:$4 sm:$0xff]   ;;  %v8261_v62 = vld [vmem:[#allocation8 + $0x9c0] ss:$48 sps:$4 sm:$0xff]  }
  0x9b   :  { %v8266_v63 = vld [vmem:[#allocation8 + $0xa24] ss:$48 sps:$4 sm:$0xff]   ;;  %v8264_v0 = vld [vmem:[#allocation8 + $0xa20] ss:$48 sps:$4 sm:$0xff]  }
  0x9c   :  { %960 = vmatpush1.bf16.msra.mxu0 %v8206_v18  ;;  %v8269_v1 = vld [vmem:[#allocation8 + $0xa84] ss:$48 sps:$4 sm:$0xff]   ;;  %v8267_v2 = vld [vmem:[#allocation8 + $0xa80] ss:$48 sps:$4 sm:$0xff]  }
  0x9d   :  { %961 = vmatprep.subr.bf16.mxu0 %v8207_v19  ;;  %v8272_v3 = vld [vmem:[#allocation8 + $0xae4] ss:$48 sps:$4 sm:$0xff]   ;;  %v8270_v4 = vld [vmem:[#allocation8 + $0xae0] ss:$48 sps:$4 sm:$0xff]  }
  0x9e   :  { %v8275_v5 = vld [vmem:[#allocation8 + $0xb44] ss:$48 sps:$4 sm:$0xff]   ;;  %v8273_v6 = vld [vmem:[#allocation8 + $0xb40] ss:$48 sps:$4 sm:$0xff]  }
  0x9f   :  { %v8278_v7 = vld [vmem:[#allocation8 + $0xba4] ss:$48 sps:$4 sm:$0xff]   ;;  %v8276_v8 = vld [vmem:[#allocation8 + $0xba0] ss:$48 sps:$4 sm:$0xff]  }
  0xa0   :  { %962 = vmatpush1.bf16.msra.mxu0 %v8209_v20  ;;  %v125_v10 = vld [vmem:[#allocation2 + $0x30] sm:$0xff]  ;;  %v8378_v20 = vld [vmem:[#allocation8 + $0xc] ss:$48 sps:$4 sm:$0xff]  }
  0xa1   :  { %963 = vmatprep.subr.bf16.mxu0 %v8210_v21  ;;  %v8281_v11 = vld [vmem:[#allocation8 + $0x14] ss:$48 sps:$4 sm:$0xff]   ;;  %v9367_v14 = vpack.c.bf16 %v125_v10, %v121_v9  ;;  %v8279_v15 = vld [vmem:[#allocation8 + $0x10] ss:$48 sps:$4 sm:$0xff]   ;;  %1031 = vmatprep.subr.bf16.mxu1 %v8378_v20  ;;  %v8390_v10 = vld [vmem:[#allocation8 + $0xcc] ss:$48 sps:$4 sm:$0xff]  }
  0xa2   :  { %v8284_v16 = vld [vmem:[#allocation8 + $0x74] ss:$48 sps:$4 sm:$0xff]   ;;  %v8282_v18 = vld [vmem:[#allocation8 + $0x70] ss:$48 sps:$4 sm:$0xff]  }
  0xa3   :  { %v8287_v19 = vld [vmem:[#allocation8 + $0xd4] ss:$48 sps:$4 sm:$0xff]   ;;  %v8285_v21 = vld [vmem:[#allocation8 + $0xd0] ss:$48 sps:$4 sm:$0xff]  }
  0xa4   :  { %964 = vmatpush1.bf16.msra.mxu0 %v8212_v22  ;;  %v8290_v22 = vld [vmem:[#allocation8 + $0x134] ss:$48 sps:$4 sm:$0xff]   ;;  %v8309_v37 = vld [vmem:[#allocation8 + $0x3d0] ss:$48 sps:$4 sm:$0xff]  }
  0xa5   :  { %965 = vmatprep.subr.bf16.mxu0 %v8213_v23  ;;  %v8288_v23 = vld [vmem:[#allocation8 + $0x130] ss:$48 sps:$4 sm:$0xff]   ;;  %v8311_v36 = vld [vmem:[#allocation8 + $0x3d4] ss:$48 sps:$4 sm:$0xff]  }
  0xa6   :  { %v8314_v38 = vld [vmem:[#allocation8 + $0x434] ss:$48 sps:$4 sm:$0xff]   ;;  %v8312_v39 = vld [vmem:[#allocation8 + $0x430] ss:$48 sps:$4 sm:$0xff]  }
  0xa7   :  { %v8350_v9 = vld [vmem:[#allocation8 + $0x8b4] ss:$48 sps:$4 sm:$0xff]   ;;  %v8348_v13 = vld [vmem:[#allocation8 + $0x8b0] ss:$48 sps:$4 sm:$0xff]  }
  0xa8   :  { %966 = vmatpush1.bf16.msra.mxu0 %v8215_v24  ;;  %v8293_v24 = vld [vmem:[#allocation8 + $0x194] ss:$48 sps:$4 sm:$0xff]  }
  0xa9   :  { %967 = vmatprep.subr.bf16.mxu0 %v8216_v25  ;;  %v8291_v25 = vld [vmem:[#allocation8 + $0x190] ss:$48 sps:$4 sm:$0xff]   ;;  %v8356_v20 = vld [vmem:[#allocation8 + $0x974] ss:$48 sps:$4 sm:$0xff]  }
  0xac   :  { %968 = vmatpush1.bf16.msra.mxu0 %v8218_v26  ;;  %v8296_v26 = vld [vmem:[#allocation8 + $0x1f4] ss:$48 sps:$4 sm:$0xff]  }
  0xad   :  { %969 = vmatprep.subr.bf16.mxu0 %v8219_v27  ;;  %v8294_v27 = vld [vmem:[#allocation8 + $0x1f0] ss:$48 sps:$4 sm:$0xff]  }
  0xb0   :  { %970 = vmatpush1.bf16.msra.mxu0 %v8221_v28  ;;  %v8299_v28 = vld [vmem:[#allocation8 + $0x254] ss:$48 sps:$4 sm:$0xff]  }
  0xb1   :  { %971 = vmatprep.subr.bf16.mxu0 %v8222_v29  ;;  %v8297_v29 = vld [vmem:[#allocation8 + $0x250] ss:$48 sps:$4 sm:$0xff]  }
  0xb4   :  { %972 = vmatpush1.bf16.msra.mxu0 %v8224_v30  ;;  %v8302_v30 = vld [vmem:[#allocation8 + $0x2b4] ss:$48 sps:$4 sm:$0xff]  }
  0xb5   :  { %973 = vmatprep.subr.bf16.mxu0 %v8225_v31  ;;  %v8300_v31 = vld [vmem:[#allocation8 + $0x2b0] ss:$48 sps:$4 sm:$0xff]  }
  0xb8   :  { %974 = vmatpush1.bf16.msra.mxu0 %v8227_v32  ;;  %v8305_v32 = vld [vmem:[#allocation8 + $0x314] ss:$48 sps:$4 sm:$0xff]  }
  0xb9   :  { %975 = vmatprep.subr.bf16.mxu0 %v8228_v33  ;;  %v8303_v33 = vld [vmem:[#allocation8 + $0x310] ss:$48 sps:$4 sm:$0xff]  }
  0xbc   :  { %976 = vmatpush1.bf16.msra.mxu0 %v8230_v34  ;;  %v8308_v34 = vld [vmem:[#allocation8 + $0x374] ss:$48 sps:$4 sm:$0xff]  }
  0xbd   :  { %988 = vmatprep.subr.bf16.mxu0 %v8233_v35  ;;  %v8306_v35 = vld [vmem:[#allocation8 + $0x370] ss:$48 sps:$4 sm:$0xff]  }
  0xbf   :  { %978 = vmatmul.mubr.bf16.vlgmr.msra.gmra.mrb[0].mxu0 %v9361_v40 }
  0xc0   :  { %989 = vmatpush1.bf16.msra.mxu0 %v8231_v41  ;;  %1020 = vmatprep.mubr.bf16.mxu0 %v9363_v42  ;;  %v8317_v41 = vld [vmem:[#allocation8 + $0x494] ss:$48 sps:$4 sm:$0xff]  }
  0xc1   :  { %990 = vmatprep.subr.bf16.mxu0 %v8236_v43  ;;  %v8315_v43 = vld [vmem:[#allocation8 + $0x490] ss:$48 sps:$4 sm:$0xff]  }
  0xc4   :  { %991 = vmatpush1.bf16.msra.mxu0 %v8234_v44  ;;  %v8320_v44 = vld [vmem:[#allocation8 + $0x4f4] ss:$48 sps:$4 sm:$0xff]  }
  0xc5   :  { %992 = vmatprep.subr.bf16.mxu0 %v8239_v45  ;;  %v8318_v45 = vld [vmem:[#allocation8 + $0x4f0] ss:$48 sps:$4 sm:$0xff]  }
  0xc8   :  { %993 = vmatpush1.bf16.msra.mxu0 %v8237_v46  ;;  %v8323_v46 = vld [vmem:[#allocation8 + $0x554] ss:$48 sps:$4 sm:$0xff]  }
  0xc9   :  { %994 = vmatprep.subr.bf16.mxu0 %v8242_v47  ;;  %v8321_v47 = vld [vmem:[#allocation8 + $0x550] ss:$48 sps:$4 sm:$0xff]  }
  0xcc   :  { %995 = vmatpush1.bf16.msra.mxu0 %v8240_v48  ;;  %v8326_v48 = vld [vmem:[#allocation8 + $0x5b4] ss:$48 sps:$4 sm:$0xff]  }
  0xcd   :  { %996 = vmatprep.subr.bf16.mxu0 %v8245_v49  ;;  %v8324_v49 = vld [vmem:[#allocation8 + $0x5b0] ss:$48 sps:$4 sm:$0xff]  }
  0xd0   :  { %997 = vmatpush1.bf16.msra.mxu0 %v8243_v50  ;;  %v131_v50 = vld [vmem:[#allocation5] sm:$0xff] }
  0xd1   :  { %998 = vmatprep.subr.bf16.mxu0 %v8248_v51  ;;  %v135_v51 = vld [vmem:[#allocation5 + $0x20] sm:$0xff] }
  0xd4   :  { %999 = vmatpush1.bf16.msra.mxu0 %v8246_v52  ;;  %v8329_v52 = vld [vmem:[#allocation8 + $0x614] ss:$48 sps:$4 sm:$0xff]  }
  0xd5   :  { %1000 = vmatprep.subr.bf16.mxu0 %v8251_v53  ;;  %v134_v53 = vld [vmem:[#allocation5 + $0x18] sm:$0xff] }
  0xd8   :  { %1001 = vmatpush1.bf16.msra.mxu0 %v8249_v54  ;;  %v138_v54 = vld [vmem:[#allocation5 + $0x38] sm:$0xff] }
  0xd9   :  { %1002 = vmatprep.subr.bf16.mxu0 %v8254_v55  ;;  %v8327_v55 = vld [vmem:[#allocation8 + $0x610] ss:$48 sps:$4 sm:$0xff]  }
  0xdc   :  { %1003 = vmatpush1.bf16.msra.mxu0 %v8252_v56  ;;  %v9373_v56 = vpack.c.bf16 %v135_v51, %v131_v50  ;;  %v133_v50 = vld [vmem:[#allocation5 + $0x10] sm:$0xff] }
  0xdd   :  { %1004 = vmatprep.subr.bf16.mxu0 %v8257_v57  ;;  %v8332_v57 = vld [vmem:[#allocation8 + $0x674] ss:$48 sps:$4 sm:$0xff]  }
  0xde   :  { %v137_v51 = vld [vmem:[#allocation5 + $0x30] sm:$0xff] }
  0xe0   :  { %1005 = vmatpush1.bf16.msra.mxu0 %v8255_v58  ;;  %v9375_v58 = vpack.c.bf16 %v138_v54, %v134_v53  ;;  %v144_v53 = vld [vmem:[#allocation7 + $0x8] sm:$0xff] }
  0xe1   :  { %1006 = vmatprep.subr.bf16.mxu0 %v8260_v59  ;;  %v8330_v59 = vld [vmem:[#allocation8 + $0x670] ss:$48 sps:$4 sm:$0xff]   ;;  %v148_v54 = vld [vmem:[#allocation7 + $0x28] sm:$0xff] }
  0xe4   :  { %1007 = vmatpush1.bf16.msra.mxu0 %v8258_v60  ;;  %v8335_v60 = vld [vmem:[#allocation8 + $0x6d4] ss:$48 sps:$4 sm:$0xff]  }
  0xe5   :  { %1008 = vmatprep.subr.bf16.mxu0 %v8263_v61  ;;  %v8333_v61 = vld [vmem:[#allocation8 + $0x6d0] ss:$48 sps:$4 sm:$0xff]  }
  0xe8   :  { %1009 = vmatpush1.bf16.msra.mxu0 %v8261_v62  ;;  %v8338_v62 = vld [vmem:[#allocation8 + $0x734] ss:$48 sps:$4 sm:$0xff]  }
  0xe9   :  { %1010 = vmatprep.subr.bf16.mxu0 %v8266_v63  ;;  %v8336_v63 = vld [vmem:[#allocation8 + $0x730] ss:$48 sps:$4 sm:$0xff]  }
  0xec   :  { %1011 = vmatpush1.bf16.msra.mxu0 %v8264_v0  ;;  %v8341_v0 = vld [vmem:[#allocation8 + $0x794] ss:$48 sps:$4 sm:$0xff]  }
  0xed   :  { %1012 = vmatprep.subr.bf16.mxu0 %v8269_v1  ;;  %v8339_v1 = vld [vmem:[#allocation8 + $0x790] ss:$48 sps:$4 sm:$0xff]  }
  0xf0   :  { %1013 = vmatpush1.bf16.msra.mxu0 %v8267_v2  ;;  %v8344_v2 = vld [vmem:[#allocation8 + $0x7f4] ss:$48 sps:$4 sm:$0xff]  }
  0xf1   :  { %1014 = vmatprep.subr.bf16.mxu0 %v8272_v3  ;;  %v8342_v3 = vld [vmem:[#allocation8 + $0x7f0] ss:$48 sps:$4 sm:$0xff]  }
  0xf4   :  { %1015 = vmatpush1.bf16.msra.mxu0 %v8270_v4  ;;  %v8380_v4 = vld [vmem:[#allocation8 + $0x8] ss:$48 sps:$4 sm:$0xff]  }
  0xf5   :  { %1016 = vmatprep.subr.bf16.mxu0 %v8275_v5  ;;  %v8347_v5 = vld [vmem:[#allocation8 + $0x854] ss:$48 sps:$4 sm:$0xff]   ;;  %1032 = vmatpush1.bf16.msra.mxu1 %v8380_v4  ;;  %v8462_v4 = vld [vmem:[#allocation8 + $0x54c] ss:$48 sps:$4 sm:$0xff]  }
  0xf8   :  { %1017 = vmatpush1.bf16.msra.mxu0 %v8273_v6  ;;  %v8345_v6 = vld [vmem:[#allocation8 + $0x850] ss:$48 sps:$4 sm:$0xff]  }
  0xf9   :  { %1018 = vmatprep.subr.bf16.mxu0 %v8278_v7  ;;  %v8384_v7 = vld [vmem:[#allocation8 + $0x6c] ss:$48 sps:$4 sm:$0xff]  }
  0xfa   :  { %1033 = vmatprep.subr.bf16.mxu1 %v8384_v7  ;;  %v8464_v7 = vld [vmem:[#allocation8 + $0x548] ss:$48 sps:$4 sm:$0xff]  }
  0xfc   :  { %1019 = vmatpush1.bf16.msra.mxu0 %v8276_v8  ;;  %v8386_v8 = vld [vmem:[#allocation8 + $0x68] ss:$48 sps:$4 sm:$0xff]  }
  0xfd   :  { %1907 = vmatprep.subr.bf16.mxu0 %v8281_v11  ;;  %1034 = vmatpush1.bf16.msra.mxu1 %v8386_v8  ;;  %v8392_v11 = vld [vmem:[#allocation8 + $0xc8] ss:$48 sps:$4 sm:$0xff]   ;;  %v8468_v8 = vld [vmem:[#allocation8 + $0x5ac] ss:$48 sps:$4 sm:$0xff]  }
  0xfe   :  { %1035 = vmatprep.subr.bf16.mxu1 %v8390_v10  ;;  %v8401_v10 = vld [vmem:[#allocation8 + $0x1a4] ss:$48 sps:$4 sm:$0xff]  }
  0xff   :  { %1021 = vmatmul.mubr.bf16.vlgmr.msra.gmra.mrb[0].mxu0 %v9367_v14 }
 0x100   :  { %1908 = vmatpush1.bf16.msra.mxu0 %v8279_v15  ;;  %1939 = vmatprep.mubr.bf16.mxu0 %v9369_v17  ;;  %v8353_v15 = vld [vmem:[#allocation8 + $0x914] ss:$48 sps:$4 sm:$0xff]  }
 0x101   :  { %1909 = vmatprep.subr.bf16.mxu0 %v8284_v16  ;;  %1036 = vmatpush1.bf16.msra.mxu1 %v8392_v11  ;;  %v8398_v16 = vld [vmem:[#allocation8 + $0x128] ss:$48 sps:$4 sm:$0xff]  }
 0x102   :  { %1037 = vmatprep.subr.bf16.mxu1 %v8396_v12  ;;  %v8470_v11 = vld [vmem:[#allocation8 + $0x5a8] ss:$48 sps:$4 sm:$0xff]   ;;  %v8476_v12 = vld [vmem:[#allocation8 + $0x60c] ss:$48 sps:$4 sm:$0xff]  }
 0x104   :  { %1910 = vmatpush1.bf16.msra.mxu0 %v8282_v18  ;;  %v8402_v18 = vld [vmem:[#allocation8 + $0x18c] ss:$48 sps:$4 sm:$0xff]  }
 0x105   :  { %1911 = vmatprep.subr.bf16.mxu0 %v8287_v19  ;;  %v8351_v19 = vld [vmem:[#allocation8 + $0x910] ss:$48 sps:$4 sm:$0xff]   ;;  %1038 = vmatpush1.bf16.msra.mxu1 %v8398_v16  ;;  %v8474_v16 = vld [vmem:[#allocation8 + $0x608] ss:$48 sps:$4 sm:$0xff]  }
 0x106   :  { %1039 = vmatprep.subr.bf16.mxu1 %v8402_v18  ;;  %v8482_v18 = vld [vmem:[#allocation8 + $0x66c] ss:$48 sps:$4 sm:$0xff]  }
 0x108   :  { %1912 = vmatpush1.bf16.msra.mxu0 %v8285_v21  ;;  %v8404_v21 = vld [vmem:[#allocation8 + $0x188] ss:$48 sps:$4 sm:$0xff]  }
 0x109   :  { %1913 = vmatprep.subr.bf16.mxu0 %v8290_v22  ;;  %v8408_v22 = vld [vmem:[#allocation8 + $0x1ec] ss:$48 sps:$4 sm:$0xff]   ;;  %1040 = vmatpush1.bf16.msra.mxu1 %v8404_v21  ;;  %v8480_v21 = vld [vmem:[#allocation8 + $0x668] ss:$48 sps:$4 sm:$0xff]  }
 0x10a   :  { %1041 = vmatprep.subr.bf16.mxu1 %v8408_v22  ;;  %v8488_v22 = vld [vmem:[#allocation8 + $0x6cc] ss:$48 sps:$4 sm:$0xff]  }
 0x10c   :  { %1914 = vmatpush1.bf16.msra.mxu0 %v8288_v23  ;;  %v8354_v23 = vld [vmem:[#allocation8 + $0x970] ss:$48 sps:$4 sm:$0xff]  }
 0x10d   :  { %1915 = vmatprep.subr.bf16.mxu0 %v8293_v24  ;;  %v8359_v24 = vld [vmem:[#allocation8 + $0x9d4] ss:$48 sps:$4 sm:$0xff]  }
 0x110   :  { %1916 = vmatpush1.bf16.msra.mxu0 %v8291_v25  ;;  %v8410_v25 = vld [vmem:[#allocation8 + $0x1e8] ss:$48 sps:$4 sm:$0xff]  }
 0x111   :  { %1917 = vmatprep.subr.bf16.mxu0 %v8296_v26  ;;  %v8414_v26 = vld [vmem:[#allocation8 + $0x24c] ss:$48 sps:$4 sm:$0xff]   ;;  %1042 = vmatpush1.bf16.msra.mxu1 %v8410_v25  ;;  %v8486_v25 = vld [vmem:[#allocation8 + $0x6c8] ss:$48 sps:$4 sm:$0xff]  }
 0x112   :  { %1043 = vmatprep.subr.bf16.mxu1 %v8414_v26  ;;  %v8494_v26 = vld [vmem:[#allocation8 + $0x72c] ss:$48 sps:$4 sm:$0xff]  }
 0x114   :  { %1918 = vmatpush1.bf16.msra.mxu0 %v8294_v27  ;;  %v8357_v27 = vld [vmem:[#allocation8 + $0x9d0] ss:$48 sps:$4 sm:$0xff]  }
 0x115   :  { %1919 = vmatprep.subr.bf16.mxu0 %v8299_v28  ;;  %v8362_v28 = vld [vmem:[#allocation8 + $0xa34] ss:$48 sps:$4 sm:$0xff]  }
 0x118   :  { %1920 = vmatpush1.bf16.msra.mxu0 %v8297_v29  ;;  %v8416_v29 = vld [vmem:[#allocation8 + $0x248] ss:$48 sps:$4 sm:$0xff]  }
 0x119   :  { %1921 = vmatprep.subr.bf16.mxu0 %v8302_v30  ;;  %v8420_v30 = vld [vmem:[#allocation8 + $0x2ac] ss:$48 sps:$4 sm:$0xff]   ;;  %1044 = vmatpush1.bf16.msra.mxu1 %v8416_v29 }
 0x11a   :  { %1045 = vmatprep.subr.bf16.mxu1 %v8420_v30  ;;  %v8500_v29 = vld [vmem:[#allocation8 + $0x78c] ss:$48 sps:$4 sm:$0xff]   ;;  %v8431_v30 = vld [vmem:[#allocation8 + $0x384] ss:$48 sps:$4 sm:$0xff]  }
 0x11c   :  { %1922 = vmatpush1.bf16.msra.mxu0 %v8300_v31  ;;  %v8360_v31 = vld [vmem:[#allocation8 + $0xa30] ss:$48 sps:$4 sm:$0xff]  }
 0x11d   :  { %1923 = vmatprep.subr.bf16.mxu0 %v8305_v32  ;;  %v8365_v32 = vld [vmem:[#allocation8 + $0xa94] ss:$48 sps:$4 sm:$0xff]  }
 0x120   :  { %1924 = vmatpush1.bf16.msra.mxu0 %v8303_v33  ;;  %v8422_v33 = vld [vmem:[#allocation8 + $0x2a8] ss:$48 sps:$4 sm:$0xff]  }
 0x121   :  { %1925 = vmatprep.subr.bf16.mxu0 %v8308_v34  ;;  %v8426_v34 = vld [vmem:[#allocation8 + $0x30c] ss:$48 sps:$4 sm:$0xff]   ;;  %1046 = vmatpush1.bf16.msra.mxu1 %v8422_v33  ;;  %v8429_v33 = vld [vmem:[#allocation8 + $0x380] ss:$48 sps:$4 sm:$0xff]  }
 0x122   :  { %1047 = vmatprep.subr.bf16.mxu1 %v8426_v34  ;;  %v8437_v34 = vld [vmem:[#allocation8 + $0x3e4] ss:$48 sps:$4 sm:$0xff]  }
 0x124   :  { %1926 = vmatpush1.bf16.msra.mxu0 %v8306_v35  ;;  %v8363_v35 = vld [vmem:[#allocation8 + $0xa90] ss:$48 sps:$4 sm:$0xff]  }
 0x125   :  { %1927 = vmatprep.subr.bf16.mxu0 %v8311_v36  ;;  %v8368_v36 = vld [vmem:[#allocation8 + $0xaf4] ss:$48 sps:$4 sm:$0xff]  }
 0x128   :  { %1928 = vmatpush1.bf16.msra.mxu0 %v8309_v37  ;;  %v8428_v37 = vld [vmem:[#allocation8 + $0x308] ss:$48 sps:$4 sm:$0xff]  }
 0x129   :  { %1929 = vmatprep.subr.bf16.mxu0 %v8314_v38  ;;  %v8432_v38 = vld [vmem:[#allocation8 + $0x36c] ss:$48 sps:$4 sm:$0xff]   ;;  %1048 = vmatpush1.bf16.msra.mxu1 %v8428_v37  ;;  %v8435_v37 = vld [vmem:[#allocation8 + $0x3e0] ss:$48 sps:$4 sm:$0xff]  }
 0x12a   :  { %1049 = vmatprep.subr.bf16.mxu1 %v8432_v38  ;;  %v8443_v38 = vld [vmem:[#allocation8 + $0x444] ss:$48 sps:$4 sm:$0xff]  }
 0x12c   :  { %1930 = vmatpush1.bf16.msra.mxu0 %v8312_v39  ;;  %v8366_v39 = vld [vmem:[#allocation8 + $0xaf0] ss:$48 sps:$4 sm:$0xff]  }
 0x12d   :  { %1931 = vmatprep.subr.bf16.mxu0 %v8317_v41  ;;  %v8371_v41 = vld [vmem:[#allocation8 + $0xb54] ss:$48 sps:$4 sm:$0xff]  }
 0x130   :  { %1932 = vmatpush1.bf16.msra.mxu0 %v8315_v43  ;;  %v8434_v43 = vld [vmem:[#allocation8 + $0x368] ss:$48 sps:$4 sm:$0xff]  }
 0x131   :  { %1933 = vmatprep.subr.bf16.mxu0 %v8320_v44  ;;  %v8438_v44 = vld [vmem:[#allocation8 + $0x3cc] ss:$48 sps:$4 sm:$0xff]   ;;  %1050 = vmatpush1.bf16.msra.mxu1 %v8434_v43  ;;  %v8441_v43 = vld [vmem:[#allocation8 + $0x440] ss:$48 sps:$4 sm:$0xff]  }
 0x132   :  { %1051 = vmatprep.subr.bf16.mxu1 %v8438_v44  ;;  %v8449_v44 = vld [vmem:[#allocation8 + $0x4a4] ss:$48 sps:$4 sm:$0xff]  }
 0x134   :  { %1934 = vmatpush1.bf16.msra.mxu0 %v8318_v45  ;;  %v8369_v45 = vld [vmem:[#allocation8 + $0xb50] ss:$48 sps:$4 sm:$0xff]  }
 0x135   :  { %1935 = vmatprep.subr.bf16.mxu0 %v8323_v46  ;;  %v8374_v46 = vld [vmem:[#allocation8 + $0xbb4] ss:$48 sps:$4 sm:$0xff]  }
 0x138   :  { %1936 = vmatpush1.bf16.msra.mxu0 %v8321_v47  ;;  %v8440_v47 = vld [vmem:[#allocation8 + $0x3c8] ss:$48 sps:$4 sm:$0xff]  }
 0x139   :  { %1937 = vmatprep.subr.bf16.mxu0 %v8326_v48  ;;  %v8444_v48 = vld [vmem:[#allocation8 + $0x42c] ss:$48 sps:$4 sm:$0xff]   ;;  %1052 = vmatpush1.bf16.msra.mxu1 %v8440_v47  ;;  %v8447_v47 = vld [vmem:[#allocation8 + $0x4a0] ss:$48 sps:$4 sm:$0xff]  }
 0x13a   :  { %1053 = vmatprep.subr.bf16.mxu1 %v8444_v48  ;;  %v8455_v48 = vld [vmem:[#allocation8 + $0x504] ss:$48 sps:$4 sm:$0xff]  }
 0x13c   :  { %1938 = vmatpush1.bf16.msra.mxu0 %v8324_v49  ;;  %v8372_v49 = vld [vmem:[#allocation8 + $0xbb0] ss:$48 sps:$4 sm:$0xff]  }
 0x13d   :  { %1950 = vmatprep.subr.bf16.mxu0 %v8329_v52  ;;  %v8377_v52 = vld [vmem:[#allocation8 + $0x24] ss:$48 sps:$4 sm:$0xff]  }
 0x13f   :  { %1940 = vmatmul.mubr.bf16.vlgmr.msra.gmra.mrb[4].mxu0 %v9373_v56 }
 0x140   :  { %1951 = vmatpush1.bf16.msra.mxu0 %v8327_v55  ;;  %1982 = vmatprep.mubr.bf16.mxu0 %v9375_v58  ;;  %v8446_v55 = vld [vmem:[#allocation8 + $0x428] ss:$48 sps:$4 sm:$0xff]  }
 0x141   :  { %1952 = vmatprep.subr.bf16.mxu0 %v8332_v57  ;;  %v9379_v57 = vpack.c.bf16 %v137_v51, %v133_v50  ;;  %1054 = vmatpush1.bf16.msra.mxu1 %v8446_v55  ;;  %v8530_v50 = vld [vmem:[#allocation8 + $0x96c] ss:$48 sps:$4 sm:$0xff]   ;;  %v8453_v51 = vld [vmem:[#allocation8 + $0x500] ss:$48 sps:$4 sm:$0xff]  }
 0x142   :  { %v8459_v55 = vld [vmem:[#allocation8 + $0x560] ss:$48 sps:$4 sm:$0xff]  }
 0x144   :  { %1953 = vmatpush1.bf16.msra.mxu0 %v8330_v59  ;;  %v8450_v59 = vld [vmem:[#allocation8 + $0x48c] ss:$48 sps:$4 sm:$0xff]  }
 0x145   :  { %1954 = vmatprep.subr.bf16.mxu0 %v8335_v60  ;;  %v8375_v60 = vld [vmem:[#allocation8 + $0x20] ss:$48 sps:$4 sm:$0xff]   ;;  %1055 = vmatprep.subr.bf16.mxu1 %v8450_v59  ;;  %v8467_v59 = vld [vmem:[#allocation8 + $0x5c4] ss:$48 sps:$4 sm:$0xff]  }
 0x148   :  { %1955 = vmatpush1.bf16.msra.mxu0 %v8333_v61  ;;  %v9381_v61 = vpack.c.bf16 %v148_v54, %v144_v53  ;;  %v8528_v53 = vld [vmem:[#allocation8 + $0x968] ss:$48 sps:$4 sm:$0xff]   ;;  %v8536_v54 = vld [vmem:[#allocation8 + $0x9cc] ss:$48 sps:$4 sm:$0xff]  }
 0x149   :  { %1956 = vmatprep.subr.bf16.mxu0 %v8338_v62  ;;  %v8383_v62 = vld [vmem:[#allocation8 + $0x84] ss:$48 sps:$4 sm:$0xff]  }
 0x14c   :  { %1957 = vmatpush1.bf16.msra.mxu0 %v8336_v63  ;;  %v8452_v63 = vld [vmem:[#allocation8 + $0x488] ss:$48 sps:$4 sm:$0xff]  }
 0x14d   :  { %1958 = vmatprep.subr.bf16.mxu0 %v8341_v0  ;;  %v8456_v0 = vld [vmem:[#allocation8 + $0x4ec] ss:$48 sps:$4 sm:$0xff]   ;;  %1056 = vmatpush1.bf16.msra.mxu1 %v8452_v63  ;;  %v8465_v63 = vld [vmem:[#allocation8 + $0x5c0] ss:$48 sps:$4 sm:$0xff]  }
 0x14e   :  { %1057 = vmatprep.subr.bf16.mxu1 %v8456_v0  ;;  %v143_v0 = vld [vmem:[#allocation7] sm:$0xff] }
 0x150   :  { %1959 = vmatpush1.bf16.msra.mxu0 %v8339_v1  ;;  %v8381_v1 = vld [vmem:[#allocation8 + $0x80] ss:$48 sps:$4 sm:$0xff]  }
 0x151   :  { %1960 = vmatprep.subr.bf16.mxu0 %v8344_v2  ;;  %v8389_v2 = vld [vmem:[#allocation8 + $0xe4] ss:$48 sps:$4 sm:$0xff]  }
 0x154   :  { %1961 = vmatpush1.bf16.msra.mxu0 %v8342_v3  ;;  %v8458_v3 = vld [vmem:[#allocation8 + $0x4e8] ss:$48 sps:$4 sm:$0xff]  }
 0x155   :  { %1962 = vmatprep.subr.bf16.mxu0 %v8347_v5  ;;  %v8387_v5 = vld [vmem:[#allocation8 + $0xe0] ss:$48 sps:$4 sm:$0xff]   ;;  %1058 = vmatpush1.bf16.msra.mxu1 %v8458_v3  ;;  %v146_v3 = vld [vmem:[#allocation7 + $0x18] sm:$0xff] }
 0x156   :  { %1059 = vmatprep.subr.bf16.mxu1 %v8462_v4  ;;  %v150_v4 = vld [vmem:[#allocation7 + $0x38] sm:$0xff] }
 0x158   :  { %1963 = vmatpush1.bf16.msra.mxu0 %v8345_v6  ;;  %v8395_v6 = vld [vmem:[#allocation8 + $0x144] ss:$48 sps:$4 sm:$0xff]  }
 0x159   :  { %1964 = vmatprep.subr.bf16.mxu0 %v8350_v9  ;;  %v8393_v9 = vld [vmem:[#allocation8 + $0x140] ss:$48 sps:$4 sm:$0xff]   ;;  %1060 = vmatpush1.bf16.msra.mxu1 %v8464_v7  ;;  %v8548_v7 = vld [vmem:[#allocation8 + $0xa8c] ss:$48 sps:$4 sm:$0xff]  }
 0x15a   :  { %1061 = vmatprep.subr.bf16.mxu1 %v8468_v8  ;;  %v8471_v8 = vld [vmem:[#allocation8 + $0x620] ss:$48 sps:$4 sm:$0xff]  }
 0x15c   :  { %1965 = vmatpush1.bf16.msra.mxu0 %v8348_v13  ;;  %v8399_v13 = vld [vmem:[#allocation8 + $0x1a0] ss:$48 sps:$4 sm:$0xff]  }
 0x15d   :  { %1966 = vmatprep.subr.bf16.mxu0 %v8353_v15  ;;  %v8407_v15 = vld [vmem:[#allocation8 + $0x204] ss:$48 sps:$4 sm:$0xff]   ;;  %1062 = vmatpush1.bf16.msra.mxu1 %v8470_v11  ;;  %v8546_v11 = vld [vmem:[#allocation8 + $0xa88] ss:$48 sps:$4 sm:$0xff]  }
 0x15e   :  { %1074 = vmatprep.subr.bf16.mxu1 %v8476_v12  ;;  %v8554_v12 = vld [vmem:[#allocation8 + $0xaec] ss:$48 sps:$4 sm:$0xff]  }
 0x160   :  { %1967 = vmatpush1.bf16.msra.mxu0 %v8351_v19  ;;  %v8405_v19 = vld [vmem:[#allocation8 + $0x200] ss:$48 sps:$4 sm:$0xff]   ;;  %1064 = vmatmul.mubr.bf16.vlgmr.msra.gmra.mrb[0].mxu1 %v9361_v40  ;;  %v8492_v40 = vld [vmem:[#allocation8 + $0x728] ss:$48 sps:$4 sm:$0xff]  }
 0x161   :  { %1968 = vmatprep.subr.bf16.mxu0 %v8356_v20  ;;  %v8413_v20 = vld [vmem:[#allocation8 + $0x264] ss:$48 sps:$4 sm:$0xff]   ;;  %1075 = vmatpush1.bf16.msra.mxu1 %v8474_v16  ;;  %v8552_v16 = vld [vmem:[#allocation8 + $0xae8] ss:$48 sps:$4 sm:$0xff]  }
 0x162   :  { %1106 = vmatprep.mubr.bf16.mxu1 %v9363_v42  ;;  %1076 = vmatprep.subr.bf16.mxu1 %v8482_v18  ;;  %v8423_v42 = vld [vmem:[#allocation8 + $0x320] ss:$48 sps:$4 sm:$0xff]   ;;  %v8560_v18 = vld [vmem:[#allocation8 + $0xb4c] ss:$48 sps:$4 sm:$0xff]  }
 0x164   :  { %1969 = vmatpush1.bf16.msra.mxu0 %v8354_v23  ;;  %v8411_v23 = vld [vmem:[#allocation8 + $0x260] ss:$48 sps:$4 sm:$0xff]  }
 0x165   :  { %1970 = vmatprep.subr.bf16.mxu0 %v8359_v24  ;;  %v8419_v24 = vld [vmem:[#allocation8 + $0x2c4] ss:$48 sps:$4 sm:$0xff]   ;;  %1077 = vmatpush1.bf16.msra.mxu1 %v8480_v21  ;;  %v8558_v21 = vld [vmem:[#allocation8 + $0xb48] ss:$48 sps:$4 sm:$0xff]  }
 0x166   :  { %1078 = vmatprep.subr.bf16.mxu1 %v8488_v22  ;;  %v8566_v22 = vld [vmem:[#allocation8 + $0xbac] ss:$48 sps:$4 sm:$0xff]  }
 0x168   :  { %1971 = vmatpush1.bf16.msra.mxu0 %v8357_v27  ;;  %v8417_v27 = vld [vmem:[#allocation8 + $0x2c0] ss:$48 sps:$4 sm:$0xff]  }
 0x169   :  { %1972 = vmatprep.subr.bf16.mxu0 %v8362_v28  ;;  %v8425_v28 = vld [vmem:[#allocation8 + $0x324] ss:$48 sps:$4 sm:$0xff]   ;;  %1079 = vmatpush1.bf16.msra.mxu1 %v8486_v25  ;;  %v8564_v25 = vld [vmem:[#allocation8 + $0xba8] ss:$48 sps:$4 sm:$0xff]  }
 0x16a   :  { %1080 = vmatprep.subr.bf16.mxu1 %v8494_v26  ;;  %v8569_v26 = vld [vmem:[#allocation8 + $0x1c] ss:$48 sps:$4 sm:$0xff]  }
 0x16c   :  { %1973 = vmatpush1.bf16.msra.mxu0 %v8360_v31  ;;  %v8498_v31 = vld [vmem:[#allocation8 + $0x788] ss:$48 sps:$4 sm:$0xff]  }
 0x16d   :  { %1974 = vmatprep.subr.bf16.mxu0 %v8365_v32  ;;  %1081 = vmatpush1.bf16.msra.mxu1 %v8492_v40  ;;  %v8506_v32 = vld [vmem:[#allocation8 + $0x7ec] ss:$48 sps:$4 sm:$0xff]   ;;  %v8567_v40 = vld [vmem:[#allocation8 + $0x18] ss:$48 sps:$4 sm:$0xff]  }
 0x16e   :  { %1082 = vmatprep.subr.bf16.mxu1 %v8500_v29  ;;  %v8501_v29 = vld [vmem:[#allocation8 + $0x800] ss:$48 sps:$4 sm:$0xff]  }
 0x170   :  { %1975 = vmatpush1.bf16.msra.mxu0 %v8363_v35  ;;  %v8504_v35 = vld [vmem:[#allocation8 + $0x7e8] ss:$48 sps:$4 sm:$0xff]  }
 0x171   :  { %1976 = vmatprep.subr.bf16.mxu0 %v8368_v36  ;;  %1083 = vmatpush1.bf16.msra.mxu1 %v8498_v31  ;;  %v8512_v36 = vld [vmem:[#allocation8 + $0x84c] ss:$48 sps:$4 sm:$0xff]  }
 0x172   :  { %1084 = vmatprep.subr.bf16.mxu1 %v8506_v32  ;;  %v8572_v32 = vld [vmem:[#allocation8 + $0x7c] ss:$48 sps:$4 sm:$0xff]  }
 0x174   :  { %1977 = vmatpush1.bf16.msra.mxu0 %v8366_v39  ;;  %v8510_v39 = vld [vmem:[#allocation8 + $0x848] ss:$48 sps:$4 sm:$0xff]  }
 0x175   :  { %1978 = vmatprep.subr.bf16.mxu0 %v8371_v41  ;;  %1085 = vmatpush1.bf16.msra.mxu1 %v8504_v35  ;;  %v8518_v41 = vld [vmem:[#allocation8 + $0x8ac] ss:$48 sps:$4 sm:$0xff]   ;;  %v8570_v35 = vld [vmem:[#allocation8 + $0x78] ss:$48 sps:$4 sm:$0xff]  }
 0x176   :  { %1086 = vmatprep.subr.bf16.mxu1 %v8512_v36 }
 0x178   :  { %1979 = vmatpush1.bf16.msra.mxu0 %v8369_v45  ;;  %v8516_v45 = vld [vmem:[#allocation8 + $0x8a8] ss:$48 sps:$4 sm:$0xff]  }
 0x179   :  { %1980 = vmatprep.subr.bf16.mxu0 %v8374_v46  ;;  %1087 = vmatpush1.bf16.msra.mxu1 %v8510_v39  ;;  %v8524_v46 = vld [vmem:[#allocation8 + $0x90c] ss:$48 sps:$4 sm:$0xff]   ;;  %v8573_v39 = vld [vmem:[#allocation8 + $0xd8] ss:$48 sps:$4 sm:$0xff]  }
 0x17a   :  { %1088 = vmatprep.subr.bf16.mxu1 %v8518_v41  ;;  %v8578_v41 = vld [vmem:[#allocation8 + $0x13c] ss:$48 sps:$4 sm:$0xff]  }
 0x17c   :  { %1981 = vmatpush1.bf16.msra.mxu0 %v8372_v49  ;;  %v8522_v49 = vld [vmem:[#allocation8 + $0x908] ss:$48 sps:$4 sm:$0xff]  }
 0x17d   :  { %2869 = vmatprep.subr.bf16.mxu0 %v8377_v52  ;;  %1089 = vmatpush1.bf16.msra.mxu1 %v8516_v45  ;;  %v8461_v52 = vld [vmem:[#allocation8 + $0x564] ss:$48 sps:$4 sm:$0xff]   ;;  %v8581_v45 = vld [vmem:[#allocation8 + $0x19c] ss:$48 sps:$4 sm:$0xff]  }
 0x17e   :  { %1090 = vmatprep.subr.bf16.mxu1 %v8524_v46  ;;  %v8527_v46 = vld [vmem:[#allocation8 + $0x984] ss:$48 sps:$4 sm:$0xff]  }
 0x17f   :  { %1983 = vmatmul.mubr.bf16.vlgmr.msra.gmra.mrb[4].mxu0 %v9379_v57 }
 0x180   :  { %2870 = vmatpush1.bf16.msra.mxu0 %v8375_v60  ;;  %2901 = vmatprep.mubr.bf16.mxu0 %v9381_v61  ;;  %v8534_v60 = vld [vmem:[#allocation8 + $0x9c8] ss:$48 sps:$4 sm:$0xff]  }
 0x181   :  { %2871 = vmatprep.subr.bf16.mxu0 %v8383_v62  ;;  %1091 = vmatpush1.bf16.msra.mxu1 %v8522_v49  ;;  %v8542_v62 = vld [vmem:[#allocation8 + $0xa2c] ss:$48 sps:$4 sm:$0xff]   ;;  %v8525_v49 = vld [vmem:[#allocation8 + $0x980] ss:$48 sps:$4 sm:$0xff]  }
 0x182   :  { %1092 = vmatprep.subr.bf16.mxu1 %v8530_v50  ;;  %v8533_v50 = vld [vmem:[#allocation8 + $0x9e4] ss:$48 sps:$4 sm:$0xff]  }
 0x184   :  { %2872 = vmatpush1.bf16.msra.mxu0 %v8381_v1  ;;  %v147_v1 = vld [vmem:[#allocation7 + $0x20] sm:$0xff] }
 0x185   :  { %2873 = vmatprep.subr.bf16.mxu0 %v8389_v2  ;;  %1093 = vmatpush1.bf16.msra.mxu1 %v8528_v53  ;;  %v8473_v2 = vld [vmem:[#allocation8 + $0x624] ss:$48 sps:$4 sm:$0xff]   ;;  %v8531_v53 = vld [vmem:[#allocation8 + $0x9e0] ss:$48 sps:$4 sm:$0xff]  }
 0x186   :  { %1094 = vmatprep.subr.bf16.mxu1 %v8536_v54  ;;  %v8539_v54 = vld [vmem:[#allocation8 + $0xa44] ss:$48 sps:$4 sm:$0xff]  }
 0x188   :  { %2874 = vmatpush1.bf16.msra.mxu0 %v8387_v5  ;;  %v8540_v5 = vld [vmem:[#allocation8 + $0xa28] ss:$48 sps:$4 sm:$0xff]  }
 0x189   :  { %2875 = vmatprep.subr.bf16.mxu0 %v8395_v6  ;;  %1095 = vmatpush1.bf16.msra.mxu1 %v8534_v60  ;;  %v9387_v6 = vpack.c.bf16 %v147_v1, %v143_v0  ;;  %v8537_v60 = vld [vmem:[#allocation8 + $0xa40] ss:$48 sps:$4 sm:$0xff]   ;;  %v8593_v0 = vld [vmem:[#allocation8 + $0x31c] ss:$48 sps:$4 sm:$0xff]  }
 0x18a   :  { %1096 = vmatprep.subr.bf16.mxu1 %v8542_v62  ;;  %v8545_v62 = vld [vmem:[#allocation8 + $0xaa4] ss:$48 sps:$4 sm:$0xff]   ;;  %v8543_v1 = vld [vmem:[#allocation8 + $0xaa0] ss:$48 sps:$4 sm:$0xff]  }
 0x18c   :  { %2876 = vmatpush1.bf16.msra.mxu0 %v8393_v9  ;;  %v9389_v9 = vpack.c.bf16 %v150_v4, %v146_v3  ;;  %v8591_v3 = vld [vmem:[#allocation8 + $0x318] ss:$48 sps:$4 sm:$0xff]   ;;  %v8596_v4 = vld [vmem:[#allocation8 + $0x37c] ss:$48 sps:$4 sm:$0xff]  }
 0x18d   :  { %2877 = vmatprep.subr.bf16.mxu0 %v8401_v10  ;;  %v8479_v10 = vld [vmem:[#allocation8 + $0x684] ss:$48 sps:$4 sm:$0xff]   ;;  %1097 = vmatpush1.bf16.msra.mxu1 %v8540_v5  ;;  %v8549_v5 = vld [vmem:[#allocation8 + $0xb00] ss:$48 sps:$4 sm:$0xff]  }
 0x18e   :  { %1098 = vmatprep.subr.bf16.mxu1 %v8548_v7  ;;  %v8557_v7 = vld [vmem:[#allocation8 + $0xb64] ss:$48 sps:$4 sm:$0xff]  }
 0x190   :  { %2878 = vmatpush1.bf16.msra.mxu0 %v8399_v13  ;;  %v8477_v13 = vld [vmem:[#allocation8 + $0x680] ss:$48 sps:$4 sm:$0xff]  }
 0x191   :  { %2879 = vmatprep.subr.bf16.mxu0 %v8407_v15  ;;  %v8485_v15 = vld [vmem:[#allocation8 + $0x6e4] ss:$48 sps:$4 sm:$0xff]   ;;  %1099 = vmatpush1.bf16.msra.mxu1 %v8546_v11  ;;  %v8555_v11 = vld [vmem:[#allocation8 + $0xb60] ss:$48 sps:$4 sm:$0xff]  }
 0x192   :  { %1100 = vmatprep.subr.bf16.mxu1 %v8554_v12  ;;  %v8563_v12 = vld [vmem:[#allocation8 + $0xbc4] ss:$48 sps:$4 sm:$0xff]  }
 0x194   :  { %2880 = vmatpush1.bf16.msra.mxu0 %v8405_v19  ;;  %v8483_v19 = vld [vmem:[#allocation8 + $0x6e0] ss:$48 sps:$4 sm:$0xff]  }
 0x195   :  { %2881 = vmatprep.subr.bf16.mxu0 %v8413_v20  ;;  %v8491_v20 = vld [vmem:[#allocation8 + $0x744] ss:$48 sps:$4 sm:$0xff]   ;;  %1101 = vmatpush1.bf16.msra.mxu1 %v8552_v16  ;;  %v8561_v16 = vld [vmem:[#allocation8 + $0xbc0] ss:$48 sps:$4 sm:$0xff]  }
 0x196   :  { %1102 = vmatprep.subr.bf16.mxu1 %v8560_v18  ;;  %v145_v18 = vld [vmem:[#allocation7 + $0x10] sm:$0xff] }
 0x198   :  { %2882 = vmatpush1.bf16.msra.mxu0 %v8411_v23  ;;  %v8489_v23 = vld [vmem:[#allocation8 + $0x740] ss:$48 sps:$4 sm:$0xff]  }
 0x199   :  { %2883 = vmatprep.subr.bf16.mxu0 %v8419_v24  ;;  %v8497_v24 = vld [vmem:[#allocation8 + $0x7a4] ss:$48 sps:$4 sm:$0xff]   ;;  %1103 = vmatpush1.bf16.msra.mxu1 %v8558_v21 }
 0x19a   :  { %1104 = vmatprep.subr.bf16.mxu1 %v8566_v22  ;;  %v8605_v22 = vld [vmem:[#allocation8 + $0x49c] ss:$48 sps:$4 sm:$0xff]  }
 0x19c   :  { %2884 = vmatpush1.bf16.msra.mxu0 %v8417_v27  ;;  %v8495_v27 = vld [vmem:[#allocation8 + $0x7a0] ss:$48 sps:$4 sm:$0xff]  }
 0x19d   :  { %2885 = vmatprep.subr.bf16.mxu0 %v8425_v28  ;;  %v8503_v28 = vld [vmem:[#allocation8 + $0x804] ss:$48 sps:$4 sm:$0xff]   ;;  %1105 = vmatpush1.bf16.msra.mxu1 %v8564_v25  ;;  %v8608_v25 = vld [vmem:[#allocation8 + $0x4fc] ss:$48 sps:$4 sm:$0xff]  }
 0x19e   :  { %1993 = vmatprep.subr.bf16.mxu1 %v8569_v26  ;;  %v8606_v26 = vld [vmem:[#allocation8 + $0x4f8] ss:$48 sps:$4 sm:$0xff]  }
 0x1a0   :  { %2886 = vmatpush1.bf16.msra.mxu0 %v8423_v42  ;;  %v8509_v42 = vld [vmem:[#allocation8 + $0x864] ss:$48 sps:$4 sm:$0xff]   ;;  %1107 = vmatmul.mubr.bf16.vlgmr.msra.gmra.mrb[0].mxu1 %v9367_v14  ;;  %v8575_v14 = vld [vmem:[#allocation8 + $0xdc] ss:$48 sps:$4 sm:$0xff]  }
 0x1a1   :  { %2887 = vmatprep.subr.bf16.mxu0 %v8431_v30  ;;  %1994 = vmatpush1.bf16.msra.mxu1 %v8567_v40  ;;  %v8614_v40 = vld [vmem:[#allocation8 + $0x5bc] ss:$48 sps:$4 sm:$0xff]  }
 0x1a2   :  { %2025 = vmatprep.mubr.bf16.mxu1 %v9369_v17  ;;  %1995 = vmatprep.subr.bf16.mxu1 %v8572_v32  ;;  %v8521_v17 = vld [vmem:[#allocation8 + $0x924] ss:$48 sps:$4 sm:$0xff]   ;;  %v8615_v32 = vld [vmem:[#allocation8 + $0x618] ss:$48 sps:$4 sm:$0xff]  }
 0x1a4   :  { %2888 = vmatpush1.bf16.msra.mxu0 %v8429_v33 }
 0x1a5   :  { %2889 = vmatprep.subr.bf16.mxu0 %v8437_v34  ;;  %v8507_v34 = vld [vmem:[#allocation8 + $0x860] ss:$48 sps:$4 sm:$0xff]   ;;  %1996 = vmatpush1.bf16.msra.mxu1 %v8570_v35  ;;  %v8618_v35 = vld [vmem:[#allocation8 + $0x678] ss:$48 sps:$4 sm:$0xff]  }
 0x1a6   :  { %1997 = vmatprep.subr.bf16.mxu1 %v8575_v14  ;;  %v8621_v14 = vld [vmem:[#allocation8 + $0x6d8] ss:$48 sps:$4 sm:$0xff]  }
 0x1a8   :  { %2890 = vmatpush1.bf16.msra.mxu0 %v8435_v37  ;;  %v8515_v37 = vld [vmem:[#allocation8 + $0x8c4] ss:$48 sps:$4 sm:$0xff]  }
 0x1a9   :  { %2891 = vmatprep.subr.bf16.mxu0 %v8443_v38  ;;  %v8513_v38 = vld [vmem:[#allocation8 + $0x8c0] ss:$48 sps:$4 sm:$0xff]   ;;  %1998 = vmatpush1.bf16.msra.mxu1 %v8573_v39  ;;  %v8624_v39 = vld [vmem:[#allocation8 + $0x738] ss:$48 sps:$4 sm:$0xff]  }
 0x1aa   :  { %1999 = vmatprep.subr.bf16.mxu1 %v8578_v41  ;;  %v8627_v41 = vld [vmem:[#allocation8 + $0x798] ss:$48 sps:$4 sm:$0xff]  }
 0x1ac   :  { %2892 = vmatpush1.bf16.msra.mxu0 %v8441_v43  ;;  %v8519_v43 = vld [vmem:[#allocation8 + $0x920] ss:$48 sps:$4 sm:$0xff]  }
 0x1ad   :  { %2893 = vmatprep.subr.bf16.mxu0 %v8449_v44  ;;  %v8576_v44 = vld [vmem:[#allocation8 + $0x138] ss:$48 sps:$4 sm:$0xff]  }
 0x1ae   :  { %2000 = vmatpush1.bf16.msra.mxu1 %v8576_v44  ;;  %v8635_v44 = vld [vmem:[#allocation8 + $0x85c] ss:$48 sps:$4 sm:$0xff]  }
 0x1af   :  { %2001 = vmatprep.subr.bf16.mxu1 %v8581_v45  ;;  %v8638_v45 = vld [vmem:[#allocation8 + $0x8bc] ss:$48 sps:$4 sm:$0xff]  }
 0x1b0   :  { %2894 = vmatpush1.bf16.msra.mxu0 %v8447_v47  ;;  %v8579_v47 = vld [vmem:[#allocation8 + $0x198] ss:$48 sps:$4 sm:$0xff]  }
 0x1b1   :  { %2895 = vmatprep.subr.bf16.mxu0 %v8455_v48  ;;  %v8584_v48 = vld [vmem:[#allocation8 + $0x1fc] ss:$48 sps:$4 sm:$0xff]  }
 0x1b2   :  { %2002 = vmatpush1.bf16.msra.mxu1 %v8579_v47  ;;  %v8641_v47 = vld [vmem:[#allocation8 + $0x91c] ss:$48 sps:$4 sm:$0xff]  }
 0x1b3   :  { %2003 = vmatprep.subr.bf16.mxu1 %v8584_v48  ;;  %v8639_v48 = vld [vmem:[#allocation8 + $0x918] ss:$48 sps:$4 sm:$0xff]  }
 0x1b4   :  { %2896 = vmatpush1.bf16.msra.mxu0 %v8453_v51  ;;  %v8582_v51 = vld [vmem:[#allocation8 + $0x1f8] ss:$48 sps:$4 sm:$0xff]  }
 0x1b5   :  { %2897 = vmatprep.subr.bf16.mxu0 %v8461_v52  ;;  %v8587_v52 = vld [vmem:[#allocation8 + $0x25c] ss:$48 sps:$4 sm:$0xff]  }
 0x1b6   :  { %2004 = vmatpush1.bf16.msra.mxu1 %v8582_v51  ;;  %v8647_v51 = vld [vmem:[#allocation8 + $0x9dc] ss:$48 sps:$4 sm:$0xff]  }
 0x1b7   :  { %2005 = vmatprep.subr.bf16.mxu1 %v8587_v52  ;;  %v8645_v52 = vld [vmem:[#allocation8 + $0x9d8] ss:$48 sps:$4 sm:$0xff]  }
 0x1b8   :  { %2898 = vmatpush1.bf16.msra.mxu0 %v8459_v55  ;;  %v8585_v55 = vld [vmem:[#allocation8 + $0x258] ss:$48 sps:$4 sm:$0xff]  }
 0x1b9   :  { %2899 = vmatprep.subr.bf16.mxu0 %v8467_v59  ;;  %v8590_v59 = vld [vmem:[#allocation8 + $0x2bc] ss:$48 sps:$4 sm:$0xff]  }
 0x1ba   :  { %2006 = vmatpush1.bf16.msra.mxu1 %v8585_v55  ;;  %v8653_v55 = vld [vmem:[#allocation8 + $0xa9c] ss:$48 sps:$4 sm:$0xff]  }
 0x1bb   :  { %2007 = vmatprep.subr.bf16.mxu1 %v8590_v59  ;;  %v8651_v59 = vld [vmem:[#allocation8 + $0xa98] ss:$48 sps:$4 sm:$0xff]  }
 0x1bc   :  { %2900 = vmatpush1.bf16.msra.mxu0 %v8465_v63  ;;  %v8588_v63 = vld [vmem:[#allocation8 + $0x2b8] ss:$48 sps:$4 sm:$0xff]  }
 0x1bd   :  { %2912 = vmatprep.subr.bf16.mxu0 %v8473_v2  ;;  %v8551_v2 = vld [vmem:[#allocation8 + $0xb04] ss:$48 sps:$4 sm:$0xff]  }
 0x1be   :  { %2008 = vmatpush1.bf16.msra.mxu1 %v8588_v63  ;;  %v285_v63 = vlaneseq }
 0x1bf   :  { %2902 = vmatmul.mubr.bf16.vlgmr.msra.gmra.mrb[8].mxu0 %v9387_v6  ;;  %2009 = vmatprep.subr.bf16.mxu1 %v8593_v0  ;;  %v8659_v0 = vld [vmem:[#allocation8 + $0xb5c] ss:$48 sps:$4 sm:$0xff]  }
 0x1c0   :  { %2913 = vmatpush1.bf16.msra.mxu0 %v8471_v8  ;;  %2944 = vmatprep.mubr.bf16.mxu0 %v9389_v9  ;;  %v8594_v8 = vld [vmem:[#allocation8 + $0x378] ss:$48 sps:$4 sm:$0xff]  }
 0x1c1   :  { %2914 = vmatprep.subr.bf16.mxu0 %v8479_v10  ;;  %v8599_v10 = vld [vmem:[#allocation8 + $0x3dc] ss:$48 sps:$4 sm:$0xff]  }
 0x1c2   :  { %2010 = vmatpush1.bf16.msra.mxu1 %v8591_v3  ;;  %v9413_v3 = vld [vmem:[#allocation10 + $0x4] sm:$0xf] }
 0x1c3   :  { %2011 = vmatprep.subr.bf16.mxu1 %v8596_v4  ;;  %v8662_v4 = vld [vmem:[#allocation8 + $0xbbc] ss:$48 sps:$4 sm:$0xff]  }
 0x1c4   :  { %2915 = vmatpush1.bf16.msra.mxu0 %v8477_v13  ;;  %v8597_v13 = vld [vmem:[#allocation8 + $0x3d8] ss:$48 sps:$4 sm:$0xff]  }
 0x1c5   :  { %2916 = vmatprep.subr.bf16.mxu0 %v8485_v15  ;;  %v8602_v15 = vld [vmem:[#allocation8 + $0x43c] ss:$48 sps:$4 sm:$0xff]  }
 0x1c6   :  { %2012 = vmatpush1.bf16.msra.mxu1 %v8594_v8  ;;  %v9418_v8 = vld [vmem:[#allocation10] sm:$0xf] }
 0x1c7   :  { %2013 = vmatprep.subr.bf16.mxu1 %v8599_v10 }
 0x1c8   :  { %2917 = vmatpush1.bf16.msra.mxu0 %v8483_v19  ;;  %v149_v19 = vld [vmem:[#allocation7 + $0x30] sm:$0xff] }
 0x1c9   :  { %2918 = vmatprep.subr.bf16.mxu0 %v8491_v20  ;;  %v8600_v20 = vld [vmem:[#allocation8 + $0x438] ss:$48 sps:$4 sm:$0xff]   ;;  %v9403_v21 = vpack.c.bf16 %v149_v19, %v145_v18 }
 0x1ca   :  { %2014 = vmatpush1.bf16.msra.mxu1 %v8597_v13  ;;  %v8668_v13 = vld [vmem:[#allocation8 + $0x8c] ss:$48 sps:$4 sm:$0xff]  }
 0x1cb   :  { %2015 = vmatprep.subr.bf16.mxu1 %v8602_v15 }
 0x1cc   :  { %2919 = vmatpush1.bf16.msra.mxu0 %v8489_v23  ;;  %v9216_v23 = vmov 0.0  }
 0x1cd   :  { %2920 = vmatprep.subr.bf16.mxu0 %v8497_v24  ;;  %v8603_v24 = vld [vmem:[#allocation8 + $0x498] ss:$48 sps:$4 sm:$0xff]  }
 0x1ce   :  { %2016 = vmatpush1.bf16.msra.mxu1 %v8600_v20  ;;  %v8666_v20 = vld [vmem:[#allocation8 + $0x88] ss:$48 sps:$4 sm:$0xff]  }
 0x1cf   :  { %2017 = vmatprep.subr.bf16.mxu1 %v8605_v22 }
 0x1d0   :  { %2921 = vmatpush1.bf16.msra.mxu0 %v8495_v27  ;;  %v8611_v27 = vld [vmem:[#allocation8 + $0x55c] ss:$48 sps:$4 sm:$0xff]  }
 0x1d1   :  { %2922 = vmatprep.subr.bf16.mxu0 %v8503_v28  ;;  %v8609_v28 = vld [vmem:[#allocation8 + $0x558] ss:$48 sps:$4 sm:$0xff]  }
 0x1d2   :  { %v9394_v30 = vpop.f32.mrb[0].mxu0  ;;  %2018 = vmatpush1.bf16.msra.mxu1 %v8603_v24  ;;  %v8671_v24 = vld [vmem:[#allocation8 + $0xec] ss:$48 sps:$4 sm:$0xff]  }
 0x1d3   :  { %v9397_v31 = vpop.f32.mrb[1].mxu0  ;;  %2019 = vmatprep.subr.bf16.mxu1 %v8608_v25 }
 0x1d4   :  { %v9399_v33 = vpop.f32.mrb[2].mxu0  ;;  %2923 = vmatpush1.bf16.msra.mxu0 %v8501_v29  ;;  %v8612_v29 = vld [vmem:[#allocation8 + $0x5b8] ss:$48 sps:$4 sm:$0xff]  }
 0x1d5   :  { %v9401_v36 = vpop.f32.mrb[3].mxu0  ;;  %2924 = vmatprep.subr.bf16.mxu0 %v8509_v42  ;;  %v8617_v42 = vld [vmem:[#allocation8 + $0x61c] ss:$48 sps:$4 sm:$0xff]  }
 0x1d6   :  { %2020 = vmatpush1.bf16.msra.mxu1 %v8606_v26 }
 0x1d7   :  { %2021 = vmatprep.subr.bf16.mxu1 %v8611_v27  ;;  %v8669_v27 = vld [vmem:[#allocation8 + $0xe8] ss:$48 sps:$4 sm:$0xff]  }
 0x1d8   :  { %2925 = vmatpush1.bf16.msra.mxu0 %v8507_v34  ;;  %v8620_v34 = vld [vmem:[#allocation8 + $0x67c] ss:$48 sps:$4 sm:$0xff]  }
 0x1d9   :  { %2926 = vmatprep.subr.bf16.mxu0 %v8515_v37  ;;  %v8623_v37 = vld [vmem:[#allocation8 + $0x6dc] ss:$48 sps:$4 sm:$0xff]  }
 0x1da   :  { %2022 = vmatpush1.bf16.msra.mxu1 %v8609_v28 }
 0x1db   :  { %2023 = vmatprep.subr.bf16.mxu1 %v8614_v40  ;;  %v8677_v40 = vld [vmem:[#allocation8 + $0x1ac] ss:$48 sps:$4 sm:$0xff]  }
 0x1dc   :  { %2927 = vmatpush1.bf16.msra.mxu0 %v8513_v38  ;;  %v8626_v38 = vld [vmem:[#allocation8 + $0x73c] ss:$48 sps:$4 sm:$0xff]  }
 0x1dd   :  { %2928 = vmatprep.subr.bf16.mxu0 %v8521_v17  ;;  %v8629_v17 = vld [vmem:[#allocation8 + $0x79c] ss:$48 sps:$4 sm:$0xff]  }
 0x1de   :  { %2024 = vmatpush1.bf16.msra.mxu1 %v8612_v29  ;;  %v8680_v29 = vld [vmem:[#allocation8 + $0x20c] ss:$48 sps:$4 sm:$0xff]  }
 0x1df   :  { %2036 = vmatprep.subr.bf16.mxu1 %v8617_v42  ;;  %v8678_v42 = vld [vmem:[#allocation8 + $0x208] ss:$48 sps:$4 sm:$0xff]  }
 0x1e0   :  { %2929 = vmatpush1.bf16.msra.mxu0 %v8519_v43  ;;  %v8632_v43 = vld [vmem:[#allocation8 + $0x7fc] ss:$48 sps:$4 sm:$0xff]  }
 0x1e1   :  { %2930 = vmatprep.subr.bf16.mxu0 %v8527_v46  ;;  %2026 = vmatmul.mubr.bf16.vlgmr.msra.gmra.mrb[4].mxu1 %v9373_v56  ;;  %v8630_v56 = vld [vmem:[#allocation8 + $0x7f8] ss:$48 sps:$4 sm:$0xff]  }
 0x1e2   :  { %2037 = vmatpush1.bf16.msra.mxu1 %v8615_v32  ;;  %2068 = vmatprep.mubr.bf16.mxu1 %v9375_v58  ;;  %v8633_v58 = vld [vmem:[#allocation8 + $0x858] ss:$48 sps:$4 sm:$0xff]   ;;  %v8683_v32 = vld [vmem:[#allocation8 + $0x26c] ss:$48 sps:$4 sm:$0xff]  }
 0x1e3   :  { %2038 = vmatprep.subr.bf16.mxu1 %v8620_v34  ;;  %v8636_v46 = vld [vmem:[#allocation8 + $0x8b8] ss:$48 sps:$4 sm:$0xff]  }
 0x1e4   :  { %2931 = vmatpush1.bf16.msra.mxu0 %v8525_v49  ;;  %v8644_v49 = vld [vmem:[#allocation8 + $0x97c] ss:$48 sps:$4 sm:$0xff]   ;;  %v8681_v34 = vld [vmem:[#allocation8 + $0x268] ss:$48 sps:$4 sm:$0xff]  }
 0x1e5   :  { %2932 = vmatprep.subr.bf16.mxu0 %v8533_v50  ;;  %v8642_v50 = vld [vmem:[#allocation8 + $0x978] ss:$48 sps:$4 sm:$0xff]  }
 0x1e6   :  { %2039 = vmatpush1.bf16.msra.mxu1 %v8618_v35  ;;  %v8686_v35 = vld [vmem:[#allocation8 + $0x2cc] ss:$48 sps:$4 sm:$0xff]  }
 0x1e7   :  { %2040 = vmatprep.subr.bf16.mxu1 %v8623_v37  ;;  %v8684_v37 = vld [vmem:[#allocation8 + $0x2c8] ss:$48 sps:$4 sm:$0xff]  }
 0x1e8   :  { %2933 = vmatpush1.bf16.msra.mxu0 %v8531_v53  ;;  %v8650_v53 = vld [vmem:[#allocation8 + $0xa3c] ss:$48 sps:$4 sm:$0xff]  }
 0x1e9   :  { %2934 = vmatprep.subr.bf16.mxu0 %v8539_v54  ;;  %v8648_v54 = vld [vmem:[#allocation8 + $0xa38] ss:$48 sps:$4 sm:$0xff]  }
 0x1ea   :  { %2041 = vmatpush1.bf16.msra.mxu1 %v8621_v14  ;;  %v8689_v14 = vld [vmem:[#allocation8 + $0x32c] ss:$48 sps:$4 sm:$0xff]  }
 0x1eb   :  { %2042 = vmatprep.subr.bf16.mxu1 %v8626_v38  ;;  %v8687_v38 = vld [vmem:[#allocation8 + $0x328] ss:$48 sps:$4 sm:$0xff]  }
 0x1ec   :  { %2935 = vmatpush1.bf16.msra.mxu0 %v8537_v60  ;;  %v8656_v60 = vld [vmem:[#allocation8 + $0xafc] ss:$48 sps:$4 sm:$0xff]  }
 0x1ed   :  { %2936 = vmatprep.subr.bf16.mxu0 %v8545_v62  ;;  %v8654_v62 = vld [vmem:[#allocation8 + $0xaf8] ss:$48 sps:$4 sm:$0xff]  }
 0x1ee   :  { %2043 = vmatpush1.bf16.msra.mxu1 %v8624_v39  ;;  %v8692_v39 = vld [vmem:[#allocation8 + $0x38c] ss:$48 sps:$4 sm:$0xff]  }
 0x1ef   :  { %2044 = vmatprep.subr.bf16.mxu1 %v8629_v17  ;;  %v8690_v17 = vld [vmem:[#allocation8 + $0x388] ss:$48 sps:$4 sm:$0xff]  }
 0x1f0   :  { %2937 = vmatpush1.bf16.msra.mxu0 %v8543_v1  ;;  %v8657_v1 = vld [vmem:[#allocation8 + $0xb58] ss:$48 sps:$4 sm:$0xff]  }
 0x1f1   :  { %2938 = vmatprep.subr.bf16.mxu0 %v8551_v2  ;;  %v9411_v2 = vshrl.u32 %v285_v63, 7  ;;  %v8720_v63 = vld [vmem:[#allocation8 + $0x748] ss:$48 sps:$4 sm:$0xff]  }
 0x1f2   :  { %2045 = vmatpush1.bf16.msra.mxu1 %v8627_v41  ;;  %v8695_v41 = vld [vmem:[#allocation8 + $0x3ec] ss:$48 sps:$4 sm:$0xff]  }
 0x1f3   :  { %2046 = vmatprep.subr.bf16.mxu1 %v8632_v43  ;;  %v8693_v43 = vld [vmem:[#allocation8 + $0x3e8] ss:$48 sps:$4 sm:$0xff]  }
 0x1f4   :  { %2939 = vmatpush1.bf16.msra.mxu0 %v8549_v5  ;;  %v9416_v5 = vsub.s32 0, %v9411_v2 }
 0x1f5   :  { %2940 = vmatprep.subr.bf16.mxu0 %v8557_v7  ;;  %v8660_v7 = vld [vmem:[#allocation8 + $0xbb8] ss:$48 sps:$4 sm:$0xff]  }
 0x1f6   :  { %2047 = vmatpush1.bf16.msra.mxu1 %v8630_v56  ;;  %v1250_v10 = vrot.slane %v9413_v3, %v9416_v5  ;;  %v288_v15 = vrot.slane %v9418_v8, %v9416_v5  ;;  %v8698_v56 = vld [vmem:[#allocation8 + $0x44c] ss:$48 sps:$4 sm:$0xff]  }
 0x1f7   :  { %2048 = vmatprep.subr.bf16.mxu1 %v8635_v44  ;;  %v8696_v44 = vld [vmem:[#allocation8 + $0x448] ss:$48 sps:$4 sm:$0xff]  }
 0x1f8   :  { %2941 = vmatpush1.bf16.msra.mxu0 %v8555_v11  ;;  %v8663_v11 = vld [vmem:[#allocation8 + $0x28] ss:$48 sps:$4 sm:$0xff]   ;;  %v8063_v28 = vadd.f32 %v9399_v33, %v288_v15 }
 0x1f9   :  { %2942 = vmatprep.subr.bf16.mxu0 %v8563_v12  ;;  %v8665_v12 = vld [vmem:[#allocation8 + $0x2c] ss:$48 sps:$4 sm:$0xff]   ;;  %v8675_v33 = vld [vmem:[#allocation8 + $0x1a8] ss:$48 sps:$4 sm:$0xff]  }
 0x1fa   :  { %2049 = vmatpush1.bf16.msra.mxu1 %v8633_v58  ;;  %v8701_v58 = vld [vmem:[#allocation8 + $0x4ac] ss:$48 sps:$4 sm:$0xff]  }
 0x1fb   :  { %2050 = vmatprep.subr.bf16.mxu1 %v8638_v45  ;;  %v8699_v45 = vld [vmem:[#allocation8 + $0x4a8] ss:$48 sps:$4 sm:$0xff]  }
 0x1fc   :  { %2943 = vmatpush1.bf16.msra.mxu0 %v8561_v16 }
 0x1fd   :  { %7901 = vmatprep.subr.mxu0 %v9216_v23 }
 0x1fe   :  { %2051 = vmatpush1.bf16.msra.mxu1 %v8636_v46  ;;  %v8704_v46 = vld [vmem:[#allocation8 + $0x50c] ss:$48 sps:$4 sm:$0xff]  }
 0x1ff   :  { %2945 = vmatmul.mubr.bf16.vlgmr.msra.gmra.mrb[8].mxu0 %v9403_v21  ;;  %2052 = vmatprep.subr.bf16.mxu1 %v8641_v47  ;;  %v8702_v47 = vld [vmem:[#allocation8 + $0x508] ss:$48 sps:$4 sm:$0xff]  }
 0x200   :  { %7903 = vmatprep.mubr.msk.f32.mxu0 %vm9217_vm0, %v9216_v23 }
 0x202   :  { %2053 = vmatpush1.bf16.msra.mxu1 %v8639_v48  ;;  %v8707_v48 = vld [vmem:[#allocation8 + $0x56c] ss:$48 sps:$4 sm:$0xff]  }
 0x203   :  { %2054 = vmatprep.subr.bf16.mxu1 %v8644_v49  ;;  %v8705_v49 = vld [vmem:[#allocation8 + $0x568] ss:$48 sps:$4 sm:$0xff]  }
 0x206   :  { %2055 = vmatpush1.bf16.msra.mxu1 %v8642_v50  ;;  %v8710_v50 = vld [vmem:[#allocation8 + $0x5cc] ss:$48 sps:$4 sm:$0xff]  }
 0x207   :  { %2056 = vmatprep.subr.bf16.mxu1 %v8647_v51  ;;  %v8708_v51 = vld [vmem:[#allocation8 + $0x5c8] ss:$48 sps:$4 sm:$0xff]  }
 0x20a   :  { %2057 = vmatpush1.bf16.msra.mxu1 %v8645_v52  ;;  %v8713_v52 = vld [vmem:[#allocation8 + $0x62c] ss:$48 sps:$4 sm:$0xff]  }
 0x20b   :  { %2058 = vmatprep.subr.bf16.mxu1 %v8650_v53  ;;  %v8711_v53 = vld [vmem:[#allocation8 + $0x628] ss:$48 sps:$4 sm:$0xff]  }
 0x20e   :  { %2059 = vmatpush1.bf16.msra.mxu1 %v8648_v54  ;;  %v8716_v54 = vld [vmem:[#allocation8 + $0x68c] ss:$48 sps:$4 sm:$0xff]  }
 0x20f   :  { %2060 = vmatprep.subr.bf16.mxu1 %v8653_v55  ;;  %v8714_v55 = vld [vmem:[#allocation8 + $0x688] ss:$48 sps:$4 sm:$0xff]  }
 0x212   :  { %2061 = vmatpush1.bf16.msra.mxu1 %v8651_v59  ;;  %v8719_v59 = vld [vmem:[#allocation8 + $0x6ec] ss:$48 sps:$4 sm:$0xff]  }
 0x213   :  { %2062 = vmatprep.subr.bf16.mxu1 %v8656_v60  ;;  %v8717_v60 = vld [vmem:[#allocation8 + $0x6e8] ss:$48 sps:$4 sm:$0xff]  }
 0x216   :  { %2063 = vmatpush1.bf16.msra.mxu1 %v8654_v62  ;;  %v8722_v62 = vld [vmem:[#allocation8 + $0x74c] ss:$48 sps:$4 sm:$0xff]  }
 0x217   :  { %2064 = vmatprep.subr.bf16.mxu1 %v8659_v0  ;;  %v8725_v0 = vld [vmem:[#allocation8 + $0x7ac] ss:$48 sps:$4 sm:$0xff]  }
 0x21a   :  { %2065 = vmatpush1.bf16.msra.mxu1 %v8657_v1  ;;  %v8723_v1 = vld [vmem:[#allocation8 + $0x7a8] ss:$48 sps:$4 sm:$0xff]  }
 0x21b   :  { %2066 = vmatprep.subr.bf16.mxu1 %v8662_v4  ;;  %v8728_v4 = vld [vmem:[#allocation8 + $0x80c] ss:$48 sps:$4 sm:$0xff]  }
 0x21e   :  { %2067 = vmatpush1.bf16.msra.mxu1 %v8660_v7  ;;  %v8731_v7 = vld [vmem:[#allocation8 + $0x86c] ss:$48 sps:$4 sm:$0xff]  }
 0x21f   :  { %2955 = vmatprep.subr.bf16.mxu1 %v8665_v12  ;;  %v8735_v12 = vld [vmem:[#allocation8 + $0x928] ss:$48 sps:$4 sm:$0xff]  }
 0x221   :  { %2069 = vmatmul.mubr.bf16.vlgmr.msra.gmra.mrb[4].mxu1 %v9379_v57  ;;  %v8061_v57 = vadd.f32 %v9394_v30, %v288_v15  ;;  %v8672_v30 = vld [vmem:[#allocation8 + $0x148] ss:$48 sps:$4 sm:$0xff]  }
 0x222   :  { %2956 = vmatpush1.bf16.msra.mxu1 %v8663_v11  ;;  %2987 = vmatprep.mubr.bf16.mxu1 %v9381_v61  ;;  %v8674_v61 = vld [vmem:[#allocation8 + $0x14c] ss:$48 sps:$4 sm:$0xff]   ;;  %v8738_v15 = vld [vmem:[#allocation8 + $0x988] ss:$48 sps:$4 sm:$0xff]  }
 0x223   :  { %2957 = vmatprep.subr.bf16.mxu1 %v8668_v13  ;;  %v8734_v11 = vld [vmem:[#allocation8 + $0x8cc] ss:$48 sps:$4 sm:$0xff]  }
 0x224   :  { %v8737_v13 = vld [vmem:[#allocation8 + $0x92c] ss:$48 sps:$4 sm:$0xff]  }
 0x226   :  { %2958 = vmatpush1.bf16.msra.mxu1 %v8666_v20  ;;  %v8741_v20 = vld [vmem:[#allocation8 + $0x9e8] ss:$48 sps:$4 sm:$0xff]  }
 0x227   :  { %2959 = vmatprep.subr.bf16.mxu1 %v8671_v24  ;;  %v8744_v24 = vld [vmem:[#allocation8 + $0xa48] ss:$48 sps:$4 sm:$0xff]  }
 0x22a   :  { %2960 = vmatpush1.bf16.msra.mxu1 %v8669_v27  ;;  %v8752_v27 = vld [vmem:[#allocation8 + $0xb0c] ss:$48 sps:$4 sm:$0xff]  }
 0x22b   :  { %2961 = vmatprep.subr.bf16.mxu1 %v8674_v61  ;;  %v8750_v61 = vld [vmem:[#allocation8 + $0xb08] ss:$48 sps:$4 sm:$0xff]  }
 0x22e   :  { %2962 = vmatpush1.bf16.msra.mxu1 %v8672_v30 }
 0x22f   :  { %2963 = vmatprep.subr.bf16.mxu1 %v8677_v40  ;;  %v8753_v40 = vld [vmem:[#allocation8 + $0xb68] ss:$48 sps:$4 sm:$0xff]  }
 0x232   :  { %2964 = vmatpush1.bf16.msra.mxu1 %v8675_v33  ;;  %v8758_v33 = vld [vmem:[#allocation8 + $0xbcc] ss:$48 sps:$4 sm:$0xff]  }
 0x233   :  { %2965 = vmatprep.subr.bf16.mxu1 %v8680_v29 }
 0x236   :  { %2966 = vmatpush1.bf16.msra.mxu1 %v8678_v42 }
 0x237   :  { %2967 = vmatprep.subr.bf16.mxu1 %v8683_v32  ;;  %v8756_v32 = vld [vmem:[#allocation8 + $0xbc8] ss:$48 sps:$4 sm:$0xff]  }
 0x23a   :  { %2968 = vmatpush1.bf16.msra.mxu1 %v8681_v34  ;;  %v9451_v34 = vld [vmem:[#allocation10 + $0x8] sm:$0xf] }
 0x23b   :  { %2969 = vmatprep.subr.bf16.mxu1 %v8686_v35 }
 0x23e   :  { %2970 = vmatpush1.bf16.msra.mxu1 %v8684_v37  ;;  %v2212_v37 = vrot.slane %v9451_v34, %v9416_v5 }
 0x23f   :  { %2971 = vmatprep.subr.bf16.mxu1 %v8689_v14  ;;  %v9459_v14 = vsub.s32 1, %v9411_v2 }
 0x242   :  { %2972 = vmatpush1.bf16.msra.mxu1 %v8687_v38 }
 0x243   :  { %2973 = vmatprep.subr.bf16.mxu1 %v8692_v39  ;;  %v9465_v39 = vrot.slane %v9451_v34, %v9459_v14 }
 0x246   :  { %2974 = vmatpush1.bf16.msra.mxu1 %v8690_v17 }
 0x247   :  { %2975 = vmatprep.subr.bf16.mxu1 %v8695_v41 }
 0x24a   :  { %2976 = vmatpush1.bf16.msra.mxu1 %v8693_v43 }
 0x24b   :  { %2977 = vmatprep.subr.bf16.mxu1 %v8698_v56 }
 0x24e   :  { %2978 = vmatpush1.bf16.msra.mxu1 %v8696_v44 }
 0x24f   :  { %2979 = vmatprep.subr.bf16.mxu1 %v8701_v58 }
 0x252   :  { %v1984_v16 = vpop.f32.mrb[4].mxu0  ;;  %2980 = vmatpush1.bf16.msra.mxu1 %v8699_v45 }
 0x253   :  { %v8069_v18 = vadd.f32 %v1984_v16, %v1250_v10  ;;  %v9425_v19 = vpop.f32.mrb[5].mxu0  ;;  %2981 = vmatprep.subr.bf16.mxu1 %v8704_v46  ;;  %v8740_v16 = vld [vmem:[#allocation8 + $0x98c] ss:$48 sps:$4 sm:$0xff]  }
 0x254   :  { %v1988_v22 = vpop.f32.mrb[6].mxu0 }
 0x255   :  { %v8071_v25 = vadd.f32 %v1988_v22, %v1250_v10  ;;  %v9428_v26 = vpop.f32.mrb[7].mxu0  ;;  %3384 = vrot.lane.b32.xlu0 %v8069_v18, %s9218_s6  ;;  %7902 = vmatpush3.xpose.msk.msra.mxu0 %vm3041_vm1, %v8069_v18  ;;  %v8732_v10 = vld [vmem:[#allocation8 + $0x8c8] ss:$48 sps:$4 sm:$0xff]   ;;  %v8743_v18 = vld [vmem:[#allocation8 + $0x9ec] ss:$48 sps:$4 sm:$0xff]  }
 0x256   :  { %7911 = vmatprep.subr.mxu0 %v9216_v23  ;;  %2982 = vmatpush1.bf16.msra.mxu1 %v8702_v47  ;;  %v8746_v22 = vld [vmem:[#allocation8 + $0xa4c] ss:$48 sps:$4 sm:$0xff]  }
 0x257   :  { %3551 = vrot.lane.b32.xlu1 %v8071_v25, %s9218_s6  ;;  %2983 = vmatprep.subr.bf16.mxu1 %v8707_v48 }
 0x258   :  { %7904 = vmatmul.mubr.msk.f32.vlgmr.msra.gmra.mrb[12].mxu0 %vm3041_vm1, %v8061_v57 }
 0x259   :  { %3382 = vrot.lane.b32.xlu0 %v8061_v57, %s9218_s6  ;;  %7912 = vmatpush3.xpose.msk.msra.mxu0 %vm3041_vm1, %v8071_v25  ;;  %v8749_v25 = vld [vmem:[#allocation8 + $0xaac] ss:$48 sps:$4 sm:$0xff]   ;;  %v8747_v57 = vld [vmem:[#allocation8 + $0xaa8] ss:$48 sps:$4 sm:$0xff]  }
 0x25a   :  { %7913 = vmatprep.mubr.msk.f32.mxu0 %vm9217_vm0, %v9216_v23  ;;  %7921 = vmatprep.subr.mxu0 %v9216_v23 }
 0x25b   :  { %3549 = vrot.lane.b32.xlu1 %v8063_v28, %s9218_s6  ;;  %2984 = vmatpush1.bf16.msra.mxu1 %v8705_v49 }
 0x25c   :  { %7914 = vmatmul.mubr.msk.f32.vlgmr.msra.gmra.mrb[14].mxu0 %vm3041_vm1, %v8063_v28  ;;  %2985 = vmatprep.subr.bf16.mxu1 %v8710_v50  ;;  %v8755_v28 = vld [vmem:[#allocation8 + $0xb6c] ss:$48 sps:$4 sm:$0xff]  }
 0x25d   :  { %7923 = vmatprep.mubr.msk.f32.mxu0 %vm9217_vm0, %v9216_v23 }
 0x25f   :  { %2986 = vmatpush1.bf16.msra.mxu1 %v8708_v51 }
 0x260   :  { %2998 = vmatprep.subr.bf16.mxu1 %v8713_v52 }
 0x262   :  { %2988 = vmatmul.mubr.bf16.vlgmr.msra.gmra.mrb[8].mxu1 %v9387_v6  ;;  %v8726_v6 = vld [vmem:[#allocation8 + $0x808] ss:$48 sps:$4 sm:$0xff]  }
 0x263   :  { %2999 = vmatpush1.bf16.msra.mxu1 %v8711_v53  ;;  %3030 = vmatprep.mubr.bf16.mxu1 %v9389_v9  ;;  %v8729_v9 = vld [vmem:[#allocation8 + $0x868] ss:$48 sps:$4 sm:$0xff]  }
 0x264   :  { %3000 = vmatprep.subr.bf16.mxu1 %v8716_v54 }
 0x267   :  { %3001 = vmatpush1.bf16.msra.mxu1 %v8714_v55 }
 0x268   :  { %3002 = vmatprep.subr.bf16.mxu1 %v8719_v59 }
 0x26b   :  { %3003 = vmatpush1.bf16.msra.mxu1 %v8717_v60 }
 0x26c   :  { %3004 = vmatprep.subr.bf16.mxu1 %v8722_v62 }
 0x26f   :  { %3005 = vmatpush1.bf16.msra.mxu1 %v8720_v63 }
 0x270   :  { %3006 = vmatprep.subr.bf16.mxu1 %v8725_v0 }
 0x273   :  { %3007 = vmatpush1.bf16.msra.mxu1 %v8723_v1 }
 0x274   :  { %3008 = vmatprep.subr.bf16.mxu1 %v8728_v4 }
 0x277   :  { %3009 = vmatpush1.bf16.msra.mxu1 %v8726_v6 }
 0x278   :  { %3010 = vmatprep.subr.bf16.mxu1 %v8731_v7 }
 0x27b   :  { %3011 = vmatpush1.bf16.msra.mxu1 %v8729_v9 }
 0x27c   :  { %3012 = vmatprep.subr.bf16.mxu1 %v8734_v11 }
 0x27f   :  { %3013 = vmatpush1.bf16.msra.mxu1 %v8732_v10 }
 0x280   :  { %3014 = vmatprep.subr.bf16.mxu1 %v8737_v13 }
 0x283   :  { %3015 = vmatpush1.bf16.msra.mxu1 %v8735_v12 }
 0x284   :  { %3016 = vmatprep.subr.bf16.mxu1 %v8740_v16 }
 0x287   :  { %3017 = vmatpush1.bf16.msra.mxu1 %v8738_v15  ;;  %v9484_v15 = vpop.f32.mrb[0].mxu1 }
 0x288   :  { %3018 = vmatprep.subr.bf16.mxu1 %v8743_v18  ;;  %v9486_v16 = vpop.f32.mrb[1].mxu1 }
 0x289   :  { %v9488_v18 = vpop.f32.mrb[2].mxu1 }
 0x28b   :  { %3019 = vmatpush1.bf16.msra.mxu1 %v8741_v20  ;;  %v9490_v20 = vpop.f32.mrb[3].mxu1 }
 0x28c   :  { %3020 = vmatprep.subr.bf16.mxu1 %v8746_v22 }
 0x28f   :  { %3021 = vmatpush1.bf16.msra.mxu1 %v8744_v24 }
 0x290   :  { %3022 = vmatprep.subr.bf16.mxu1 %v8749_v25 }
 0x293   :  { %3023 = vmatpush1.bf16.msra.mxu1 %v8747_v57 }
 0x294   :  { %3024 = vmatprep.subr.bf16.mxu1 %v8752_v27 }
 0x297   :  { %3025 = vmatpush1.bf16.msra.mxu1 %v8750_v61 }
 0x298   :  { %3026 = vmatprep.subr.bf16.mxu1 %v8755_v28 }
 0x29b   :  { %3027 = vmatpush1.bf16.msra.mxu1 %v8753_v40 }
 0x29c   :  { %3028 = vmatprep.subr.bf16.mxu1 %v8758_v33 }
 0x29f   :  { %3029 = vmatpush1.bf16.msra.mxu1 %v8756_v32 }
 0x2a0   :  { %7906 = vmatprep.subr.mxu1 %v9216_v23 }
 0x2a2   :  { %3031 = vmatmul.mubr.bf16.vlgmr.msra.gmra.mrb[8].mxu1 %v9403_v21 }
 0x2a3   :  { %7908 = vmatprep.mubr.msk.f32.mxu1 %vm9217_vm0, %v9216_v23 }
 0x2c7   :  { %v3385_v30 = vpop.permute.xlu0 %3384 }
 0x2c8   :  { %7922 = vmatpush3.xpose.msk.msra.mxu0 %vm3041_vm1, %v3385_v30 }
 0x2c9   :  { %v3552_v29 = vpop.permute.xlu1 %3551  ;;  %7931 = vmatprep.subr.mxu0 %v9216_v23 }
 0x2cb   :  { %v3383_v42 = vpop.permute.xlu0 %3382 }
 0x2cc   :  { %7924 = vmatmul.mubr.msk.f32.vlgmr.msra.gmra.mrb[16].mxu0 %vm3041_vm1, %v3383_v42 }
 0x2cd   :  { %7932 = vmatpush3.xpose.msk.msra.mxu0 %vm3041_vm1, %v3552_v29  ;;  %7933 = vmatprep.mubr.msk.f32.mxu0 %vm9217_vm0, %v9216_v23  ;;  %v3550_v35 = vpop.permute.xlu1 %3549 }
 0x2d0   :  { %7934 = vmatmul.mubr.msk.f32.vlgmr.msra.gmra.mrb[18].mxu0 %vm3041_vm1, %v3550_v35  ;;  %v9500_v35 = vsub.s32 2, %v9411_v2 }
 0x2d2   :  { %v2946_v38 = vpop.f32.mrb[8].mxu0 }
 0x2d3   :  { %v8077_v17 = vadd.f32 %v2946_v38, %v2212_v37  ;;  %v9468_v41 = vpop.f32.mrb[9].mxu0  ;;  %v9505_v38 = vsub.s32 3, %v9411_v2 }
 0x2d4   :  { %v2950_v43 = vpop.f32.mrb[10].mxu0 }
 0x2d5   :  { %v9472_v56 = vadd.f32 %v2950_v43, %v2212_v37  ;;  %v2952_v44 = vpop.f32.mrb[11].mxu0  ;;  %7907 = vmatpush3.msra.mxu1 %v8077_v17 }
 0x2d6   :  { %v9475_v58 = vadd.f32 %v2952_v44, %v9465_v39  ;;  %7916 = vmatprep.subr.mxu1 %v9216_v23  ;;  %v9513_v44 = vrot.slane %v9451_v34, %v9500_v35 }
 0x2f4   :  { %v9497_v32 = vpop.f32.mrb[4].mxu1 }
 0x2f5   :  { %v9502_v37 = vpop.f32.mrb[5].mxu1 }
 0x2f6   :  { %v9507_v43 = vpop.f32.mrb[6].mxu1 }
 0x32b   :  { %v3114_v45 = vpop.f32.mrb[12].mxu0 }
 0x32c   :  { %v3118_v46 = vmul.f32 0.125, %v3114_v45  ;;  %v7905_v21 = vpop.f32.mrb[13].mxu0 }
 0x32e   :  { %v3120_v47 = vsel %vm3119_vm2, %v3118_v46, -inf }
 0x32f   :  { %3121 = vmax.xlane.f32.xlu0 %v3120_v47  ;;  %v3276_v48 = vpop.f32.mrb[14].mxu0 }
 0x330   :  { %v3280_v49 = vmul.f32 0.125, %v3276_v48  ;;  %v7915_v50 = vpop.f32.mrb[15].mxu0 }
 0x332   :  { %v3281_v51 = vsel %vm3119_vm2, %v3280_v49, -inf }
 0x333   :  { %3282 = vmax.xlane.f32.xlu1 %v3281_v51 }
 0x39f   :  { %v3456_v52 = vpop.f32.mrb[16].mxu0 }
 0x3a0   :  { %v3460_v53 = vmul.f32 0.125, %v3456_v52  ;;  %v7925_v54 = vpop.f32.mrb[17].mxu0 }
 0x3a1   :  { %v8761_v54 = vld [vmem:[#allocation11 + $0x84] ss:$16 sps:$4 sm:$0xff]  }
 0x3a2   :  { %v3461_v55 = vsel %vm3119_vm2, %v3460_v53, -inf  ;;  %3816 = vmatprep.subr.bf16.mxu0 %v8761_v54 }
 0x3a3   :  { %3462 = vmax.xlane.f32.xlu0 %v3461_v55  ;;  %v3623_v59 = vpop.f32.mrb[18].mxu0  ;;  %v8767_v55 = vld [vmem:[#allocation11 + $0xa4] ss:$16 sps:$4 sm:$0xff]  }
 0x3a4   :  { %v3627_v60 = vmul.f32 0.125, %v3623_v59  ;;  %v7935_v62 = vpop.f32.mrb[19].mxu0  ;;  %v8765_v59 = vld [vmem:[#allocation11 + $0xa0] ss:$16 sps:$4 sm:$0xff]  }
 0x3a6   :  { %v3628_v63 = vsel %vm3119_vm2, %v3627_v60, -inf }
 0x3a7   :  { %3629 = vmax.xlane.f32.xlu0 %v3628_v63 }
 0x3bc   :  { %v3122_v0 = vpop.xlane.xlu0 %3121 }
 0x3bd   :  { %v3123_v1 = vsub.f32 %v3118_v46, %v3122_v0  ;;  %v9519_v46 = vrot.slane %v9451_v34, %v9505_v38 }
 0x3bf   :  { %v3124_v4 = vmul.f32 1.442695, %v3123_v1 }
 0x3c0   :  { %v3283_v6 = vpop.xlane.xlu1 %3282 }
 0x3c1   :  { %8951 = vpow2.f32 %v3124_v4  ;;  %v3284_v7 = vsub.f32 %v3280_v49, %v3283_v6  ;;  %v8764_v6 = vld [vmem:[#allocation11 + $0x8c] ss:$16 sps:$4 sm:$0xff]  }
 0x3c3   :  { %v3285_v9 = vmul.f32 1.442695, %v3284_v7 }
 0x3c5   :  { %8953 = vpow2.f32 %v3285_v9 }
 0x3cb   :  { %v8952_v10 = vpop.eup %8951 }
 0x3cc   :  { %v3126_v11 = vsel %vm3119_vm2, %v8952_v10, 0.0 }
 0x3cd   :  { %3127 = vadd.xlane.f32.xlu1 %v3126_v11 }
 0x3cf   :  { %v8954_v12 = vpop.eup %8953 }
 0x3d0   :  { %v3287_v13 = vsel %vm3119_vm2, %v8954_v12, 0.0 }
 0x3d1   :  { %3288 = vadd.xlane.f32.xlu0 %v3287_v13  ;;  %v8768_v13 = vld [vmem:[#allocation11 + $0xa8] ss:$16 sps:$4 sm:$0xff]  }
 0x430   :  { %v3463_v22 = vpop.xlane.xlu0 %3462 }
 0x431   :  { %v3464_v24 = vsub.f32 %v3460_v53, %v3463_v22  ;;  %v8759_v53 = vld [vmem:[#allocation11 + $0x80] ss:$16 sps:$4 sm:$0xff]   ;;  %v8776_v22 = vld [vmem:[#allocation11 + $0xcc] ss:$16 sps:$4 sm:$0xff]  }
 0x432   :  { %3817 = vmatpush1.bf16.msra.mxu0 %v8759_v53  ;;  %v8786_v53 = vld [vmem:[#allocation11 + $0x8] ss:$16 sps:$4 sm:$0xff]  }
 0x433   :  { %v3465_v25 = vmul.f32 1.442695, %v3464_v24  ;;  %3818 = vmatprep.subr.bf16.mxu0 %v8767_v55  ;;  %v8774_v24 = vld [vmem:[#allocation11 + $0xc8] ss:$16 sps:$4 sm:$0xff]  }
 0x434   :  { %v3630_v57 = vpop.xlane.xlu0 %3629 }
 0x435   :  { %8955 = vpow2.f32 %v3465_v25  ;;  %v3631_v27 = vsub.f32 %v3627_v60, %v3630_v57  ;;  %v8773_v60 = vld [vmem:[#allocation11 + $0xc4] ss:$16 sps:$4 sm:$0xff]   ;;  %v8777_v25 = vld [vmem:[#allocation11 + $0xe0] ss:$16 sps:$4 sm:$0xff]  }
 0x436   :  { %3819 = vmatpush1.bf16.msra.mxu0 %v8765_v59  ;;  %v8779_v57 = vld [vmem:[#allocation11 + $0xe4] ss:$16 sps:$4 sm:$0xff]  }
 0x437   :  { %v3632_v61 = vmul.f32 1.442695, %v3631_v27  ;;  %3820 = vmatprep.subr.bf16.mxu0 %v8773_v60  ;;  %v8780_v27 = vld [vmem:[#allocation11 + $0xe8] ss:$16 sps:$4 sm:$0xff]   ;;  %v8791_v59 = vld [vmem:[#allocation11 + $0x24] ss:$16 sps:$4 sm:$0xff]  }
 0x438   :  { %v8794_v60 = vld [vmem:[#allocation11 + $0x2c] ss:$16 sps:$4 sm:$0xff]  }
 0x439   :  { %8957 = vpow2.f32 %v3632_v61  ;;  %v8782_v61 = vld [vmem:[#allocation11 + $0xec] ss:$16 sps:$4 sm:$0xff]  }
 0x43f   :  { %v8956_v28 = vpop.eup %8955 }
 0x440   :  { %v3467_v30 = vsel %vm3119_vm2, %v8956_v28, 0.0 }
 0x441   :  { %3468 = vadd.xlane.f32.xlu1 %v3467_v30  ;;  %v9219_v30 = vmov 0  }
 0x442   :  { %3848 = vmatprep.mubr.bf16.mxu0 %v9219_v30 }
 0x443   :  { %v8958_v40 = vpop.eup %8957 }
 0x444   :  { %v3634_v33 = vsel %vm3119_vm2, %v8958_v40, 0.0 }
 0x445   :  { %3635 = vadd.xlane.f32.xlu0 %v3634_v33 }
 0x452   :  { %3473 = vrot.lane.b32.xlu1 %v8077_v17, %s9218_s6  ;;  %v9509_v17 = vpop.f32.mrb[7].mxu1 }
 0x453   :  { %v9515_v45 = vpop.f32.mrb[8].mxu1 }
 0x454   :  { %v9521_v21 = vpop.f32.mrb[9].mxu1 }
 0x455   :  { %v3036_v47 = vpop.f32.mrb[10].mxu1 }
 0x456   :  { %v9524_v2 = vadd.f32 %v3036_v47, %v9513_v44  ;;  %v3038_v49 = vpop.f32.mrb[11].mxu1 }
 0x457   :  { %v9527_v51 = vadd.f32 %v3038_v49, %v9519_v46 }
 0x45a   :  { %v3128_v29 = vpop.xlane.xlu1 %3127 }
 0x45b   :  { %8959 = vrcp.f32 %v3128_v29  ;;  %3640 = vrot.lane.b32.xlu0 %v9472_v56, %s9218_s6 }
 0x45e   :  { %v3289_v42 = vpop.xlane.xlu0 %3288 }
 0x45f   :  { %8961 = vrcp.f32 %v3289_v42 }
 0x465   :  { %v8960_v48 = vpop.eup %8959 }
 0x466   :  { %v3130_v50 = vmul.f32 %v8960_v48, %v8952_v10  ;;  %v8762_v10 = vld [vmem:[#allocation11 + $0x88] ss:$16 sps:$4 sm:$0xff]  }
 0x468   :  { %7909 = vmatmul.mubr.msk.f32.vlgmr.msra.gmra.mrb[12].mxu1 %vm3119_vm2, %v3130_v50 }
 0x469   :  { %v8962_v52 = vpop.eup %8961  ;;  %7917 = vmatpush3.msra.mxu1 %v9472_v56  ;;  %7918 = vmatprep.mubr.msk.f32.mxu1 %vm9217_vm0, %v9216_v23  ;;  %v8771_v56 = vld [vmem:[#allocation11 + $0xc0] ss:$16 sps:$4 sm:$0xff]  }
 0x46a   :  { %v3291_v34 = vmul.f32 %v8962_v52, %v8954_v12  ;;  %7926 = vmatprep.subr.mxu1 %v9216_v23  ;;  %3821 = vmatpush1.bf16.msra.mxu0 %v8771_v56  ;;  %v8770_v12 = vld [vmem:[#allocation11 + $0xac] ss:$16 sps:$4 sm:$0xff]   ;;  %v8789_v56 = vld [vmem:[#allocation11 + $0x20] ss:$16 sps:$4 sm:$0xff]  }
 0x46b   :  { %3822 = vmatprep.subr.bf16.mxu0 %v8779_v57 }
 0x46c   :  { %7919 = vmatmul.mubr.msk.f32.vlgmr.msra.gmra.mrb[14].mxu1 %vm3119_vm2, %v3291_v34  ;;  %v8783_v34 = vld [vmem:[#allocation11] ss:$16 sps:$4 sm:$0xff]  }
 0x46d   :  { %7928 = vmatprep.mubr.msk.f32.mxu1 %vm9217_vm0, %v9216_v23 }
 0x46e   :  { %3823 = vmatpush1.bf16.msra.mxu0 %v8777_v25 }
 0x4ce   :  { %v3469_v62 = vpop.xlane.xlu1 %3468 }
 0x4cf   :  { %8963 = vrcp.f32 %v3469_v62  ;;  %v8792_v62 = vld [vmem:[#allocation11 + $0x28] ss:$16 sps:$4 sm:$0xff]  }
 0x4d2   :  { %v3474_v63 = vpop.permute.xlu1 %3473  ;;  %v3636_v0 = vpop.xlane.xlu0 %3635 }
 0x4d3   :  { %8965 = vrcp.f32 %v3636_v0  ;;  %7927 = vmatpush3.msra.mxu1 %v3474_v63  ;;  %v8797_v63 = vld [vmem:[#allocation11 + $0x44] ss:$16 sps:$4 sm:$0xff]   ;;  %v8800_v0 = vld [vmem:[#allocation11 + $0x4c] ss:$16 sps:$4 sm:$0xff]  }
 0x4d4   :  { %7936 = vmatprep.subr.mxu1 %v9216_v23 }
 0x4d6   :  { %v3641_v7 = vpop.permute.xlu0 %3640 }
 0x4d9   :  { %v8964_v1 = vpop.eup %8963 }
 0x4da   :  { %v3471_v4 = vmul.f32 %v8964_v1, %v8956_v28  ;;  %v8785_v28 = vld [vmem:[#allocation11 + $0x4] ss:$16 sps:$4 sm:$0xff]   ;;  %v8795_v1 = vld [vmem:[#allocation11 + $0x40] ss:$16 sps:$4 sm:$0xff]  }
 0x4db   :  { %3985 = vmatprep.subr.bf16.mxu0 %v8785_v28 }
 0x4dc   :  { %7929 = vmatmul.mubr.msk.f32.vlgmr.msra.gmra.mrb[16].mxu1 %vm3119_vm2, %v3471_v4  ;;  %v8798_v4 = vld [vmem:[#allocation11 + $0x48] ss:$16 sps:$4 sm:$0xff]  }
 0x4dd   :  { %v8966_v9 = vpop.eup %8965  ;;  %7937 = vmatpush3.msra.mxu1 %v3641_v7  ;;  %7938 = vmatprep.mubr.msk.f32.mxu1 %vm9217_vm0, %v9216_v23  ;;  %v8806_v7 = vld [vmem:[#allocation11 + $0x6c] ss:$16 sps:$4 sm:$0xff]  }
 0x4de   :  { %v3638_v11 = vmul.f32 %v8966_v9, %v8958_v40  ;;  %3859 = vmatprep.subr.bf16.mxu1 %v8764_v6  ;;  %v8788_v40 = vld [vmem:[#allocation11 + $0xc] ss:$16 sps:$4 sm:$0xff]   ;;  %v8803_v6 = vld [vmem:[#allocation11 + $0x64] ss:$16 sps:$4 sm:$0xff]   ;;  %v8801_v9 = vld [vmem:[#allocation11 + $0x60] ss:$16 sps:$4 sm:$0xff]  }
 0x4e0   :  { %7939 = vmatmul.mubr.msk.f32.vlgmr.msra.gmra.mrb[18].mxu1 %vm3119_vm2, %v3638_v11  ;;  %v9552_v11 = vadd.f32 %v9468_v41, %v9465_v39  ;;  %v292_v39 = vrot.slane %v9418_v8, %v9459_v14 }
 0x4e1   :  { %3860 = vmatpush1.bf16.msra.mxu1 %v8762_v10  ;;  %3891 = vmatprep.mubr.bf16.mxu1 %v9219_v30  ;;  %v8804_v10 = vld [vmem:[#allocation11 + $0x68] ss:$16 sps:$4 sm:$0xff]  }
 0x4e2   :  { %3861 = vmatprep.subr.bf16.mxu1 %v8770_v12  ;;  %v1254_v12 = vrot.slane %v9413_v3, %v9459_v14  ;;  %v8062_v3 = vadd.f32 %v9397_v31, %v292_v39 }
 0x4e4   :  { %v8070_v41 = vadd.f32 %v9425_v19, %v1254_v12 }
 0x4e5   :  { %3862 = vmatpush1.bf16.msra.mxu1 %v8768_v13  ;;  %v8072_v13 = vadd.f32 %v9428_v26, %v1254_v12  ;;  %v8827_v12 = vld [vmem:[#allocation11 + $0x14c] ss:$16 sps:$4 sm:$0xff]  }
 0x4e6   :  { %3863 = vmatprep.subr.bf16.mxu1 %v8776_v22  ;;  %v8064_v22 = vadd.f32 %v9401_v36, %v292_v39  ;;  %v8825_v39 = vld [vmem:[#allocation11 + $0x148] ss:$16 sps:$4 sm:$0xff]  }
 0x4e9   :  { %3864 = vmatpush1.bf16.msra.mxu1 %v8774_v24 }
 0x4ea   :  { %3865 = vmatprep.subr.bf16.mxu1 %v8782_v61 }
 0x4ed   :  { %3866 = vmatpush1.bf16.msra.mxu1 %v8780_v27 }
 0x4ee   :  { %4028 = vmatprep.subr.bf16.mxu1 %v8788_v40 }
 0x53b   :  { %v3200_v33 = vpop.f32.mrb[12].mxu1 }
 0x53c   :  { %v7910_v29 = vpop.f32.mrb[13].mxu1 }
 0x53f   :  { %v3361_v42 = vpop.f32.mrb[14].mxu1 }
 0x540   :  { %v3365_v47 = vpack.c.bf16 %v3361_v42, %v3200_v33  ;;  %v7920_v48 = vpop.f32.mrb[15].mxu1 }
 0x5af   :  { %v3545_v49 = vpop.f32.mrb[16].mxu1 }
 0x5b0   :  { %v7930_v50 = vpop.f32.mrb[17].mxu1 }
 0x5b1   :  { %v8807_v50 = vld [vmem:[#allocation11 + $0x100] ss:$16 sps:$4 sm:$0xff]  }
 0x5b3   :  { %v3712_v52 = vpop.f32.mrb[18].mxu1 }
 0x5b4   :  { %v3716_v54 = vpack.c.bf16 %v3712_v52, %v3545_v49  ;;  %v7940_v55 = vpop.f32.mrb[19].mxu1  ;;  %v8809_v52 = vld [vmem:[#allocation11 + $0x104] ss:$16 sps:$4 sm:$0xff]  }
 0x5b5   :  { %v8816_v55 = vld [vmem:[#allocation11 + $0x140] ss:$16 sps:$4 sm:$0xff]  }
 0x5b6   :  { %7673 = vmatmul.mubr.msk.bf16.vlgmr.msra.gmra.mrb[20].mxu0 %vm3041_vm1, %v3716_v54  ;;  %7674 = vmatmul.mubr.msk.bf16.vlgmr.msra.gmra.mrb[20].mxu1 %vm3041_vm1, %v3716_v54  ;;  %v8818_v54 = vld [vmem:[#allocation11 + $0x144] ss:$16 sps:$4 sm:$0xff]  }
 0x5b7   :  { %3986 = vmatpush1.bf16.msra.mxu0 %v8783_v34  ;;  %4029 = vmatpush1.bf16.msra.mxu1 %v8786_v53  ;;  %v8812_v34 = vld [vmem:[#allocation11 + $0x124] ss:$16 sps:$4 sm:$0xff]   ;;  %v8810_v53 = vld [vmem:[#allocation11 + $0x120] ss:$16 sps:$4 sm:$0xff]  }
 0x5b8   :  { %3987 = vmatprep.subr.bf16.mxu0 %v8791_v59  ;;  %4030 = vmatprep.subr.bf16.mxu1 %v8794_v60  ;;  %v8824_v59 = vld [vmem:[#allocation11 + $0x164] ss:$16 sps:$4 sm:$0xff]   ;;  %v8822_v60 = vld [vmem:[#allocation11 + $0x160] ss:$16 sps:$4 sm:$0xff]  }
 0x5b9   :  { %4017 = vmatprep.mubr.bf16.mxu0 %v9219_v30  ;;  %4060 = vmatprep.mubr.bf16.mxu1 %v9219_v30 }
 0x5bb   :  { %3988 = vmatpush1.bf16.msra.mxu0 %v8789_v56  ;;  %4031 = vmatpush1.bf16.msra.mxu1 %v8792_v62 }
 0x5bc   :  { %3989 = vmatprep.subr.bf16.mxu0 %v8797_v63  ;;  %4032 = vmatprep.subr.bf16.mxu1 %v8800_v0 }
 0x5bf   :  { %3990 = vmatpush1.bf16.msra.mxu0 %v8795_v1  ;;  %4033 = vmatpush1.bf16.msra.mxu1 %v8798_v4  ;;  %v8815_v1 = vld [vmem:[#allocation11 + $0x10c] ss:$16 sps:$4 sm:$0xff]  }
 0x5c0   :  { %3991 = vmatprep.subr.bf16.mxu0 %v8803_v6  ;;  %4034 = vmatprep.subr.bf16.mxu1 %v8806_v7  ;;  %v8813_v6 = vld [vmem:[#allocation11 + $0x108] ss:$16 sps:$4 sm:$0xff]  }
 0x5c3   :  { %3992 = vmatpush1.bf16.msra.mxu0 %v8801_v9  ;;  %4035 = vmatpush1.bf16.msra.mxu1 %v8804_v10  ;;  %v8821_v9 = vld [vmem:[#allocation11 + $0x12c] ss:$16 sps:$4 sm:$0xff]   ;;  %v8819_v10 = vld [vmem:[#allocation11 + $0x128] ss:$16 sps:$4 sm:$0xff]  }
 0x5c4   :  { %7946 = vmatprep.subr.mxu1 %v9216_v23  ;;  %7941 = vmatprep.subr.mxu0 %v9216_v23 }
 0x5c6   :  { %7691 = vmatmul.mubr.msk.bf16.vlgmr.msra.gmra.mrb[20].mxu0 %vm3041_vm1, %v3365_v47  ;;  %7692 = vmatmul.mubr.msk.bf16.vlgmr.msra.gmra.mrb[20].mxu1 %vm3041_vm1, %v3365_v47 }
 0x5c7   :  { %7947 = vmatpush3.msra.mxu1 %v9552_v11  ;;  %7943 = vmatprep.mubr.msk.f32.mxu0 %vm9217_vm0, %v9216_v23 }
 0x5c8   :  { %7948 = vmatprep.mubr.msk.f32.mxu1 %vm9217_vm0, %v9216_v23  ;;  %7956 = vmatprep.subr.mxu1 %v9216_v23 }
 0x5cc   :  { %7942 = vmatpush3.xpose.msk.msra.mxu0 %vm3041_vm1, %v8070_v41 }
 0x5cd   :  { %7951 = vmatprep.subr.mxu0 %v9216_v23 }
 0x5cf   :  { %7944 = vmatmul.mubr.msk.f32.vlgmr.msra.gmra.mrb[24].mxu0 %vm3041_vm1, %v8062_v3 }
 0x5d0   :  { %7952 = vmatpush3.xpose.msk.msra.mxu0 %vm3041_vm1, %v8072_v13  ;;  %7953 = vmatprep.mubr.msk.f32.mxu0 %vm9217_vm0, %v9216_v23 }
 0x5d1   :  { %4493 = vmatprep.subr.bf16.mxu0 %v8809_v52 }
 0x5d3   :  { %7954 = vmatmul.mubr.msk.f32.vlgmr.msra.gmra.mrb[26].mxu0 %vm3041_vm1, %v8064_v22 }
 0x5d4   :  { %4525 = vmatprep.mubr.bf16.mxu0 %v9219_v30  ;;  %4494 = vmatpush1.bf16.msra.mxu0 %v8807_v50 }
 0x5d5   :  { %4495 = vmatprep.subr.bf16.mxu0 %v8812_v34 }
 0x5d8   :  { %4496 = vmatpush1.bf16.msra.mxu0 %v8810_v53 }
 0x5d9   :  { %4497 = vmatprep.subr.bf16.mxu0 %v8818_v54 }
 0x5dc   :  { %4498 = vmatpush1.bf16.msra.mxu0 %v8816_v55 }
 0x5dd   :  { %4499 = vmatprep.subr.bf16.mxu0 %v8824_v59 }
 0x5e0   :  { %4500 = vmatpush1.bf16.msra.mxu0 %v8822_v60 }
 0x5e1   :  { %7961 = vmatprep.subr.mxu0 %v9216_v23 }
 0x6a2   :  { %v4143_v8 = vpop.f32.mrb[24].mxu0 }
 0x6a3   :  { %v4147_v19 = vmul.f32 0.125, %v4143_v8  ;;  %v7945_v31 = vpop.f32.mrb[25].mxu0 }
 0x6a5   :  { %v4148_v24 = vsel %vm3119_vm2, %v4147_v19, -inf }
 0x6a6   :  { %4149 = vmax.xlane.f32.xlu1 %v4148_v24  ;;  %v4304_v26 = vpop.f32.mrb[26].mxu0 }
 0x6a7   :  { %v4308_v25 = vmul.f32 0.125, %v4304_v26  ;;  %v7955_v57 = vpop.f32.mrb[27].mxu0 }
 0x6a9   :  { %v4309_v27 = vsel %vm3119_vm2, %v4308_v25, -inf }
 0x6aa   :  { %4310 = vmax.xlane.f32.xlu0 %v4309_v27 }
 0x733   :  { %v4150_v61 = vpop.xlane.xlu1 %4149 }
 0x734   :  { %v4151_v28 = vsub.f32 %v4147_v19, %v4150_v61 }
 0x736   :  { %v4152_v40 = vmul.f32 1.442695, %v4151_v28 }
 0x737   :  { %v4311_v36 = vpop.xlane.xlu0 %4310 }
 0x738   :  { %8967 = vpow2.f32 %v4152_v40  ;;  %v4312_v33 = vsub.f32 %v4308_v25, %v4311_v36 }
 0x73a   :  { %v4313_v29 = vmul.f32 1.442695, %v4312_v33 }
 0x73c   :  { %8969 = vpow2.f32 %v4313_v29 }
 0x742   :  { %v8968_v42 = vpop.eup %8967 }
 0x743   :  { %v4154_v47 = vsel %vm3119_vm2, %v8968_v42, 0.0 }
 0x744   :  { %4155 = vadd.xlane.f32.xlu1 %v4154_v47 }
 0x746   :  { %v8970_v48 = vpop.eup %8969 }
 0x747   :  { %v4315_v49 = vsel %vm3119_vm2, %v8970_v48, 0.0 }
 0x748   :  { %4316 = vadd.xlane.f32.xlu0 %v4315_v49 }
 0x755   :  { %4589 = vrot.lane.b32.xlu1 %v8070_v41, %s9218_s6  ;;  %v8828_v41 = vld [vmem:[#allocation11 + $0x168] ss:$16 sps:$4 sm:$0xff]  }
 0x759   :  { %4756 = vrot.lane.b32.xlu1 %v8072_v13, %s9218_s6 }
 0x75d   :  { %4754 = vrot.lane.b32.xlu1 %v8064_v22, %s9218_s6 }
 0x75e   :  { %4587 = vrot.lane.b32.xlu0 %v8062_v3, %s9218_s6  ;;  %v8830_v3 = vld [vmem:[#allocation11 + $0x16c] ss:$16 sps:$4 sm:$0xff]  }
 0x7d1   :  { %v4156_v56 = vpop.xlane.xlu1 %4155 }
 0x7d2   :  { %8971 = vrcp.f32 %v4156_v56  ;;  %v8833_v56 = vld [vmem:[#allocation11 + $0x184] ss:$16 sps:$4 sm:$0xff]  }
 0x7d5   :  { %v4317_v62 = vpop.xlane.xlu0 %4316  ;;  %v4590_v24 = vpop.permute.xlu1 %4589 }
 0x7d6   :  { %8973 = vrcp.f32 %v4317_v62  ;;  %v8836_v62 = vld [vmem:[#allocation11 + $0x1a4] ss:$16 sps:$4 sm:$0xff]  }
 0x7d9   :  { %v4757_v26 = vpop.permute.xlu1 %4756  ;;  %v4588_v25 = vpop.permute.xlu0 %4587 }
 0x7dc   :  { %v8972_v63 = vpop.eup %8971 }
 0x7dd   :  { %v4158_v0 = vmul.f32 %v8972_v63, %v8968_v42  ;;  %v4755_v57 = vpop.permute.xlu1 %4754  ;;  %v8834_v63 = vld [vmem:[#allocation11 + $0x1a0] ss:$16 sps:$4 sm:$0xff]  }
 0x7df   :  { %7949 = vmatmul.mubr.msk.f32.vlgmr.msra.gmra.mrb[24].mxu1 %vm3119_vm2, %v4158_v0  ;;  %v8842_v0 = vld [vmem:[#allocation11 + $0x1c4] ss:$16 sps:$4 sm:$0xff]  }
 0x7e0   :  { %v8974_v4 = vpop.eup %8973  ;;  %7957 = vmatpush3.msra.mxu1 %v9475_v58  ;;  %7958 = vmatprep.mubr.msk.f32.mxu1 %vm9217_vm0, %v9216_v23 }
 0x7e1   :  { %v4319_v7 = vmul.f32 %v8974_v4, %v8970_v48  ;;  %4536 = vmatprep.subr.bf16.mxu1 %v8815_v1  ;;  %v8840_v1 = vld [vmem:[#allocation11 + $0x1c0] ss:$16 sps:$4 sm:$0xff]   ;;  %v8848_v4 = vld [vmem:[#allocation11 + $0x1e4] ss:$16 sps:$4 sm:$0xff]  }
 0x7e3   :  { %7959 = vmatmul.mubr.msk.f32.vlgmr.msra.gmra.mrb[26].mxu1 %vm3119_vm2, %v4319_v7 }
 0x7e4   :  { %4537 = vmatpush1.bf16.msra.mxu1 %v8813_v6  ;;  %4568 = vmatprep.mubr.bf16.mxu1 %v9219_v30  ;;  %v8846_v6 = vld [vmem:[#allocation11 + $0x1e0] ss:$16 sps:$4 sm:$0xff]  }
 0x7e5   :  { %4538 = vmatprep.subr.bf16.mxu1 %v8821_v9 }
 0x7e8   :  { %4539 = vmatpush1.bf16.msra.mxu1 %v8819_v10 }
 0x7e9   :  { %4540 = vmatprep.subr.bf16.mxu1 %v8827_v12  ;;  %v8839_v12 = vld [vmem:[#allocation11 + $0x18c] ss:$16 sps:$4 sm:$0xff]  }
 0x7ec   :  { %4541 = vmatpush1.bf16.msra.mxu1 %v8825_v39 }
 0x7ed   :  { %4542 = vmatprep.subr.bf16.mxu1 %v8830_v3  ;;  %v8837_v3 = vld [vmem:[#allocation11 + $0x188] ss:$16 sps:$4 sm:$0xff]  }
 0x7f0   :  { %4543 = vmatpush1.bf16.msra.mxu1 %v8828_v41 }
 0x7f1   :  { %7966 = vmatprep.subr.mxu1 %v9216_v23 }
 0x8b2   :  { %v4228_v13 = vpop.f32.mrb[24].mxu1 }
 0x8b3   :  { %v7950_v22 = vpop.f32.mrb[25].mxu1 }
 0x8b4   :  { %v8845_v22 = vld [vmem:[#allocation11 + $0x1ac] ss:$16 sps:$4 sm:$0xff]  }
 0x8b6   :  { %v4389_v8 = vpop.f32.mrb[26].mxu1 }
 0x8b7   :  { %v4393_v19 = vpack.c.bf16 %v4389_v8, %v4228_v13  ;;  %v7960_v31 = vpop.f32.mrb[27].mxu1  ;;  %v8843_v8 = vld [vmem:[#allocation11 + $0x1a8] ss:$16 sps:$4 sm:$0xff]  }
 0x8b8   :  { %v8849_v31 = vld [vmem:[#allocation11 + $0x1c8] ss:$16 sps:$4 sm:$0xff]  }
 0x8b9   :  { %7715 = vmatmul.mubr.msk.bf16.vlgmr.msra.gmra.mrb[20].mxu0 %vm3041_vm1, %v4393_v19  ;;  %7716 = vmatmul.mubr.msk.bf16.vlgmr.msra.gmra.mrb[20].mxu1 %vm3041_vm1, %v4393_v19  ;;  %v8851_v19 = vld [vmem:[#allocation11 + $0x1cc] ss:$16 sps:$4 sm:$0xff]  }
 0x8ba   :  { %7962 = vmatpush3.xpose.msk.msra.mxu0 %vm3041_vm1, %v4590_v24  ;;  %7963 = vmatprep.mubr.msk.f32.mxu0 %vm9217_vm0, %v9216_v23  ;;  %v8852_v24 = vld [vmem:[#allocation11 + $0x1e8] ss:$16 sps:$4 sm:$0xff]  }
 0x8bb   :  { %7971 = vmatprep.subr.mxu0 %v9216_v23  ;;  %7968 = vmatprep.mubr.msk.f32.mxu1 %vm9217_vm0, %v9216_v23 }
 0x8c1   :  { %7964 = vmatmul.mubr.msk.f32.vlgmr.msra.gmra.mrb[28].mxu0 %vm3041_vm1, %v4588_v25 }
 0x8c2   :  { %7972 = vmatpush3.xpose.msk.msra.mxu0 %vm3041_vm1, %v4757_v26  ;;  %7973 = vmatprep.mubr.msk.f32.mxu0 %vm9217_vm0, %v9216_v23  ;;  %v8854_v26 = vld [vmem:[#allocation11 + $0x1ec] ss:$16 sps:$4 sm:$0xff]  }
 0x8c3   :  { %5021 = vmatprep.subr.bf16.mxu0 %v8833_v56 }
 0x8c5   :  { %7974 = vmatmul.mubr.msk.f32.vlgmr.msra.gmra.mrb[30].mxu0 %vm3041_vm1, %v4755_v57 }
 0x8c6   :  { %5053 = vmatprep.mubr.bf16.mxu0 %v9219_v30 }
 0x994   :  { %v4661_v27 = vpop.f32.mrb[28].mxu0 }
 0x995   :  { %v4665_v61 = vmul.f32 0.125, %v4661_v27  ;;  %v7965_v28 = vpop.f32.mrb[29].mxu0  ;;  %v9624_v27 = vld [vmem:[#allocation10 + $0x4] sm:$0xf] }
 0x997   :  { %v4666_v40 = vsel %vm3119_vm2, %v4665_v61, -inf }
 0x998   :  { %4667 = vmax.xlane.f32.xlu0 %v4666_v40  ;;  %v4828_v36 = vpop.f32.mrb[30].mxu0 }
 0x999   :  { %v4832_v33 = vmul.f32 0.125, %v4828_v36  ;;  %v7975_v29 = vpop.f32.mrb[31].mxu0 }
 0x99a   :  { %v9631_v29 = vadd.f32 %v9515_v45, %v9513_v44 }
 0x99b   :  { %v4833_v42 = vsel %vm3119_vm2, %v4832_v33, -inf }
 0x99c   :  { %4834 = vmax.xlane.f32.xlu1 %v4833_v42  ;;  %v9637_v42 = vld [vmem:[#allocation10] sm:$0xf] }
 0x9ad   :  { %4678 = vrot.lane.b32.xlu1 %v9552_v11, %s9218_s6  ;;  %v8831_v11 = vld [vmem:[#allocation11 + $0x180] ss:$16 sps:$4 sm:$0xff]  }
 0x9ae   :  { %5022 = vmatpush1.bf16.msra.mxu0 %v8831_v11 }
 0x9af   :  { %5023 = vmatprep.subr.bf16.mxu0 %v8836_v62 }
 0x9b2   :  { %5024 = vmatpush1.bf16.msra.mxu0 %v8834_v63 }
 0x9b3   :  { %5025 = vmatprep.subr.bf16.mxu0 %v8842_v0 }
 0x9b6   :  { %5026 = vmatpush1.bf16.msra.mxu0 %v8840_v1  ;;  %v8855_v1 = vld [vmem:[#allocation11 + $0x200] ss:$16 sps:$4 sm:$0xff]  }
 0x9b7   :  { %5027 = vmatprep.subr.bf16.mxu0 %v8848_v4  ;;  %v8857_v4 = vld [vmem:[#allocation11 + $0x204] ss:$16 sps:$4 sm:$0xff]  }
 0x9ba   :  { %5028 = vmatpush1.bf16.msra.mxu0 %v8846_v6  ;;  %v8860_v6 = vld [vmem:[#allocation11 + $0x224] ss:$16 sps:$4 sm:$0xff]  }
 0x9bb   :  { %7981 = vmatprep.subr.mxu0 %v9216_v23 }
 0xa25   :  { %v4668_v47 = vpop.xlane.xlu0 %4667 }
 0xa26   :  { %v4669_v48 = vsub.f32 %v4665_v61, %v4668_v47  ;;  %v1258_v61 = vrot.slane %v9624_v27, %v9500_v35  ;;  %v296_v47 = vrot.slane %v9637_v42, %v9500_v35 }
 0xa28   :  { %v4670_v49 = vmul.f32 1.442695, %v4669_v48  ;;  %v8075_v44 = vadd.f32 %v9507_v43, %v1258_v61  ;;  %v8067_v45 = vadd.f32 %v9488_v18, %v296_v47 }
 0xa29   :  { %v4835_v50 = vpop.xlane.xlu1 %4834 }
 0xa2a   :  { %8975 = vpow2.f32 %v4670_v49  ;;  %v4836_v52 = vsub.f32 %v4832_v33, %v4835_v50  ;;  %v8073_v33 = vadd.f32 %v9497_v32, %v1258_v61  ;;  %v8065_v32 = vadd.f32 %v9484_v15, %v296_v47  ;;  %v8876_v61 = vld [vmem:[#allocation11 + $0x268] ss:$16 sps:$4 sm:$0xff]  }
 0xa2c   :  { %v4837_v34 = vmul.f32 1.442695, %v4836_v52 }
 0xa2d   :  { %v4679_v53 = vpop.permute.xlu1 %4678 }
 0xa2e   :  { %8977 = vpow2.f32 %v4837_v34  ;;  %7967 = vmatpush3.msra.mxu1 %v4679_v53 }
 0xa2f   :  { %7976 = vmatprep.subr.mxu1 %v9216_v23 }
 0xa34   :  { %v8976_v54 = vpop.eup %8975 }
 0xa35   :  { %v4672_v55 = vsel %vm3119_vm2, %v8976_v54, 0.0 }
 0xa36   :  { %4673 = vadd.xlane.f32.xlu0 %v4672_v55 }
 0xa38   :  { %v8978_v59 = vpop.eup %8977 }
 0xa39   :  { %v4839_v60 = vsel %vm3119_vm2, %v8978_v59, 0.0 }
 0xa3a   :  { %4840 = vadd.xlane.f32.xlu0 %v4839_v60 }
 0xa50   :  { %4845 = vrot.lane.b32.xlu0 %v9475_v58, %s9218_s6 }
 0xac3   :  { %v4674_v7 = vpop.xlane.xlu0 %4673 }
 0xac4   :  { %8979 = vrcp.f32 %v4674_v7  ;;  %v8858_v7 = vld [vmem:[#allocation11 + $0x220] ss:$16 sps:$4 sm:$0xff]  }
 0xac7   :  { %v4841_v58 = vpop.xlane.xlu0 %4840 }
 0xac8   :  { %8981 = vrcp.f32 %v4841_v58  ;;  %v8866_v58 = vld [vmem:[#allocation11 + $0x244] ss:$16 sps:$4 sm:$0xff]  }
 0xacb   :  { %v4846_v39 = vpop.permute.xlu0 %4845 }
 0xace   :  { %v8980_v9 = vpop.eup %8979 }
 0xacf   :  { %v4676_v10 = vmul.f32 %v8980_v9, %v8976_v54  ;;  %v8864_v9 = vld [vmem:[#allocation11 + $0x240] ss:$16 sps:$4 sm:$0xff]  }
 0xad1   :  { %7969 = vmatmul.mubr.msk.f32.vlgmr.msra.gmra.mrb[28].mxu1 %vm3119_vm2, %v4676_v10  ;;  %v8872_v10 = vld [vmem:[#allocation11 + $0x264] ss:$16 sps:$4 sm:$0xff]  }
 0xad2   :  { %v8982_v41 = vpop.eup %8981  ;;  %7977 = vmatpush3.msra.mxu1 %v4846_v39  ;;  %7978 = vmatprep.mubr.msk.f32.mxu1 %vm9217_vm0, %v9216_v23 }
 0xad3   :  { %v4843_v13 = vmul.f32 %v8982_v41, %v8978_v59  ;;  %5064 = vmatprep.subr.bf16.mxu1 %v8839_v12  ;;  %v8870_v12 = vld [vmem:[#allocation11 + $0x260] ss:$16 sps:$4 sm:$0xff]  }
 0xad5   :  { %7979 = vmatmul.mubr.msk.f32.vlgmr.msra.gmra.mrb[30].mxu1 %vm3119_vm2, %v4843_v13 }
 0xad6   :  { %5065 = vmatpush1.bf16.msra.mxu1 %v8837_v3  ;;  %5096 = vmatprep.mubr.bf16.mxu1 %v9219_v30 }
 0xad7   :  { %5066 = vmatprep.subr.bf16.mxu1 %v8845_v22  ;;  %v8863_v22 = vld [vmem:[#allocation11 + $0x20c] ss:$16 sps:$4 sm:$0xff]  }
 0xada   :  { %5067 = vmatpush1.bf16.msra.mxu1 %v8843_v8 }
 0xadb   :  { %5068 = vmatprep.subr.bf16.mxu1 %v8851_v19  ;;  %v8861_v19 = vld [vmem:[#allocation11 + $0x208] ss:$16 sps:$4 sm:$0xff]  }
 0xade   :  { %5069 = vmatpush1.bf16.msra.mxu1 %v8849_v31 }
 0xadf   :  { %5070 = vmatprep.subr.bf16.mxu1 %v8854_v26  ;;  %v8867_v26 = vld [vmem:[#allocation11 + $0x228] ss:$16 sps:$4 sm:$0xff]  }
 0xae2   :  { %5071 = vmatpush1.bf16.msra.mxu1 %v8852_v24  ;;  %v8869_v24 = vld [vmem:[#allocation11 + $0x22c] ss:$16 sps:$4 sm:$0xff]  }
 0xae3   :  { %7986 = vmatprep.subr.mxu1 %v9216_v23 }
 0xba4   :  { %v4750_v25 = vpop.f32.mrb[28].mxu1 }
 0xba5   :  { %v7970_v57 = vpop.f32.mrb[29].mxu1 }
 0xba6   :  { %v8873_v57 = vld [vmem:[#allocation11 + $0x248] ss:$16 sps:$4 sm:$0xff]  }
 0xba8   :  { %v4917_v28 = vpop.f32.mrb[30].mxu1 }
 0xba9   :  { %v4921_v40 = vpack.c.bf16 %v4917_v28, %v4750_v25  ;;  %v7980_v36 = vpop.f32.mrb[31].mxu1  ;;  %v8875_v25 = vld [vmem:[#allocation11 + $0x24c] ss:$16 sps:$4 sm:$0xff]  }
 0xbaa   :  { %v8878_v28 = vld [vmem:[#allocation11 + $0x26c] ss:$16 sps:$4 sm:$0xff]  }
 0xbab   :  { %7739 = vmatmul.mubr.msk.bf16.vlgmr.msra.gmra.mrb[20].mxu0 %vm3041_vm1, %v4921_v40  ;;  %7740 = vmatmul.mubr.msk.bf16.vlgmr.msra.gmra.mrb[20].mxu1 %vm3041_vm1, %v4921_v40 }
 0xbac   :  { %7982 = vmatpush3.xpose.msk.msra.mxu0 %vm3041_vm1, %v8073_v33  ;;  %7987 = vmatpush3.msra.mxu1 %v9631_v29 }
 0xbad   :  { %7983 = vmatprep.mubr.msk.f32.mxu0 %vm9217_vm0, %v9216_v23  ;;  %7991 = vmatprep.subr.mxu0 %v9216_v23 }
 0xbae   :  { %7988 = vmatprep.mubr.msk.f32.mxu1 %vm9217_vm0, %v9216_v23  ;;  %7996 = vmatprep.subr.mxu1 %v9216_v23 }
 0xbb3   :  { %7984 = vmatmul.mubr.msk.f32.vlgmr.msra.gmra.mrb[32].mxu0 %vm3041_vm1, %v8065_v32 }
 0xbb4   :  { %7992 = vmatpush3.xpose.msk.msra.mxu0 %vm3041_vm1, %v8075_v44  ;;  %7993 = vmatprep.mubr.msk.f32.mxu0 %vm9217_vm0, %v9216_v23 }
 0xbb5   :  { %5537 = vmatprep.subr.bf16.mxu0 %v8857_v4 }
 0xbb7   :  { %7994 = vmatmul.mubr.msk.f32.vlgmr.msra.gmra.mrb[34].mxu0 %vm3041_vm1, %v8067_v45 }
 0xbb8   :  { %5569 = vmatprep.mubr.bf16.mxu0 %v9219_v30  ;;  %5538 = vmatpush1.bf16.msra.mxu0 %v8855_v1 }
 0xbb9   :  { %5539 = vmatprep.subr.bf16.mxu0 %v8860_v6 }
 0xbbc   :  { %5540 = vmatpush1.bf16.msra.mxu0 %v8858_v7  ;;  %v8881_v7 = vld [vmem:[#allocation11 + $0x284] ss:$16 sps:$4 sm:$0xff]  }
 0xbbd   :  { %5541 = vmatprep.subr.bf16.mxu0 %v8866_v58  ;;  %v8884_v58 = vld [vmem:[#allocation11 + $0x2a4] ss:$16 sps:$4 sm:$0xff]  }
 0xbc0   :  { %5542 = vmatpush1.bf16.msra.mxu0 %v8864_v9  ;;  %v8882_v9 = vld [vmem:[#allocation11 + $0x2a0] ss:$16 sps:$4 sm:$0xff]  }
 0xbc1   :  { %5543 = vmatprep.subr.bf16.mxu0 %v8872_v10  ;;  %v8890_v10 = vld [vmem:[#allocation11 + $0x2c4] ss:$16 sps:$4 sm:$0xff]  }
 0xbc4   :  { %5544 = vmatpush1.bf16.msra.mxu0 %v8870_v12  ;;  %v8888_v12 = vld [vmem:[#allocation11 + $0x2c0] ss:$16 sps:$4 sm:$0xff]  }
 0xbc5   :  { %8001 = vmatprep.subr.mxu0 %v9216_v23 }
 0xc86   :  { %v5187_v48 = vpop.f32.mrb[32].mxu0 }
 0xc87   :  { %v5191_v49 = vmul.f32 0.125, %v5187_v48  ;;  %v7985_v50 = vpop.f32.mrb[33].mxu0 }
 0xc89   :  { %v5192_v15 = vsel %vm3119_vm2, %v5191_v49, -inf }
 0xc8a   :  { %5193 = vmax.xlane.f32.xlu1 %v5192_v15  ;;  %v5348_v43 = vpop.f32.mrb[34].mxu0 }
 0xc8b   :  { %v5352_v52 = vmul.f32 0.125, %v5348_v43  ;;  %v7995_v34 = vpop.f32.mrb[35].mxu0 }
 0xc8d   :  { %v5353_v53 = vsel %vm3119_vm2, %v5352_v52, -inf }
 0xc8e   :  { %5354 = vmax.xlane.f32.xlu0 %v5353_v53 }
 0xd17   :  { %v5194_v54 = vpop.xlane.xlu1 %5193 }
 0xd18   :  { %v5195_v55 = vsub.f32 %v5191_v49, %v5194_v54 }
 0xd1a   :  { %v5196_v59 = vmul.f32 1.442695, %v5195_v55 }
 0xd1b   :  { %v5355_v18 = vpop.xlane.xlu0 %5354 }
 0xd1c   :  { %8983 = vpow2.f32 %v5196_v59  ;;  %v5356_v60 = vsub.f32 %v5352_v52, %v5355_v18 }
 0xd1e   :  { %v5357_v11 = vmul.f32 1.442695, %v5356_v60 }
 0xd20   :  { %8985 = vpow2.f32 %v5357_v11 }
 0xd26   :  { %v8984_v56 = vpop.eup %8983 }
 0xd27   :  { %v5198_v62 = vsel %vm3119_vm2, %v8984_v56, 0.0 }
 0xd28   :  { %5199 = vadd.xlane.f32.xlu1 %v5198_v62 }
 0xd2a   :  { %v8986_v63 = vpop.eup %8985 }
 0xd2b   :  { %v5359_v0 = vsel %vm3119_vm2, %v8986_v63, 0.0 }
 0xd2c   :  { %5360 = vadd.xlane.f32.xlu0 %v5359_v0 }
 0xd39   :  { %5633 = vrot.lane.b32.xlu1 %v8073_v33, %s9218_s6 }
 0xd3d   :  { %5800 = vrot.lane.b32.xlu1 %v8075_v44, %s9218_s6 }
 0xd41   :  { %5798 = vrot.lane.b32.xlu1 %v8067_v45, %s9218_s6 }
 0xd42   :  { %5631 = vrot.lane.b32.xlu0 %v8065_v32, %s9218_s6 }
 0xdb5   :  { %v5200_v39 = vpop.xlane.xlu1 %5199 }
 0xdb6   :  { %8987 = vrcp.f32 %v5200_v39  ;;  %v8896_v39 = vld [vmem:[#allocation11 + $0x2e4] ss:$16 sps:$4 sm:$0xff]  }
 0xdb9   :  { %v5361_v41 = vpop.xlane.xlu0 %5360  ;;  %v5634_v44 = vpop.permute.xlu1 %5633 }
 0xdba   :  { %8989 = vrcp.f32 %v5361_v41  ;;  %v8894_v41 = vld [vmem:[#allocation11 + $0x2e0] ss:$16 sps:$4 sm:$0xff]  }
 0xdbd   :  { %v5801_v45 = vpop.permute.xlu1 %5800  ;;  %v5632_v48 = vpop.permute.xlu0 %5631 }
 0xdc0   :  { %v8988_v3 = vpop.eup %8987 }
 0xdc1   :  { %v5202_v13 = vmul.f32 %v8988_v3, %v8984_v56  ;;  %v5799_v49 = vpop.permute.xlu1 %5798 }
 0xdc3   :  { %7989 = vmatmul.mubr.msk.f32.vlgmr.msra.gmra.mrb[32].mxu1 %vm3119_vm2, %v5202_v13 }
 0xdc4   :  { %v8990_v8 = vpop.eup %8989  ;;  %7997 = vmatpush3.msra.mxu1 %v9524_v2  ;;  %7998 = vmatprep.mubr.msk.f32.mxu1 %vm9217_vm0, %v9216_v23 }
 0xdc5   :  { %v5363_v31 = vmul.f32 %v8990_v8, %v8986_v63  ;;  %5580 = vmatprep.subr.bf16.mxu1 %v8863_v22  ;;  %v8887_v8 = vld [vmem:[#allocation11 + $0x28c] ss:$16 sps:$4 sm:$0xff]  }
 0xdc7   :  { %7999 = vmatmul.mubr.msk.f32.vlgmr.msra.gmra.mrb[34].mxu1 %vm3119_vm2, %v5363_v31 }
 0xdc8   :  { %5581 = vmatpush1.bf16.msra.mxu1 %v8861_v19  ;;  %5612 = vmatprep.mubr.bf16.mxu1 %v9219_v30 }
 0xdc9   :  { %5582 = vmatprep.subr.bf16.mxu1 %v8869_v24  ;;  %v8885_v24 = vld [vmem:[#allocation11 + $0x288] ss:$16 sps:$4 sm:$0xff]  }
 0xdcc   :  { %5583 = vmatpush1.bf16.msra.mxu1 %v8867_v26 }
 0xdcd   :  { %5584 = vmatprep.subr.bf16.mxu1 %v8875_v25  ;;  %v8893_v25 = vld [vmem:[#allocation11 + $0x2ac] ss:$16 sps:$4 sm:$0xff]  }
 0xdd0   :  { %5585 = vmatpush1.bf16.msra.mxu1 %v8873_v57  ;;  %v8891_v57 = vld [vmem:[#allocation11 + $0x2a8] ss:$16 sps:$4 sm:$0xff]  }
 0xdd1   :  { %5586 = vmatprep.subr.bf16.mxu1 %v8878_v28  ;;  %v8897_v28 = vld [vmem:[#allocation11 + $0x2c8] ss:$16 sps:$4 sm:$0xff]  }
 0xdd4   :  { %5587 = vmatpush1.bf16.msra.mxu1 %v8876_v61  ;;  %v8899_v61 = vld [vmem:[#allocation11 + $0x2cc] ss:$16 sps:$4 sm:$0xff]  }
 0xdd5   :  { %8006 = vmatprep.subr.mxu1 %v9216_v23 }
 0xe96   :  { %v5272_v40 = vpop.f32.mrb[32].mxu1 }
 0xe97   :  { %v7990_v36 = vpop.f32.mrb[33].mxu1 }
 0xe98   :  { %v8902_v36 = vld [vmem:[#allocation11 + $0x2ec] ss:$16 sps:$4 sm:$0xff]  }
 0xe9a   :  { %v5433_v33 = vpop.f32.mrb[34].mxu1 }
 0xe9b   :  { %v5437_v47 = vpack.c.bf16 %v5433_v33, %v5272_v40  ;;  %v8000_v32 = vpop.f32.mrb[35].mxu1  ;;  %v8900_v40 = vld [vmem:[#allocation11 + $0x2e8] ss:$16 sps:$4 sm:$0xff]  }
 0xe9c   :  { %v1262_v32 = vrot.slane %v9624_v27, %v9505_v38  ;;  %v300_v27 = vrot.slane %v9637_v42, %v9505_v38 }
 0xe9d   :  { %7763 = vmatmul.mubr.msk.bf16.vlgmr.msra.gmra.mrb[20].mxu0 %vm3041_vm1, %v5437_v47  ;;  %7764 = vmatmul.mubr.msk.bf16.vlgmr.msra.gmra.mrb[20].mxu1 %vm3041_vm1, %v5437_v47 }
 0xe9e   :  { %8002 = vmatpush3.xpose.msk.msra.mxu0 %vm3041_vm1, %v5634_v44  ;;  %8003 = vmatprep.mubr.msk.f32.mxu0 %vm9217_vm0, %v9216_v23 }
 0xe9f   :  { %8011 = vmatprep.subr.mxu0 %v9216_v23  ;;  %8008 = vmatprep.mubr.msk.f32.mxu1 %vm9217_vm0, %v9216_v23 }
 0xea5   :  { %8004 = vmatmul.mubr.msk.f32.vlgmr.msra.gmra.mrb[36].mxu0 %vm3041_vm1, %v5632_v48 }
 0xea6   :  { %8012 = vmatpush3.xpose.msk.msra.mxu0 %vm3041_vm1, %v5801_v45  ;;  %8013 = vmatprep.mubr.msk.f32.mxu0 %vm9217_vm0, %v9216_v23 }
 0xea7   :  { %6065 = vmatprep.subr.bf16.mxu0 %v8881_v7  ;;  %v8912_v7 = vld [vmem:[#allocation11 + $0x340] ss:$16 sps:$4 sm:$0xff]  }
 0xea9   :  { %8014 = vmatmul.mubr.msk.f32.vlgmr.msra.gmra.mrb[38].mxu0 %vm3041_vm1, %v5799_v49  ;;  %v8074_v49 = vadd.f32 %v9502_v37, %v1262_v32  ;;  %v8066_v37 = vadd.f32 %v9486_v16, %v300_v27 }
 0xeaa   :  { %6097 = vmatprep.mubr.bf16.mxu0 %v9219_v30 }
 0xf78   :  { %v5705_v50 = vpop.f32.mrb[36].mxu0 }
 0xf79   :  { %v5709_v15 = vmul.f32 0.125, %v5705_v50  ;;  %v8005_v43 = vpop.f32.mrb[37].mxu0  ;;  %v9707_v50 = vadd.f32 %v9521_v21, %v9519_v46  ;;  %v8076_v46 = vadd.f32 %v9509_v17, %v1262_v32  ;;  %v8068_v21 = vadd.f32 %v9490_v20, %v300_v27 }
 0xf7b   :  { %v5710_v52 = vsel %vm3119_vm2, %v5709_v15, -inf }
 0xf7c   :  { %5711 = vmax.xlane.f32.xlu0 %v5710_v52  ;;  %v5872_v34 = vpop.f32.mrb[38].mxu0 }
 0xf7d   :  { %v5876_v53 = vmul.f32 0.125, %v5872_v34  ;;  %v8015_v54 = vpop.f32.mrb[39].mxu0 }
 0xf7f   :  { %v5877_v55 = vsel %vm3119_vm2, %v5876_v53, -inf }
 0xf80   :  { %5878 = vmax.xlane.f32.xlu1 %v5877_v55 }
 0xf91   :  { %5722 = vrot.lane.b32.xlu1 %v9631_v29, %s9218_s6  ;;  %v8879_v29 = vld [vmem:[#allocation11 + $0x280] ss:$16 sps:$4 sm:$0xff]  }
 0xf92   :  { %6066 = vmatpush1.bf16.msra.mxu0 %v8879_v29  ;;  %v8914_v29 = vld [vmem:[#allocation11 + $0x344] ss:$16 sps:$4 sm:$0xff]  }
 0xf93   :  { %6067 = vmatprep.subr.bf16.mxu0 %v8884_v58  ;;  %v8920_v58 = vld [vmem:[#allocation11 + $0x364] ss:$16 sps:$4 sm:$0xff]  }
 0xf96   :  { %6068 = vmatpush1.bf16.msra.mxu0 %v8882_v9  ;;  %v8918_v9 = vld [vmem:[#allocation11 + $0x360] ss:$16 sps:$4 sm:$0xff]  }
 0xf97   :  { %6069 = vmatprep.subr.bf16.mxu0 %v8890_v10 }
 0xf9a   :  { %6070 = vmatpush1.bf16.msra.mxu0 %v8888_v12 }
 0xf9b   :  { %6071 = vmatprep.subr.bf16.mxu0 %v8896_v39 }
 0xf9e   :  { %6072 = vmatpush1.bf16.msra.mxu0 %v8894_v41 }
 0xf9f   :  { %8021 = vmatprep.subr.mxu0 %v9216_v23 }
0x1009   :  { %v5712_v59 = vpop.xlane.xlu0 %5711 }
0x100a   :  { %v5713_v18 = vsub.f32 %v5709_v15, %v5712_v59 }
0x100c   :  { %v5714_v60 = vmul.f32 1.442695, %v5713_v18 }
0x100d   :  { %v5879_v11 = vpop.xlane.xlu1 %5878 }
0x100e   :  { %8991 = vpow2.f32 %v5714_v60  ;;  %v5880_v56 = vsub.f32 %v5876_v53, %v5879_v11 }
0x1010   :  { %v5881_v62 = vmul.f32 1.442695, %v5880_v56 }
0x1011   :  { %v5723_v63 = vpop.permute.xlu1 %5722 }
0x1012   :  { %8993 = vpow2.f32 %v5881_v62  ;;  %8007 = vmatpush3.msra.mxu1 %v5723_v63 }
0x1013   :  { %8016 = vmatprep.subr.mxu1 %v9216_v23 }
0x1018   :  { %v8992_v0 = vpop.eup %8991 }
0x1019   :  { %v5716_v1 = vsel %vm3119_vm2, %v8992_v0, 0.0 }
0x101a   :  { %5717 = vadd.xlane.f32.xlu0 %v5716_v1  ;;  %v8905_v1 = vld [vmem:[#allocation11 + $0x304] ss:$16 sps:$4 sm:$0xff]  }
0x101c   :  { %v8994_v4 = vpop.eup %8993 }
0x101d   :  { %v5883_v6 = vsel %vm3119_vm2, %v8994_v4, 0.0 }
0x101e   :  { %5884 = vadd.xlane.f32.xlu0 %v5883_v6  ;;  %v8906_v6 = vld [vmem:[#allocation11 + $0x320] ss:$16 sps:$4 sm:$0xff]  }
0x1034   :  { %5889 = vrot.lane.b32.xlu0 %v9524_v2, %s9218_s6 }
0x10a7   :  { %v5718_v3 = vpop.xlane.xlu0 %5717 }
0x10a8   :  { %8995 = vrcp.f32 %v5718_v3  ;;  %v8911_v3 = vld [vmem:[#allocation11 + $0x30c] ss:$16 sps:$4 sm:$0xff]  }
0x10ab   :  { %v5885_v2 = vpop.xlane.xlu0 %5884 }
0x10ac   :  { %8997 = vrcp.f32 %v5885_v2 }
0x10af   :  { %v5890_v19 = vpop.permute.xlu0 %5889 }
0x10b2   :  { %v8996_v13 = vpop.eup %8995 }
0x10b3   :  { %v5720_v22 = vmul.f32 %v8996_v13, %v8992_v0  ;;  %v8903_v0 = vld [vmem:[#allocation11 + $0x300] ss:$16 sps:$4 sm:$0xff]   ;;  %v8909_v13 = vld [vmem:[#allocation11 + $0x308] ss:$16 sps:$4 sm:$0xff]  }
0x10b5   :  { %8009 = vmatmul.mubr.msk.f32.vlgmr.msra.gmra.mrb[36].mxu1 %vm3119_vm2, %v5720_v22 }
0x10b6   :  { %v8998_v31 = vpop.eup %8997  ;;  %8017 = vmatpush3.msra.mxu1 %v5890_v19  ;;  %8018 = vmatprep.mubr.msk.f32.mxu1 %vm9217_vm0, %v9216_v23  ;;  %v8915_v19 = vld [vmem:[#allocation11 + $0x328] ss:$16 sps:$4 sm:$0xff]  }
0x10b7   :  { %v5887_v26 = vmul.f32 %v8998_v31, %v8994_v4  ;;  %6108 = vmatprep.subr.bf16.mxu1 %v8887_v8  ;;  %v8908_v4 = vld [vmem:[#allocation11 + $0x324] ss:$16 sps:$4 sm:$0xff]   ;;  %v8917_v8 = vld [vmem:[#allocation11 + $0x32c] ss:$16 sps:$4 sm:$0xff]  }
0x10b8   :  { %v8923_v31 = vld [vmem:[#allocation11 + $0x34c] ss:$16 sps:$4 sm:$0xff]  }
0x10b9   :  { %8019 = vmatmul.mubr.msk.f32.vlgmr.msra.gmra.mrb[38].mxu1 %vm3119_vm2, %v5887_v26  ;;  %v8924_v26 = vld [vmem:[#allocation11 + $0x368] ss:$16 sps:$4 sm:$0xff]  }
0x10ba   :  { %6109 = vmatpush1.bf16.msra.mxu1 %v8885_v24  ;;  %6140 = vmatprep.mubr.bf16.mxu1 %v9219_v30  ;;  %v8921_v24 = vld [vmem:[#allocation11 + $0x348] ss:$16 sps:$4 sm:$0xff]  }
0x10bb   :  { %6110 = vmatprep.subr.bf16.mxu1 %v8893_v25  ;;  %v8926_v25 = vld [vmem:[#allocation11 + $0x36c] ss:$16 sps:$4 sm:$0xff]  }
0x10be   :  { %6111 = vmatpush1.bf16.msra.mxu1 %v8891_v57 }
0x10bf   :  { %6112 = vmatprep.subr.bf16.mxu1 %v8899_v61 }
0x10c2   :  { %6113 = vmatpush1.bf16.msra.mxu1 %v8897_v28 }
0x10c3   :  { %6114 = vmatprep.subr.bf16.mxu1 %v8902_v36 }
0x10c6   :  { %6115 = vmatpush1.bf16.msra.mxu1 %v8900_v40 }
0x10c7   :  { %8026 = vmatprep.subr.mxu1 %v9216_v23 }
0x1188   :  { %v5794_v33 = vpop.f32.mrb[36].mxu1 }
0x1189   :  { %v8010_v47 = vpop.f32.mrb[37].mxu1 }
0x118c   :  { %v5961_v44 = vpop.f32.mrb[38].mxu1 }
0x118d   :  { %v5965_v45 = vpack.c.bf16 %v5961_v44, %v5794_v33  ;;  %v8020_v48 = vpop.f32.mrb[39].mxu1 }
0x118f   :  { %7787 = vmatmul.mubr.msk.bf16.vlgmr.msra.gmra.mrb[20].mxu0 %vm3041_vm1, %v5965_v45  ;;  %7788 = vmatmul.mubr.msk.bf16.vlgmr.msra.gmra.mrb[20].mxu1 %vm3041_vm1, %v5965_v45 }
0x1190   :  { %8022 = vmatpush3.xpose.msk.msra.mxu0 %vm3041_vm1, %v8074_v49  ;;  %8027 = vmatpush3.msra.mxu1 %v9707_v50 }
0x1191   :  { %8023 = vmatprep.mubr.msk.f32.mxu0 %vm9217_vm0, %v9216_v23  ;;  %8031 = vmatprep.subr.mxu0 %v9216_v23 }
0x1192   :  { %8028 = vmatprep.mubr.msk.f32.mxu1 %vm9217_vm0, %v9216_v23  ;;  %8036 = vmatprep.subr.mxu1 %v9216_v23 }
0x1197   :  { %8024 = vmatmul.mubr.msk.f32.vlgmr.msra.gmra.mrb[40].mxu0 %vm3041_vm1, %v8066_v37 }
0x1198   :  { %8032 = vmatpush3.xpose.msk.msra.mxu0 %vm3041_vm1, %v8076_v46  ;;  %8033 = vmatprep.mubr.msk.f32.mxu0 %vm9217_vm0, %v9216_v23 }
0x1199   :  { %6581 = vmatprep.subr.bf16.mxu0 %v8905_v1 }
0x119b   :  { %8034 = vmatmul.mubr.msk.f32.vlgmr.msra.gmra.mrb[42].mxu0 %vm3041_vm1, %v8068_v21 }
0x119c   :  { %6613 = vmatprep.mubr.bf16.mxu0 %v9219_v30  ;;  %6582 = vmatpush1.bf16.msra.mxu0 %v8903_v0 }
0x119d   :  { %6583 = vmatprep.subr.bf16.mxu0 %v8908_v4 }
0x11a0   :  { %6584 = vmatpush1.bf16.msra.mxu0 %v8906_v6  ;;  %v8932_v6 = vld [vmem:[#allocation11 + $0x38c] ss:$16 sps:$4 sm:$0xff]  }
0x11a1   :  { %6585 = vmatprep.subr.bf16.mxu0 %v8914_v29 }
0x11a4   :  { %6586 = vmatpush1.bf16.msra.mxu0 %v8912_v7  ;;  %v8930_v7 = vld [vmem:[#allocation11 + $0x388] ss:$16 sps:$4 sm:$0xff]  }
0x11a5   :  { %6587 = vmatprep.subr.bf16.mxu0 %v8920_v58 }
0x11a8   :  { %6588 = vmatpush1.bf16.msra.mxu0 %v8918_v9  ;;  %v8938_v9 = vld [vmem:[#allocation11 + $0x3ac] ss:$16 sps:$4 sm:$0xff]  }
0x11a9   :  { %8041 = vmatprep.subr.mxu0 %v9216_v23 }
0x126a   :  { %v6231_v42 = vpop.f32.mrb[40].mxu0 }
0x126b   :  { %v6235_v15 = vmul.f32 0.125, %v6231_v42  ;;  %v8025_v43 = vpop.f32.mrb[41].mxu0 }
0x126d   :  { %v6236_v16 = vsel %vm3119_vm2, %v6235_v15, -inf }
0x126e   :  { %6237 = vmax.xlane.f32.xlu1 %v6236_v16  ;;  %v6392_v17 = vpop.f32.mrb[42].mxu0 }
0x126f   :  { %v6396_v52 = vmul.f32 0.125, %v6392_v17  ;;  %v8035_v34 = vpop.f32.mrb[43].mxu0 }
0x1271   :  { %v6397_v53 = vsel %vm3119_vm2, %v6396_v52, -inf }
0x1272   :  { %6398 = vmax.xlane.f32.xlu0 %v6397_v53 }
0x12fb   :  { %v6238_v54 = vpop.xlane.xlu1 %6237 }
0x12fc   :  { %v6239_v55 = vsub.f32 %v6235_v15, %v6238_v54 }
0x12fe   :  { %v6240_v59 = vmul.f32 1.442695, %v6239_v55 }
0x12ff   :  { %v6399_v20 = vpop.xlane.xlu0 %6398 }
0x1300   :  { %8999 = vpow2.f32 %v6240_v59  ;;  %v6400_v18 = vsub.f32 %v6396_v52, %v6399_v20 }
0x1302   :  { %v6401_v60 = vmul.f32 1.442695, %v6400_v18  ;;  %v8929_v18 = vld [vmem:[#allocation11 + $0x384] ss:$16 sps:$4 sm:$0xff]  }
0x1304   :  { %9001 = vpow2.f32 %v6401_v60  ;;  %v8935_v60 = vld [vmem:[#allocation11 + $0x3a4] ss:$16 sps:$4 sm:$0xff]  }
0x130a   :  { %v9000_v11 = vpop.eup %8999 }
0x130b   :  { %v6242_v56 = vsel %vm3119_vm2, %v9000_v11, 0.0 }
0x130c   :  { %6243 = vadd.xlane.f32.xlu1 %v6242_v56  ;;  %v8941_v56 = vld [vmem:[#allocation11 + $0x3c4] ss:$16 sps:$4 sm:$0xff]  }
0x130e   :  { %v9002_v62 = vpop.eup %9001 }
0x130f   :  { %v6403_v63 = vsel %vm3119_vm2, %v9002_v62, 0.0 }
0x1310   :  { %6404 = vadd.xlane.f32.xlu0 %v6403_v63 }
0x131d   :  { %6677 = vrot.lane.b32.xlu1 %v8074_v49, %s9218_s6 }
0x1321   :  { %6844 = vrot.lane.b32.xlu1 %v8076_v46, %s9218_s6 }
0x1325   :  { %6842 = vrot.lane.b32.xlu1 %v8068_v21, %s9218_s6 }
0x1326   :  { %6675 = vrot.lane.b32.xlu0 %v8066_v37, %s9218_s6 }
0x1399   :  { %v6244_v10 = vpop.xlane.xlu1 %6243 }
0x139a   :  { %9003 = vrcp.f32 %v6244_v10  ;;  %v8936_v10 = vld [vmem:[#allocation11 + $0x3a8] ss:$16 sps:$4 sm:$0xff]  }
0x139d   :  { %v6405_v12 = vpop.xlane.xlu0 %6404  ;;  %v6678_v33 = vpop.permute.xlu1 %6677 }
0x139e   :  { %9005 = vrcp.f32 %v6405_v12  ;;  %v8944_v12 = vld [vmem:[#allocation11 + $0x3cc] ss:$16 sps:$4 sm:$0xff]  }
0x13a1   :  { %v6845_v47 = vpop.permute.xlu1 %6844  ;;  %v6676_v32 = vpop.permute.xlu0 %6675 }
0x13a4   :  { %v9004_v39 = vpop.eup %9003 }
0x13a5   :  { %v6246_v41 = vmul.f32 %v9004_v39, %v9000_v11  ;;  %v6843_v44 = vpop.permute.xlu1 %6842  ;;  %v8933_v11 = vld [vmem:[#allocation11 + $0x3a0] ss:$16 sps:$4 sm:$0xff]   ;;  %v8942_v39 = vld [vmem:[#allocation11 + $0x3c8] ss:$16 sps:$4 sm:$0xff]  }
0x13a7   :  { %8029 = vmatmul.mubr.msk.f32.vlgmr.msra.gmra.mrb[40].mxu1 %vm3119_vm2, %v6246_v41  ;;  %v8945_v41 = vld [vmem:[#allocation11 + $0x3e0] ss:$16 sps:$4 sm:$0xff]  }
0x13a8   :  { %v9006_v2 = vpop.eup %9005  ;;  %8037 = vmatpush3.msra.mxu1 %v9527_v51  ;;  %8038 = vmatprep.mubr.msk.f32.mxu1 %vm9217_vm0, %v9216_v23 }
0x13a9   :  { %v6407_v22 = vmul.f32 %v9006_v2, %v9002_v62  ;;  %6624 = vmatprep.subr.bf16.mxu1 %v8911_v3  ;;  %v8939_v62 = vld [vmem:[#allocation11 + $0x3c0] ss:$16 sps:$4 sm:$0xff]   ;;  %v8947_v3 = vld [vmem:[#allocation11 + $0x3e4] ss:$16 sps:$4 sm:$0xff]   ;;  %v8948_v2 = vld [vmem:[#allocation11 + $0x3e8] ss:$16 sps:$4 sm:$0xff]  }
0x13ab   :  { %8039 = vmatmul.mubr.msk.f32.vlgmr.msra.gmra.mrb[42].mxu1 %vm3119_vm2, %v6407_v22 }
0x13ac   :  { %6625 = vmatpush1.bf16.msra.mxu1 %v8909_v13  ;;  %6656 = vmatprep.mubr.bf16.mxu1 %v9219_v30 }
0x13ad   :  { %6626 = vmatprep.subr.bf16.mxu1 %v8917_v8 }
0x13b0   :  { %6627 = vmatpush1.bf16.msra.mxu1 %v8915_v19 }
0x13b1   :  { %6628 = vmatprep.subr.bf16.mxu1 %v8923_v31 }
0x13b4   :  { %6629 = vmatpush1.bf16.msra.mxu1 %v8921_v24 }
0x13b5   :  { %6630 = vmatprep.subr.bf16.mxu1 %v8926_v25 }
0x13b8   :  { %6631 = vmatpush1.bf16.msra.mxu1 %v8924_v26 }
0x13b9   :  { %8046 = vmatprep.subr.mxu1 %v9216_v23 }
0x147a   :  { %v6316_v57 = vpop.f32.mrb[40].mxu1 }
0x147b   :  { %v8030_v61 = vpop.f32.mrb[41].mxu1 }
0x147e   :  { %v6477_v28 = vpop.f32.mrb[42].mxu1 }
0x147f   :  { %v6481_v40 = vpack.c.bf16 %v6477_v28, %v6316_v57  ;;  %v8040_v36 = vpop.f32.mrb[43].mxu1 }
0x1481   :  { %7811 = vmatmul.mubr.msk.bf16.vlgmr.msra.gmra.mrb[20].mxu0 %vm3041_vm1, %v6481_v40  ;;  %7812 = vmatmul.mubr.msk.bf16.vlgmr.msra.gmra.mrb[20].mxu1 %vm3041_vm1, %v6481_v40 }
0x1482   :  { %8042 = vmatpush3.xpose.msk.msra.mxu0 %vm3041_vm1, %v6678_v33  ;;  %8043 = vmatprep.mubr.msk.f32.mxu0 %vm9217_vm0, %v9216_v23 }
0x1483   :  { %8051 = vmatprep.subr.mxu0 %v9216_v23  ;;  %8048 = vmatprep.mubr.msk.f32.mxu1 %vm9217_vm0, %v9216_v23 }
0x1489   :  { %8044 = vmatmul.mubr.msk.f32.vlgmr.msra.gmra.mrb[44].mxu0 %vm3041_vm1, %v6676_v32 }
0x148a   :  { %8052 = vmatpush3.xpose.msk.msra.mxu0 %vm3041_vm1, %v6845_v47  ;;  %8053 = vmatprep.mubr.msk.f32.mxu0 %vm9217_vm0, %v9216_v23 }
0x148b   :  { %7109 = vmatprep.subr.bf16.mxu0 %v8929_v18 }
0x148d   :  { %8054 = vmatmul.mubr.msk.f32.vlgmr.msra.gmra.mrb[46].mxu0 %vm3041_vm1, %v6843_v44 }
0x148e   :  { %7141 = vmatprep.mubr.bf16.mxu0 %v9219_v30 }
0x155c   :  { %v6749_v45 = vpop.f32.mrb[44].mxu0 }
0x155d   :  { %v6753_v48 = vmul.f32 0.125, %v6749_v45  ;;  %v8045_v49 = vpop.f32.mrb[45].mxu0 }
0x155f   :  { %v6754_v27 = vsel %vm3119_vm2, %v6753_v48, -inf }
0x1560   :  { %6755 = vmax.xlane.f32.xlu0 %v6754_v27  ;;  %v6916_v37 = vpop.f32.mrb[46].mxu0 }
0x1561   :  { %v6920_v46 = vmul.f32 0.125, %v6916_v37  ;;  %v8055_v21 = vpop.f32.mrb[47].mxu0 }
0x1563   :  { %v6921_v42 = vsel %vm3119_vm2, %v6920_v46, -inf }
0x1564   :  { %6922 = vmax.xlane.f32.xlu1 %v6921_v42 }
0x1575   :  { %6766 = vrot.lane.b32.xlu1 %v9707_v50, %s9218_s6  ;;  %v8927_v50 = vld [vmem:[#allocation11 + $0x380] ss:$16 sps:$4 sm:$0xff]  }
0x1576   :  { %7110 = vmatpush1.bf16.msra.mxu0 %v8927_v50 }
0x1577   :  { %7111 = vmatprep.subr.bf16.mxu0 %v8935_v60 }
0x157a   :  { %7112 = vmatpush1.bf16.msra.mxu0 %v8933_v11 }
0x157b   :  { %7113 = vmatprep.subr.bf16.mxu0 %v8941_v56 }
0x157e   :  { %7114 = vmatpush1.bf16.msra.mxu0 %v8939_v62 }
0x157f   :  { %7115 = vmatprep.subr.bf16.mxu0 %v8947_v3 }
0x1582   :  { %7116 = vmatpush1.bf16.msra.mxu0 %v8945_v41 }
0x15ed   :  { %v6756_v15 = vpop.xlane.xlu0 %6755 }
0x15ee   :  { %v6757_v43 = vsub.f32 %v6753_v48, %v6756_v15 }
0x15f0   :  { %v6758_v16 = vmul.f32 1.442695, %v6757_v43 }
0x15f1   :  { %v6923_v17 = vpop.xlane.xlu1 %6922 }
0x15f2   :  { %9007 = vpow2.f32 %v6758_v16  ;;  %v6924_v52 = vsub.f32 %v6920_v46, %v6923_v17 }
0x15f4   :  { %v6925_v34 = vmul.f32 1.442695, %v6924_v52 }
0x15f5   :  { %v6767_v53 = vpop.permute.xlu1 %6766 }
0x15f6   :  { %9009 = vpow2.f32 %v6925_v34  ;;  %8047 = vmatpush3.msra.mxu1 %v6767_v53 }
0x15f7   :  { %8056 = vmatprep.subr.mxu1 %v9216_v23 }
0x15fc   :  { %v9008_v54 = vpop.eup %9007 }
0x15fd   :  { %v6760_v55 = vsel %vm3119_vm2, %v9008_v54, 0.0 }
0x15fe   :  { %6761 = vadd.xlane.f32.xlu0 %v6760_v55 }
0x1600   :  { %v9010_v59 = vpop.eup %9009 }
0x1601   :  { %v6927_v20 = vsel %vm3119_vm2, %v9010_v59, 0.0 }
0x1602   :  { %6928 = vadd.xlane.f32.xlu0 %v6927_v20 }
0x1618   :  { %6933 = vrot.lane.b32.xlu0 %v9527_v51, %s9218_s6 }
0x168b   :  { %v6762_v63 = vpop.xlane.xlu0 %6761 }
0x168c   :  { %9011 = vrcp.f32 %v6762_v63 }
0x168f   :  { %v6929_v0 = vpop.xlane.xlu0 %6928 }
0x1690   :  { %9013 = vrcp.f32 %v6929_v0 }
0x1693   :  { %v6934_v51 = vpop.permute.xlu0 %6933 }
0x1696   :  { %v9012_v1 = vpop.eup %9011 }
0x1697   :  { %v6764_v4 = vmul.f32 %v9012_v1, %v9008_v54 }
0x1699   :  { %8049 = vmatmul.mubr.msk.f32.vlgmr.msra.gmra.mrb[44].mxu1 %vm3119_vm2, %v6764_v4 }
0x169a   :  { %v9014_v29 = vpop.eup %9013  ;;  %8057 = vmatpush3.msra.mxu1 %v6934_v51  ;;  %8058 = vmatprep.mubr.msk.f32.mxu1 %vm9217_vm0, %v9216_v23  ;;  %v8950_v23 = vld [vmem:[#allocation11 + $0x3ec] ss:$16 sps:$4 sm:$0xff]  }
0x169b   :  { %v6931_v58 = vmul.f32 %v9014_v29, %v9010_v59  ;;  %7152 = vmatprep.subr.bf16.mxu1 %v8932_v6 }
0x169d   :  { %8059 = vmatmul.mubr.msk.f32.vlgmr.msra.gmra.mrb[46].mxu1 %vm3119_vm2, %v6931_v58 }
0x169e   :  { %7153 = vmatpush1.bf16.msra.mxu1 %v8930_v7  ;;  %7184 = vmatprep.mubr.bf16.mxu1 %v9219_v30  ;;  %v7203_v30 = vld [vmem:[#allocation13] sm:$0xf] }
0x169f   :  { %7154 = vmatprep.subr.bf16.mxu1 %v8938_v9  ;;  %v7208_v24 = vrot.slane %v7203_v30, %v9416_v5  ;;  %v7216_v26 = vrot.slane %v7203_v30, %v9500_v35  ;;  %v7212_v25 = vrot.slane %v7203_v30, %v9459_v14  ;;  %v7220_v57 = vrot.slane %v7203_v30, %v9505_v38 }
0x16a2   :  { %7155 = vmatpush1.bf16.msra.mxu1 %v8936_v10 }
0x16a3   :  { %7156 = vmatprep.subr.bf16.mxu1 %v8944_v12 }
0x16a6   :  { %7157 = vmatpush1.bf16.msra.mxu1 %v8942_v39 }
0x16a7   :  { %7158 = vmatprep.subr.bf16.mxu1 %v8950_v23 }
0x16aa   :  { %7159 = vmatpush1.bf16.msra.mxu1 %v8948_v2 }
0x176c   :  { %v6838_v13 = vpop.f32.mrb[44].mxu1 }
0x176d   :  { %v8050_v22 = vpop.f32.mrb[45].mxu1 }
0x1770   :  { %v7005_v8 = vpop.f32.mrb[46].mxu1 }
0x1771   :  { %v7009_v19 = vpack.c.bf16 %v7005_v8, %v6838_v13  ;;  %v8060_v31 = vpop.f32.mrb[47].mxu1 }
0x1773   :  { %7835 = vmatmul.mubr.msk.bf16.vlgmr.msra.gmra.mrb[20].mxu0 %vm3041_vm1, %v7009_v19  ;;  %7836 = vmatmul.mubr.msk.bf16.vlgmr.msra.gmra.mrb[20].mxu1 %vm3041_vm1, %v7009_v19 }
0x1846   :  { %v7143_v61 = vpop.f32.mrb[20].mxu0  ;;  %v7186_v28 = vpop.f32.mrb[20].mxu1 }
0x1847   :  { %v7225_v40 = vadd.f32 %v7208_v24, %v7143_v61  ;;  %v7227_v36 = vadd.f32 %v7216_v26, %v7186_v28  ;;  %v7145_v33 = vpop.f32.mrb[21].mxu0  ;;  %v7188_v47 = vpop.f32.mrb[21].mxu1 }
0x1848   :  { %v7226_v32 = vadd.f32 %v7212_v25, %v7145_v33  ;;  %v7228_v44 = vadd.f32 %v7220_v57, %v7188_v47  ;;  %v7147_v45 = vpop.f32.mrb[22].mxu0  ;;  %v7190_v48 = vpop.f32.mrb[22].mxu1 }
0x1849   :  { %7233 = vst [vmem:[#allocation14] sm:$0xff] %v7225_v40  ;;  %7235 = vst [vmem:[#allocation14 + $0x10] sm:$0xff] %v7227_v36  ;;  %v7229_v5 = vadd.f32 %v7208_v24, %v7147_v45  ;;  %v7231_v35 = vadd.f32 %v7216_v26, %v7190_v48  ;;  %v7149_v49 = vpop.f32.mrb[23].mxu0  ;;  %v7192_v14 = vpop.f32.mrb[23].mxu1 }
0x184a   :  { %7234 = vst [vmem:[#allocation14 + $0x8] sm:$0xff] %v7226_v32  ;;  %7236 = vst [vmem:[#allocation14 + $0x18] sm:$0xff] %v7228_v44  ;;  %v7230_v38 = vadd.f32 %v7212_v25, %v7149_v49  ;;  %v7232_v27 = vadd.f32 %v7220_v57, %v7192_v14 }
0x184b   :  { %7237 = vst [vmem:[#allocation14 + $0x20] sm:$0xff] %v7229_v5  ;;  %7239 = vst [vmem:[#allocation14 + $0x30] sm:$0xff] %v7231_v35 }
0x184c   :  { %7238 = vst [vmem:[#allocation14 + $0x28] sm:$0xff] %v7230_v38  ;;  %7240 = vst [vmem:[#allocation14 + $0x38] sm:$0xff] %v7232_v27 }
0x184d   :  { %9182 = shalt.err (!%p9179_p4)
}
0x184e   :  { %s9183_s21 = scalar_lea.hbm %s9802_s7, 1024 }
0x184f   :  { %p9184_p5 = scmp.ne.s32.totalorder %s9802_s7, %s9183_s21  ;;  %p9187_p6 = scmp.lt.u32.totalorder %s9183_s21, %s9802_s7 }
0x1851   :  { %p9189_p7 = pnand %p9187_p6, %p9184_p5 }
0x1853   :  { %9192 = shalt.err (!%p9189_p7)
}
0x1854   :  { %7252 = dma.vmem_to_hbm [thread:$0]  %s7247_s0, 1024, %s9802_s7, [#allocation4], %s9205_s13, %s9205_s13, %s9206_s14  }
0x1855   :  { %9201 = dma.done.wait [#allocation4], 1024  }
0x1856   :  { %9202 = vsyncadd [#allocation4], 4294966272 }
0x1857   :  { %7256 = vsyncpa [#allocation3], 1 }
0x1858   :  { %7257 = vsyncpa [#allocation6], 1 }
0x1859   :  { %7258 = vsyncpa [#allocation9], 1 }
0x185a   :  { %7259 = vsyncpa [#allocation12], 1 }
0x185b   :  { %7260 = vsyncpa [#allocation4], 1 }

</bundles_post_ra>
